<compile_context>
chip_gen: v5e
topology: v5e:2x2
jax: 0.10.0
libtpu: 0.0.40
codegen_flags: <defaults>
</compile_context>

<pallas_src>
import functools

import jax
import jax.numpy as jnp
from jax.experimental import pallas as pl
from jax.experimental.pallas import tpu as pltpu


def _ceil_to(v, m):
    return (v + m - 1) // m * m


# ---------------------------------------------------------------------------
# Kernel 1: full-K matmul + bias + activation  (1x1 convolutions)
# ---------------------------------------------------------------------------
def _mm_bias_act_kernel(x_ref, w_ref, b_ref, o_ref, *, act):
    # x_ref: [TM, K] f32, w_ref: [K, N] bf16, b_ref: [1, N] f32, o_ref: [TM, N] f32
    y = jnp.dot(x_ref[...].astype(jnp.bfloat16), w_ref[...],
                preferred_element_type=jnp.float32)
    y = y + b_ref[...]
    if act == "relu":
        y = jnp.maximum(y, 0.0)
    elif act == "sigmoid":
        y = jax.nn.sigmoid(y)
    o_ref[...] = y.astype(o_ref.dtype)


def matmul_bias_act(x, w, b, act="relu"):
    """y = act(x @ w + b); x:[M,K] f32, w:[K,N] bf16 (BN-folded), b:[1,N] f32."""
    m, k = x.shape
    nout = w.shape[1]
    tm = 256
    if m < tm:
        tm = _ceil_to(m, 8)
    mp = _ceil_to(m, tm)
    xp = x if mp == m else jnp.pad(x, ((0, mp - m), (0, 0)))
    out = pl.pallas_call(
        functools.partial(_mm_bias_act_kernel, act=act),
        out_shape=jax.ShapeDtypeStruct((mp, nout), jnp.float32),
        grid_spec=pltpu.PrefetchScalarGridSpec(
            num_scalar_prefetch=0,
            grid=(mp // tm,),
            in_specs=[
                pl.BlockSpec((tm, k), lambda i: (i, 0)),
                pl.BlockSpec((k, nout), lambda i: (0, 0)),
                pl.BlockSpec((1, nout), lambda i: (0, 0)),
            ],
            out_specs=pl.BlockSpec((tm, nout), lambda i: (i, 0)),
        ),
        compiler_params=pltpu.CompilerParams(
            dimension_semantics=("parallel",)),
    )(xp, w, b)
    return out if mp == m else out[:m]


# ---------------------------------------------------------------------------
# Kernel 2: fused 3x3 conv (in-kernel shifted-window im2col) + bias + ReLU
# ---------------------------------------------------------------------------
def _conv3x3_kernel(xp_ref, w_ref, b_ref, o_ref):
    # xp_ref: [1, H+2, W+2, Cin] f32 (spatially padded, one image)
    # w_ref : [9, Cin, Cout] bf16 (BN scale folded in)
    # b_ref : [1, Cout] f32
    # o_ref : [1, H, W, Cout] f32
    _, hp, wp, cin = xp_ref.shape
    h, w = hp - 2, wp - 2
    cout = o_ref.shape[-1]
    acc = jnp.zeros((h * w, cout), jnp.float32)
    for t in range(9):
        di, dj = t // 3, t % 3
        patch = xp_ref[0, di:di + h, dj:dj + w, :]
        patch = patch.reshape(h * w, cin).astype(jnp.bfloat16)
        acc = acc + jnp.dot(patch, w_ref[t],
                            preferred_element_type=jnp.float32)
    y = jnp.maximum(acc + b_ref[...], 0.0)
    o_ref[...] = y.reshape(o_ref.shape).astype(o_ref.dtype)


def conv3x3_bias_relu(x_padded, w9, b):
    """x_padded: [N, H+2, W+2, Cin] f32; w9: [9, Cin, Cout] bf16; b: [1, Cout]."""
    n, hp, wp, cin = x_padded.shape
    h, w = hp - 2, wp - 2
    cout = w9.shape[-1]
    return pl.pallas_call(
        _conv3x3_kernel,
        out_shape=jax.ShapeDtypeStruct((n, h, w, cout), jnp.float32),
        grid_spec=pltpu.PrefetchScalarGridSpec(
            num_scalar_prefetch=0,
            grid=(n,),
            in_specs=[
                pl.BlockSpec((1, hp, wp, cin), lambda i: (i, 0, 0, 0)),
                pl.BlockSpec((9, cin, cout), lambda i: (0, 0, 0)),
                pl.BlockSpec((1, cout), lambda i: (0, 0)),
            ],
            out_specs=pl.BlockSpec((1, h, w, cout), lambda i: (i, 0, 0, 0)),
        ),
        compiler_params=pltpu.CompilerParams(
            dimension_semantics=("parallel",)),
    )(x_padded, w9, b)


# ---------------------------------------------------------------------------
# Kernel 3: single-output-channel 1x1 conv + sigmoid (VPU mul + lane reduce)
# ---------------------------------------------------------------------------
def _dense1_sigmoid_kernel(x_ref, w_ref, b_ref, o_ref):
    # x_ref: [TM, K] f32, w_ref: [1, K] f32, b_ref: [1, 1] f32, o_ref: [TM, 1] f32
    prod = x_ref[...] * w_ref[...]
    y = jnp.sum(prod, axis=-1, keepdims=True) + b_ref[...]
    o_ref[...] = jax.nn.sigmoid(y)


def dense1_sigmoid(x, w, b):
    m, k = x.shape
    tm = 256
    if m < tm:
        tm = _ceil_to(m, 8)
    mp = _ceil_to(m, tm)
    xp = x if mp == m else jnp.pad(x, ((0, mp - m), (0, 0)))
    out = pl.pallas_call(
        _dense1_sigmoid_kernel,
        out_shape=jax.ShapeDtypeStruct((mp, 1), jnp.float32),
        grid_spec=pltpu.PrefetchScalarGridSpec(
            num_scalar_prefetch=0,
            grid=(mp // tm,),
            in_specs=[
                pl.BlockSpec((tm, k), lambda i: (i, 0)),
                pl.BlockSpec((1, k), lambda i: (0, 0)),
                pl.BlockSpec((1, 1), lambda i: (0, 0)),
            ],
            out_specs=pl.BlockSpec((tm, 1), lambda i: (i, 0)),
        ),
        compiler_params=pltpu.CompilerParams(
            dimension_semantics=("parallel",)),
    )(xp, w, b)
    return out if mp == m else out[:m]


# ---------------------------------------------------------------------------
# Parameters (deterministic; BN folded into weights at construction time)
# ---------------------------------------------------------------------------
def make_contour_params(key, cin):
    c2, c4 = cin // 2, cin // 4
    keys = iter(jax.random.split(key, 32))

    def conv_w(kh, kw, ci, co):
        fan_in = ci * kh * kw
        return (jax.random.normal(next(keys), (kh, kw, ci, co), jnp.float32)
                * jnp.sqrt(2.0 / fan_in))

    def bn(co):
        scale = 1.0 + 0.1 * jax.random.normal(next(keys), (co,), jnp.float32)
        bias = 0.1 * jax.random.normal(next(keys), (co,), jnp.float32)
        return scale, bias

    # seq1[0] and seq2[0] (both 1x1 convs consuming x) merged into one matmul.
    w_a = conv_w(1, 1, cin, c2); s_a, b_a = bn(c2)
    w_b = conv_w(1, 1, cin, c2); s_b, b_b = bn(c2)
    head_w = jnp.concatenate(
        [(w_a.reshape(cin, c2) * s_a), (w_b.reshape(cin, c2) * s_b)],
        axis=1).astype(jnp.bfloat16)                       # [cin, 2*c2]
    head_b = jnp.concatenate([b_a, b_b]).reshape(1, 2 * c2)

    # seq1[1]: Conv(c2 -> c4, 3x3)
    w1 = conv_w(3, 3, c2, c4); s1, b1 = bn(c4)
    s1_w = (w1 * s1).reshape(9, c2, c4).astype(jnp.bfloat16)
    s1_b = b1.reshape(1, c4)

    # seq2[1]: Conv(c2 -> c4, 3x3)
    w2a = conv_w(3, 3, c2, c4); s2a, b2a = bn(c4)
    s2a_w = (w2a * s2a).reshape(9, c2, c4).astype(jnp.bfloat16)
    s2a_b = b2a.reshape(1, c4)

    # seq2[2]: Conv(c4 -> c4, 3x3)
    w2b = conv_w(3, 3, c4, c4); s2b, b2b = bn(c4)
    s2b_w = (w2b * s2b).reshape(9, c4, c4).astype(jnp.bfloat16)
    s2b_b = b2b.reshape(1, c4)

    # conv_last: Conv(cin + 2*c4 -> 1, 1x1, no BN, no activation) + sigmoid
    klast = cin + 2 * c4
    wl = conv_w(1, 1, klast, 1)
    last_w = wl.reshape(1, klast)                          # kept f32 (VPU path)
    last_b = 0.01 * jax.random.normal(next(keys), (1, 1), jnp.float32)

    return dict(head_w=head_w, head_b=head_b,
                s1_w=s1_w, s1_b=s1_b,
                s2a_w=s2a_w, s2a_b=s2a_b,
                s2b_w=s2b_w, s2b_b=s2b_b,
                last_w=last_w, last_b=last_b)


# ---------------------------------------------------------------------------
# ContourPrediction forward (jitted end-to-end)
# ---------------------------------------------------------------------------
def contour_prediction_forward(params, x_nchw):
    n, c, h, w = x_nchw.shape
    c2, c4 = c // 2, c // 4
    x = jnp.transpose(x_nchw, (0, 2, 3, 1))                 # NHWC, f32
    m = n * h * w

    # merged seq1[0] + seq2[0] 1x1 convs (one MXU matmul, fused BN+ReLU)
    t = matmul_bias_act(x.reshape(m, c), params["head_w"], params["head_b"],
                        act="relu")
    t = t.reshape(n, h, w, c)
    tp = jnp.pad(t, ((0, 0), (1, 1), (1, 1), (0, 0)))       # single spatial pad

    x1 = conv3x3_bias_relu(tp[..., :c2], params["s1_w"], params["s1_b"])
    t2 = conv3x3_bias_relu(tp[..., c2:], params["s2a_w"], params["s2a_b"])
    t2p = jnp.pad(t2, ((0, 0), (1, 1), (1, 1), (0, 0)))
    x2 = conv3x3_bias_relu(t2p, params["s2b_w"], params["s2b_b"])

    xc = jnp.concatenate([x, x1, x2], axis=-1)               # [n,h,w, c + 2*c4]
    y = dense1_sigmoid(xc.reshape(m, c + 2 * c4),
                       params["last_w"], params["last_b"])   # [m, 1]
    return jnp.transpose(y.reshape(n, h, w, 1), (0, 3, 1, 2))  # NCHW


contour_prediction_jit = jax.jit(contour_prediction_forward)


# ---------------------------------------------------------------------------
# Pure-JAX reference (for correctness check of the Pallas path)
# ---------------------------------------------------------------------------
def ref_forward(params, x_nchw):
    x = jnp.transpose(x_nchw, (0, 2, 3, 1)).astype(jnp.float32)
    n, h, w, c = x.shape
    c2, c4 = c // 2, c // 4

    def conv(inp, wk, b, k):
        y = jax.lax.conv_general_dilated(
            inp, wk.astype(jnp.float32), (1, 1), [(k // 2, k // 2)] * 2,
            dimension_numbers=("NHWC", "HWIO", "NHWC"))
        return y + b.reshape(1, 1, 1, -1)

    t = jnp.maximum(conv(x, params["head_w"].reshape(1, 1, c, c),
                         params["head_b"], 1), 0.0)
    x1 = jnp.maximum(conv(t[..., :c2], params["s1_w"].reshape(3, 3, c2, c4),
                          params["s1_b"], 3), 0.0)
    t2 = jnp.maximum(conv(t[..., c2:], params["s2a_w"].reshape(3, 3, c2, c4),
                          params["s2a_b"], 3), 0.0)
    x2 = jnp.maximum(conv(t2, params["s2b_w"].reshape(3, 3, c4, c4),
                          params["s2b_b"], 3), 0.0)
    xc = jnp.concatenate([x, x1, x2], axis=-1)
    y = jax.nn.sigmoid(conv(xc, params["last_w"].reshape(1, 1, c + 2 * c4, 1),
                            params["last_b"], 1))
    return jnp.transpose(y, (0, 3, 1, 2))


# ---------------------------------------------------------------------------
if __name__ == "__main__":
    key = jax.random.PRNGKey(0)
    k_param, k_x = jax.random.split(key)

    N, C, H, W = 2, 64, 16, 16          # small, consistent with cont2 (64 ch)
    params = make_contour_params(k_param, C)
    x = jax.random.normal(k_x, (N, C, H, W), jnp.float32)

    y = contour_prediction_jit(params, x)
    y = jax.block_until_ready(y)

    assert y.shape == (N, 1, H, W), y.shape
    assert bool(jnp.all(jnp.isfinite(y)))
    assert bool(jnp.all((y >= 0.0) & (y <= 1.0)))

    # correctness vs pure-JAX reference (bf16 MXU tolerance)
    y_ref = jax.block_until_ready(ref_forward(params, x))
    max_err = float(jnp.max(jnp.abs(y - y_ref)))
    assert max_err < 5e-2, f"max abs err vs reference: {max_err}"

    print("KERNEL_OK")
</pallas_src>

<mosaic_0001>
module attributes {stable_mosaic.version = 11 : i64} {
  func.func @_mm_bias_act_kernel(%arg0: i32, %arg1: memref<256x64xf32, #tpu.memory_space<vmem>>, %arg2: memref<64x64xbf16, #tpu.memory_space<vmem>>, %arg3: memref<1x64xf32, #tpu.memory_space<vmem>>, %arg4: memref<256x64xf32, #tpu.memory_space<vmem>>) attributes {dimension_semantics = [#tpu.dimension_semantics<parallel>], iteration_bounds = array<i64: 2>, scalar_prefetch = 0 : i64, scratch_operands = 0 : i64, tpu.core_type = #tpu.core_type<tc>, window_params = [{transform_indices = @transform_0, window_bounds = array<i64: 256, 64>}, {pipeline_mode = #tpu.pipeline_mode<synchronous>, transform_indices = @transform_1, window_bounds = array<i64: 64, 64>}, {pipeline_mode = #tpu.pipeline_mode<synchronous>, transform_indices = @transform_2, window_bounds = array<i64: 1, 64>}, {transform_indices = @transform_3, window_bounds = array<i64: 256, 64>}]} {
    %c0 = arith.constant 0 : index
    %c0_0 = arith.constant 0 : index
    %0 = vector.load %arg1[%c0, %c0_0] : memref<256x64xf32, #tpu.memory_space<vmem>>, vector<256x64xf32>
    %1 = arith.truncf %0 : vector<256x64xf32> to vector<256x64xbf16>
    %c0_1 = arith.constant 0 : index
    %c0_2 = arith.constant 0 : index
    %2 = vector.load %arg2[%c0_1, %c0_2] : memref<64x64xbf16, #tpu.memory_space<vmem>>, vector<64x64xbf16>
    %cst = arith.constant dense<0.000000e+00> : vector<256x64xf32>
    %3 = tpu.matmul %1, %2, %cst {dimension_numbers = #tpu.dot_dimension_numbers<[1], [0], [0], [1], [0, 0, 1, 1], [], []>} : vector<256x64xbf16>, vector<64x64xbf16>, vector<256x64xf32> -> vector<256x64xf32>
    %c0_3 = arith.constant 0 : index
    %c0_4 = arith.constant 0 : index
    %4 = vector.load %arg3[%c0_3, %c0_4] : memref<1x64xf32, #tpu.memory_space<vmem>>, vector<1x64xf32>
    %5 = vector.broadcast %4 : vector<1x64xf32> to vector<256x64xf32>
    %6 = arith.addf %3, %5 : vector<256x64xf32>
    %cst_5 = arith.constant 0.000000e+00 : f32
    %7 = vector.broadcast %cst_5 : f32 to vector<256x64xf32>
    %8 = arith.maximumf %6, %7 : vector<256x64xf32>
    %c0_6 = arith.constant 0 : index
    %c0_7 = arith.constant 0 : index
    %9 = vector.load %arg4[%c0_6, %c0_7] : memref<256x64xf32, #tpu.memory_space<vmem>>, vector<256x64xf32>
    tpu.vector_store %arg4[%c0_6, %c0_7], %8 {strides = array<i32>} : memref<256x64xf32, #tpu.memory_space<vmem>>, vector<256x64xf32>,
    return
  }
  func.func @transform_0(%arg0: i32) -> (i32, i32) {
    %c0_i32 = arith.constant 0 : i32
    %c0_i32_0 = arith.constant 0 : i32
    return %arg0, %c0_i32 : i32, i32
  }
  func.func @transform_1(%arg0: i32) -> (i32, i32) {
    %c0_i32 = arith.constant 0 : i32
    %c0_i32_0 = arith.constant 0 : i32
    %c0_i32_1 = arith.constant 0 : i32
    return %c0_i32, %c0_i32_0 : i32, i32
  }
  func.func @transform_2(%arg0: i32) -> (i32, i32) {
    %c0_i32 = arith.constant 0 : i32
    %c0_i32_0 = arith.constant 0 : i32
    %c0_i32_1 = arith.constant 0 : i32
    return %c0_i32, %c0_i32_0 : i32, i32
  }
  func.func @transform_3(%arg0: i32) -> (i32, i32) {
    %c0_i32 = arith.constant 0 : i32
    %c0_i32_0 = arith.constant 0 : i32
    return %arg0, %c0_i32 : i32, i32
  }
}

module attributes {stable_mosaic.version = 11 : i64} {
  func.func @_conv3x3_kernel(%arg0: i32, %arg1: memref<1x18x18x32xf32, #tpu.memory_space<vmem>>, %arg2: memref<9x32x16xbf16, #tpu.memory_space<vmem>>, %arg3: memref<1x16xf32, #tpu.memory_space<vmem>>, %arg4: memref<1x16x16x16xf32, #tpu.memory_space<vmem>>) attributes {dimension_semantics = [#tpu.dimension_semantics<parallel>], iteration_bounds = array<i64: 2>, scalar_prefetch = 0 : i64, scratch_operands = 0 : i64, tpu.core_type = #tpu.core_type<tc>, window_params = [{transform_indices = @transform_0, window_bounds = array<i64: 1, 18, 18, 32>}, {pipeline_mode = #tpu.pipeline_mode<synchronous>, transform_indices = @transform_1, window_bounds = array<i64: 9, 32, 16>}, {pipeline_mode = #tpu.pipeline_mode<synchronous>, transform_indices = @transform_2, window_bounds = array<i64: 1, 16>}, {transform_indices = @transform_3, window_bounds = array<i64: 1, 16, 16, 16>}]} {
    %cst = arith.constant 0.000000e+00 : f32
    %0 = vector.broadcast %cst : f32 to vector<256x16xf32>
    %c0 = arith.constant 0 : index
    %c0_0 = arith.constant 0 : index
    %c0_1 = arith.constant 0 : index
    %c0_2 = arith.constant 0 : index
    %1 = vector.load %arg1[%c0, %c0_0, %c0_1, %c0_2] : memref<1x18x18x32xf32, #tpu.memory_space<vmem>>, vector<1x16x16x32xf32>
    %2 = vector.shape_cast %1 : vector<1x16x16x32xf32> to vector<16x16x32xf32>
    %3 = vector.shape_cast %2 : vector<16x16x32xf32> to vector<256x32xf32>
    %4 = arith.truncf %3 : vector<256x32xf32> to vector<256x32xbf16>
    %c0_3 = arith.constant 0 : index
    %c0_4 = arith.constant 0 : index
    %c0_5 = arith.constant 0 : index
    %5 = vector.load %arg2[%c0_3, %c0_4, %c0_5] : memref<9x32x16xbf16, #tpu.memory_space<vmem>>, vector<1x32x16xbf16>
    %6 = vector.shape_cast %5 : vector<1x32x16xbf16> to vector<32x16xbf16>
    %cst_6 = arith.constant dense<0.000000e+00> : vector<256x16xf32>
    %7 = tpu.matmul %4, %6, %cst_6 {dimension_numbers = #tpu.dot_dimension_numbers<[1], [0], [0], [1], [0, 0, 1, 1], [], []>} : vector<256x32xbf16>, vector<32x16xbf16>, vector<256x16xf32> -> vector<256x16xf32>
    %8 = arith.addf %0, %7 : vector<256x16xf32>
    %c0_7 = arith.constant 0 : index
    %c0_8 = arith.constant 0 : index
    %c1 = arith.constant 1 : index
    %c0_9 = arith.constant 0 : index
    %9 = vector.load %arg1[%c0_7, %c0_8, %c1, %c0_9] : memref<1x18x18x32xf32, #tpu.memory_space<vmem>>, vector<1x16x16x32xf32>
    %10 = vector.shape_cast %9 : vector<1x16x16x32xf32> to vector<16x16x32xf32>
    %11 = vector.shape_cast %10 : vector<16x16x32xf32> to vector<256x32xf32>
    %12 = arith.truncf %11 : vector<256x32xf32> to vector<256x32xbf16>
    %c1_10 = arith.constant 1 : index
    %c0_11 = arith.constant 0 : index
    %c0_12 = arith.constant 0 : index
    %13 = vector.load %arg2[%c1_10, %c0_11, %c0_12] : memref<9x32x16xbf16, #tpu.memory_space<vmem>>, vector<1x32x16xbf16>
    %14 = vector.shape_cast %13 : vector<1x32x16xbf16> to vector<32x16xbf16>
    %cst_13 = arith.constant dense<0.000000e+00> : vector<256x16xf32>
    %15 = tpu.matmul %12, %14, %cst_13 {dimension_numbers = #tpu.dot_dimension_numbers<[1], [0], [0], [1], [0, 0, 1, 1], [], []>} : vector<256x32xbf16>, vector<32x16xbf16>, vector<256x16xf32> -> vector<256x16xf32>
    %16 = arith.addf %8, %15 : vector<256x16xf32>
    %c0_14 = arith.constant 0 : index
    %c0_15 = arith.constant 0 : index
    %c2 = arith.constant 2 : index
    %c0_16 = arith.constant 0 : index
    %17 = vector.load %arg1[%c0_14, %c0_15, %c2, %c0_16] : memref<1x18x18x32xf32, #tpu.memory_space<vmem>>, vector<1x16x16x32xf32>
    %18 = vector.shape_cast %17 : vector<1x16x16x32xf32> to vector<16x16x32xf32>
    %19 = vector.shape_cast %18 : vector<16x16x32xf32> to vector<256x32xf32>
    %20 = arith.truncf %19 : vector<256x32xf32> to vector<256x32xbf16>
    %c2_17 = arith.constant 2 : index
    %c0_18 = arith.constant 0 : index
    %c0_19 = arith.constant 0 : index
    %21 = vector.load %arg2[%c2_17, %c0_18, %c0_19] : memref<9x32x16xbf16, #tpu.memory_space<vmem>>, vector<1x32x16xbf16>
    %22 = vector.shape_cast %21 : vector<1x32x16xbf16> to vector<32x16xbf16>
    %cst_20 = arith.constant dense<0.000000e+00> : vector<256x16xf32>
    %23 = tpu.matmul %20, %22, %cst_20 {dimension_numbers = #tpu.dot_dimension_numbers<[1], [0], [0], [1], [0, 0, 1, 1], [], []>} : vector<256x32xbf16>, vector<32x16xbf16>, vector<256x16xf32> -> vector<256x16xf32>
    %24 = arith.addf %16, %23 : vector<256x16xf32>
    %c0_21 = arith.constant 0 : index
    %c1_22 = arith.constant 1 : index
    %c0_23 = arith.constant 0 : index
    %c0_24 = arith.constant 0 : index
    %25 = vector.load %arg1[%c0_21, %c1_22, %c0_23, %c0_24] : memref<1x18x18x32xf32, #tpu.memory_space<vmem>>, vector<1x16x16x32xf32>
    %26 = vector.shape_cast %25 : vector<1x16x16x32xf32> to vector<16x16x32xf32>
    %27 = vector.shape_cast %26 : vector<16x16x32xf32> to vector<256x32xf32>
    %28 = arith.truncf %27 : vector<256x32xf32> to vector<256x32xbf16>
    %c3 = arith.constant 3 : index
    %c0_25 = arith.constant 0 : index
    %c0_26 = arith.constant 0 : index
    %29 = vector.load %arg2[%c3, %c0_25, %c0_26] : memref<9x32x16xbf16, #tpu.memory_space<vmem>>, vector<1x32x16xbf16>
    %30 = vector.shape_cast %29 : vector<1x32x16xbf16> to vector<32x16xbf16>
    %cst_27 = arith.constant dense<0.000000e+00> : vector<256x16xf32>
    %31 = tpu.matmul %28, %30, %cst_27 {dimension_numbers = #tpu.dot_dimension_numbers<[1], [0], [0], [1], [0, 0, 1, 1], [], []>} : vector<256x32xbf16>, vector<32x16xbf16>, vector<256x16xf32> -> vector<256x16xf32>
    %32 = arith.addf %24, %31 : vector<256x16xf32>
    %c0_28 = arith.constant 0 : index
    %c1_29 = arith.constant 1 : index
    %c1_30 = arith.constant 1 : index
    %c0_31 = arith.constant 0 : index
    %33 = vector.load %arg1[%c0_28, %c1_29, %c1_30, %c0_31] : memref<1x18x18x32xf32, #tpu.memory_space<vmem>>, vector<1x16x16x32xf32>
    %34 = vector.shape_cast %33 : vector<1x16x16x32xf32> to vector<16x16x32xf32>
    %35 = vector.shape_cast %34 : vector<16x16x32xf32> to vector<256x32xf32>
    %36 = arith.truncf %35 : vector<256x32xf32> to vector<256x32xbf16>
    %c4 = arith.constant 4 : index
    %c0_32 = arith.constant 0 : index
    %c0_33 = arith.constant 0 : index
    %37 = vector.load %arg2[%c4, %c0_32, %c0_33] : memref<9x32x16xbf16, #tpu.memory_space<vmem>>, vector<1x32x16xbf16>
    %38 = vector.shape_cast %37 : vector<1x32x16xbf16> to vector<32x16xbf16>
    %cst_34 = arith.constant dense<0.000000e+00> : vector<256x16xf32>
    %39 = tpu.matmul %36, %38, %cst_34 {dimension_numbers = #tpu.dot_dimension_numbers<[1], [0], [0], [1], [0, 0, 1, 1], [], []>} : vector<256x32xbf16>, vector<32x16xbf16>, vector<256x16xf32> -> vector<256x16xf32>
    %40 = arith.addf %32, %39 : vector<256x16xf32>
    %c0_35 = arith.constant 0 : index
    %c1_36 = arith.constant 1 : index
    %c2_37 = arith.constant 2 : index
    %c0_38 = arith.constant 0 : index
    %41 = vector.load %arg1[%c0_35, %c1_36, %c2_37, %c0_38] : memref<1x18x18x32xf32, #tpu.memory_space<vmem>>, vector<1x16x16x32xf32>
    %42 = vector.shape_cast %41 : vector<1x16x16x32xf32> to vector<16x16x32xf32>
    %43 = vector.shape_cast %42 : vector<16x16x32xf32> to vector<256x32xf32>
    %44 = arith.truncf %43 : vector<256x32xf32> to vector<256x32xbf16>
    %c5 = arith.constant 5 : index
    %c0_39 = arith.constant 0 : index
    %c0_40 = arith.constant 0 : index
    %45 = vector.load %arg2[%c5, %c0_39, %c0_40] : memref<9x32x16xbf16, #tpu.memory_space<vmem>>, vector<1x32x16xbf16>
    %46 = vector.shape_cast %45 : vector<1x32x16xbf16> to vector<32x16xbf16>
    %cst_41 = arith.constant dense<0.000000e+00> : vector<256x16xf32>
    %47 = tpu.matmul %44, %46, %cst_41 {dimension_numbers = #tpu.dot_dimension_numbers<[1], [0], [0], [1], [0, 0, 1, 1], [], []>} : vector<256x32xbf16>, vector<32x16xbf16>, vector<256x16xf32> -> vector<256x16xf32>
    %48 = arith.addf %40, %47 : vector<256x16xf32>
    %c0_42 = arith.constant 0 : index
    %c2_43 = arith.constant 2 : index
    %c0_44 = arith.constant 0 : index
    %c0_45 = arith.constant 0 : index
    %49 = vector.load %arg1[%c0_42, %c2_43, %c0_44, %c0_45] : memref<1x18x18x32xf32, #tpu.memory_space<vmem>>, vector<1x16x16x32xf32>
    %50 = vector.shape_cast %49 : vector<1x16x16x32xf32> to vector<16x16x32xf32>
    %51 = vector.shape_cast %50 : vector<16x16x32xf32> to vector<256x32xf32>
    %52 = arith.truncf %51 : vector<256x32xf32> to vector<256x32xbf16>
    %c6 = arith.constant 6 : index
    %c0_46 = arith.constant 0 : index
    %c0_47 = arith.constant 0 : index
    %53 = vector.load %arg2[%c6, %c0_46, %c0_47] : memref<9x32x16xbf16, #tpu.memory_space<vmem>>, vector<1x32x16xbf16>
    %54 = vector.shape_cast %53 : vector<1x32x16xbf16> to vector<32x16xbf16>
    %cst_48 = arith.constant dense<0.000000e+00> : vector<256x16xf32>
    %55 = tpu.matmul %52, %54, %cst_48 {dimension_numbers = #tpu.dot_dimension_numbers<[1], [0], [0], [1], [0, 0, 1, 1], [], []>} : vector<256x32xbf16>, vector<32x16xbf16>, vector<256x16xf32> -> vector<256x16xf32>
    %56 = arith.addf %48, %55 : vector<256x16xf32>
    %c0_49 = arith.constant 0 : index
    %c2_50 = arith.constant 2 : index
    %c1_51 = arith.constant 1 : index
    %c0_52 = arith.constant 0 : index
    %57 = vector.load %arg1[%c0_49, %c2_50, %c1_51, %c0_52] : memref<1x18x18x32xf32, #tpu.memory_space<vmem>>, vector<1x16x16x32xf32>
    %58 = vector.shape_cast %57 : vector<1x16x16x32xf32> to vector<16x16x32xf32>
    %59 = vector.shape_cast %58 : vector<16x16x32xf32> to vector<256x32xf32>
    %60 = arith.truncf %59 : vector<256x32xf32> to vector<256x32xbf16>
    %c7 = arith.constant 7 : index
    %c0_53 = arith.constant 0 : index
    %c0_54 = arith.constant 0 : index
    %61 = vector.load %arg2[%c7, %c0_53, %c0_54] : memref<9x32x16xbf16, #tpu.memory_space<vmem>>, vector<1x32x16xbf16>
    %62 = vector.shape_cast %61 : vector<1x32x16xbf16> to vector<32x16xbf16>
    %cst_55 = arith.constant dense<0.000000e+00> : vector<256x16xf32>
    %63 = tpu.matmul %60, %62, %cst_55 {dimension_numbers = #tpu.dot_dimension_numbers<[1], [0], [0], [1], [0, 0, 1, 1], [], []>} : vector<256x32xbf16>, vector<32x16xbf16>, vector<256x16xf32> -> vector<256x16xf32>
    %64 = arith.addf %56, %63 : vector<256x16xf32>
    %c0_56 = arith.constant 0 : index
    %c2_57 = arith.constant 2 : index
    %c2_58 = arith.constant 2 : index
    %c0_59 = arith.constant 0 : index
    %65 = vector.load %arg1[%c0_56, %c2_57, %c2_58, %c0_59] : memref<1x18x18x32xf32, #tpu.memory_space<vmem>>, vector<1x16x16x32xf32>
    %66 = vector.shape_cast %65 : vector<1x16x16x32xf32> to vector<16x16x32xf32>
    %67 = vector.shape_cast %66 : vector<16x16x32xf32> to vector<256x32xf32>
    %68 = arith.truncf %67 : vector<256x32xf32> to vector<256x32xbf16>
    %c8 = arith.constant 8 : index
    %c0_60 = arith.constant 0 : index
    %c0_61 = arith.constant 0 : index
    %69 = vector.load %arg2[%c8, %c0_60, %c0_61] : memref<9x32x16xbf16, #tpu.memory_space<vmem>>, vector<1x32x16xbf16>
    %70 = vector.shape_cast %69 : vector<1x32x16xbf16> to vector<32x16xbf16>
    %cst_62 = arith.constant dense<0.000000e+00> : vector<256x16xf32>
    %71 = tpu.matmul %68, %70, %cst_62 {dimension_numbers = #tpu.dot_dimension_numbers<[1], [0], [0], [1], [0, 0, 1, 1], [], []>} : vector<256x32xbf16>, vector<32x16xbf16>, vector<256x16xf32> -> vector<256x16xf32>
    %72 = arith.addf %64, %71 : vector<256x16xf32>
    %c0_63 = arith.constant 0 : index
    %c0_64 = arith.constant 0 : index
    %73 = vector.load %arg3[%c0_63, %c0_64] : memref<1x16xf32, #tpu.memory_space<vmem>>, vector<1x16xf32>
    %74 = vector.broadcast %73 : vector<1x16xf32> to vector<256x16xf32>
    %75 = arith.addf %72, %74 : vector<256x16xf32>
    %cst_65 = arith.constant 0.000000e+00 : f32
    %76 = vector.broadcast %cst_65 : f32 to vector<256x16xf32>
    %77 = arith.maximumf %75, %76 : vector<256x16xf32>
    %78 = vector.shape_cast %77 : vector<256x16xf32> to vector<1x16x16x16xf32>
    %c0_66 = arith.constant 0 : index
    %c0_67 = arith.constant 0 : index
    %c0_68 = arith.constant 0 : index
    %c0_69 = arith.constant 0 : index
    %79 = vector.load %arg4[%c0_66, %c0_67, %c0_68, %c0_69] : memref<1x16x16x16xf32, #tpu.memory_space<vmem>>, vector<1x16x16x16xf32>
    tpu.vector_store %arg4[%c0_66, %c0_67, %c0_68, %c0_69], %78 {strides = array<i32>} : memref<1x16x16x16xf32, #tpu.memory_space<vmem>>, vector<1x16x16x16xf32>,
    return
  }
  func.func @transform_0(%arg0: i32) -> (i32, i32, i32, i32) {
    %c0_i32 = arith.constant 0 : i32
    %c0_i32_0 = arith.constant 0 : i32
    %c0_i32_1 = arith.constant 0 : i32
    %c0_i32_2 = arith.constant 0 : i32
    return %arg0, %c0_i32, %c0_i32_0, %c0_i32_1 : i32, i32, i32, i32
  }
  func.func @transform_1(%arg0: i32) -> (i32, i32, i32) {
    %c0_i32 = arith.constant 0 : i32
    %c0_i32_0 = arith.constant 0 : i32
    %c0_i32_1 = arith.constant 0 : i32
    %c0_i32_2 = arith.constant 0 : i32
    return %c0_i32, %c0_i32_0, %c0_i32_1 : i32, i32, i32
  }
  func.func @transform_2(%arg0: i32) -> (i32, i32) {
    %c0_i32 = arith.constant 0 : i32
    %c0_i32_0 = arith.constant 0 : i32
    %c0_i32_1 = arith.constant 0 : i32
    return %c0_i32, %c0_i32_0 : i32, i32
  }
  func.func @transform_3(%arg0: i32) -> (i32, i32, i32, i32) {
    %c0_i32 = arith.constant 0 : i32
    %c0_i32_0 = arith.constant 0 : i32
    %c0_i32_1 = arith.constant 0 : i32
    %c0_i32_2 = arith.constant 0 : i32
    return %arg0, %c0_i32, %c0_i32_0, %c0_i32_1 : i32, i32, i32, i32
  }
}

module attributes {stable_mosaic.version = 11 : i64} {
  func.func @_conv3x3_kernel(%arg0: i32, %arg1: memref<1x18x18x16xf32, #tpu.memory_space<vmem>>, %arg2: memref<9x16x16xbf16, #tpu.memory_space<vmem>>, %arg3: memref<1x16xf32, #tpu.memory_space<vmem>>, %arg4: memref<1x16x16x16xf32, #tpu.memory_space<vmem>>) attributes {dimension_semantics = [#tpu.dimension_semantics<parallel>], iteration_bounds = array<i64: 2>, scalar_prefetch = 0 : i64, scratch_operands = 0 : i64, tpu.core_type = #tpu.core_type<tc>, window_params = [{transform_indices = @transform_0, window_bounds = array<i64: 1, 18, 18, 16>}, {pipeline_mode = #tpu.pipeline_mode<synchronous>, transform_indices = @transform_1, window_bounds = array<i64: 9, 16, 16>}, {pipeline_mode = #tpu.pipeline_mode<synchronous>, transform_indices = @transform_2, window_bounds = array<i64: 1, 16>}, {transform_indices = @transform_3, window_bounds = array<i64: 1, 16, 16, 16>}]} {
    %cst = arith.constant 0.000000e+00 : f32
    %0 = vector.broadcast %cst : f32 to vector<256x16xf32>
    %c0 = arith.constant 0 : index
    %c0_0 = arith.constant 0 : index
    %c0_1 = arith.constant 0 : index
    %c0_2 = arith.constant 0 : index
    %1 = vector.load %arg1[%c0, %c0_0, %c0_1, %c0_2] : memref<1x18x18x16xf32, #tpu.memory_space<vmem>>, vector<1x16x16x16xf32>
    %2 = vector.shape_cast %1 : vector<1x16x16x16xf32> to vector<16x16x16xf32>
    %3 = vector.shape_cast %2 : vector<16x16x16xf32> to vector<256x16xf32>
    %4 = arith.truncf %3 : vector<256x16xf32> to vector<256x16xbf16>
    %c0_3 = arith.constant 0 : index
    %c0_4 = arith.constant 0 : index
    %c0_5 = arith.constant 0 : index
    %5 = vector.load %arg2[%c0_3, %c0_4, %c0_5] : memref<9x16x16xbf16, #tpu.memory_space<vmem>>, vector<1x16x16xbf16>
    %6 = vector.shape_cast %5 : vector<1x16x16xbf16> to vector<16x16xbf16>
    %cst_6 = arith.constant dense<0.000000e+00> : vector<256x16xf32>
    %7 = tpu.matmul %4, %6, %cst_6 {dimension_numbers = #tpu.dot_dimension_numbers<[1], [0], [0], [1], [0, 0, 1, 1], [], []>} : vector<256x16xbf16>, vector<16x16xbf16>, vector<256x16xf32> -> vector<256x16xf32>
    %8 = arith.addf %0, %7 : vector<256x16xf32>
    %c0_7 = arith.constant 0 : index
    %c0_8 = arith.constant 0 : index
    %c1 = arith.constant 1 : index
    %c0_9 = arith.constant 0 : index
    %9 = vector.load %arg1[%c0_7, %c0_8, %c1, %c0_9] : memref<1x18x18x16xf32, #tpu.memory_space<vmem>>, vector<1x16x16x16xf32>
    %10 = vector.shape_cast %9 : vector<1x16x16x16xf32> to vector<16x16x16xf32>
    %11 = vector.shape_cast %10 : vector<16x16x16xf32> to vector<256x16xf32>
    %12 = arith.truncf %11 : vector<256x16xf32> to vector<256x16xbf16>
    %c1_10 = arith.constant 1 : index
    %c0_11 = arith.constant 0 : index
    %c0_12 = arith.constant 0 : index
    %13 = vector.load %arg2[%c1_10, %c0_11, %c0_12] : memref<9x16x16xbf16, #tpu.memory_space<vmem>>, vector<1x16x16xbf16>
    %14 = vector.shape_cast %13 : vector<1x16x16xbf16> to vector<16x16xbf16>
    %cst_13 = arith.constant dense<0.000000e+00> : vector<256x16xf32>
    %15 = tpu.matmul %12, %14, %cst_13 {dimension_numbers = #tpu.dot_dimension_numbers<[1], [0], [0], [1], [0, 0, 1, 1], [], []>} : vector<256x16xbf16>, vector<16x16xbf16>, vector<256x16xf32> -> vector<256x16xf32>
    %16 = arith.addf %8, %15 : vector<256x16xf32>
    %c0_14 = arith.constant 0 : index
    %c0_15 = arith.constant 0 : index
    %c2 = arith.constant 2 : index
    %c0_16 = arith.constant 0 : index
    %17 = vector.load %arg1[%c0_14, %c0_15, %c2, %c0_16] : memref<1x18x18x16xf32, #tpu.memory_space<vmem>>, vector<1x16x16x16xf32>
    %18 = vector.shape_cast %17 : vector<1x16x16x16xf32> to vector<16x16x16xf32>
    %19 = vector.shape_cast %18 : vector<16x16x16xf32> to vector<256x16xf32>
    %20 = arith.truncf %19 : vector<256x16xf32> to vector<256x16xbf16>
    %c2_17 = arith.constant 2 : index
    %c0_18 = arith.constant 0 : index
    %c0_19 = arith.constant 0 : index
    %21 = vector.load %arg2[%c2_17, %c0_18, %c0_19] : memref<9x16x16xbf16, #tpu.memory_space<vmem>>, vector<1x16x16xbf16>
    %22 = vector.shape_cast %21 : vector<1x16x16xbf16> to vector<16x16xbf16>
    %cst_20 = arith.constant dense<0.000000e+00> : vector<256x16xf32>
    %23 = tpu.matmul %20, %22, %cst_20 {dimension_numbers = #tpu.dot_dimension_numbers<[1], [0], [0], [1], [0, 0, 1, 1], [], []>} : vector<256x16xbf16>, vector<16x16xbf16>, vector<256x16xf32> -> vector<256x16xf32>
    %24 = arith.addf %16, %23 : vector<256x16xf32>
    %c0_21 = arith.constant 0 : index
    %c1_22 = arith.constant 1 : index
    %c0_23 = arith.constant 0 : index
    %c0_24 = arith.constant 0 : index
    %25 = vector.load %arg1[%c0_21, %c1_22, %c0_23, %c0_24] : memref<1x18x18x16xf32, #tpu.memory_space<vmem>>, vector<1x16x16x16xf32>
    %26 = vector.shape_cast %25 : vector<1x16x16x16xf32> to vector<16x16x16xf32>
    %27 = vector.shape_cast %26 : vector<16x16x16xf32> to vector<256x16xf32>
    %28 = arith.truncf %27 : vector<256x16xf32> to vector<256x16xbf16>
    %c3 = arith.constant 3 : index
    %c0_25 = arith.constant 0 : index
    %c0_26 = arith.constant 0 : index
    %29 = vector.load %arg2[%c3, %c0_25, %c0_26] : memref<9x16x16xbf16, #tpu.memory_space<vmem>>, vector<1x16x16xbf16>
    %30 = vector.shape_cast %29 : vector<1x16x16xbf16> to vector<16x16xbf16>
    %cst_27 = arith.constant dense<0.000000e+00> : vector<256x16xf32>
    %31 = tpu.matmul %28, %30, %cst_27 {dimension_numbers = #tpu.dot_dimension_numbers<[1], [0], [0], [1], [0, 0, 1, 1], [], []>} : vector<256x16xbf16>, vector<16x16xbf16>, vector<256x16xf32> -> vector<256x16xf32>
    %32 = arith.addf %24, %31 : vector<256x16xf32>
    %c0_28 = arith.constant 0 : index
    %c1_29 = arith.constant 1 : index
    %c1_30 = arith.constant 1 : index
    %c0_31 = arith.constant 0 : index
    %33 = vector.load %arg1[%c0_28, %c1_29, %c1_30, %c0_31] : memref<1x18x18x16xf32, #tpu.memory_space<vmem>>, vector<1x16x16x16xf32>
    %34 = vector.shape_cast %33 : vector<1x16x16x16xf32> to vector<16x16x16xf32>
    %35 = vector.shape_cast %34 : vector<16x16x16xf32> to vector<256x16xf32>
    %36 = arith.truncf %35 : vector<256x16xf32> to vector<256x16xbf16>
    %c4 = arith.constant 4 : index
    %c0_32 = arith.constant 0 : index
    %c0_33 = arith.constant 0 : index
    %37 = vector.load %arg2[%c4, %c0_32, %c0_33] : memref<9x16x16xbf16, #tpu.memory_space<vmem>>, vector<1x16x16xbf16>
    %38 = vector.shape_cast %37 : vector<1x16x16xbf16> to vector<16x16xbf16>
    %cst_34 = arith.constant dense<0.000000e+00> : vector<256x16xf32>
    %39 = tpu.matmul %36, %38, %cst_34 {dimension_numbers = #tpu.dot_dimension_numbers<[1], [0], [0], [1], [0, 0, 1, 1], [], []>} : vector<256x16xbf16>, vector<16x16xbf16>, vector<256x16xf32> -> vector<256x16xf32>
    %40 = arith.addf %32, %39 : vector<256x16xf32>
    %c0_35 = arith.constant 0 : index
    %c1_36 = arith.constant 1 : index
    %c2_37 = arith.constant 2 : index
    %c0_38 = arith.constant 0 : index
    %41 = vector.load %arg1[%c0_35, %c1_36, %c2_37, %c0_38] : memref<1x18x18x16xf32, #tpu.memory_space<vmem>>, vector<1x16x16x16xf32>
    %42 = vector.shape_cast %41 : vector<1x16x16x16xf32> to vector<16x16x16xf32>
    %43 = vector.shape_cast %42 : vector<16x16x16xf32> to vector<256x16xf32>
    %44 = arith.truncf %43 : vector<256x16xf32> to vector<256x16xbf16>
    %c5 = arith.constant 5 : index
    %c0_39 = arith.constant 0 : index
    %c0_40 = arith.constant 0 : index
    %45 = vector.load %arg2[%c5, %c0_39, %c0_40] : memref<9x16x16xbf16, #tpu.memory_space<vmem>>, vector<1x16x16xbf16>
    %46 = vector.shape_cast %45 : vector<1x16x16xbf16> to vector<16x16xbf16>
    %cst_41 = arith.constant dense<0.000000e+00> : vector<256x16xf32>
    %47 = tpu.matmul %44, %46, %cst_41 {dimension_numbers = #tpu.dot_dimension_numbers<[1], [0], [0], [1], [0, 0, 1, 1], [], []>} : vector<256x16xbf16>, vector<16x16xbf16>, vector<256x16xf32> -> vector<256x16xf32>
    %48 = arith.addf %40, %47 : vector<256x16xf32>
    %c0_42 = arith.constant 0 : index
    %c2_43 = arith.constant 2 : index
    %c0_44 = arith.constant 0 : index
    %c0_45 = arith.constant 0 : index
    %49 = vector.load %arg1[%c0_42, %c2_43, %c0_44, %c0_45] : memref<1x18x18x16xf32, #tpu.memory_space<vmem>>, vector<1x16x16x16xf32>
    %50 = vector.shape_cast %49 : vector<1x16x16x16xf32> to vector<16x16x16xf32>
    %51 = vector.shape_cast %50 : vector<16x16x16xf32> to vector<256x16xf32>
    %52 = arith.truncf %51 : vector<256x16xf32> to vector<256x16xbf16>
    %c6 = arith.constant 6 : index
    %c0_46 = arith.constant 0 : index
    %c0_47 = arith.constant 0 : index
    %53 = vector.load %arg2[%c6, %c0_46, %c0_47] : memref<9x16x16xbf16, #tpu.memory_space<vmem>>, vector<1x16x16xbf16>
    %54 = vector.shape_cast %53 : vector<1x16x16xbf16> to vector<16x16xbf16>
    %cst_48 = arith.constant dense<0.000000e+00> : vector<256x16xf32>
    %55 = tpu.matmul %52, %54, %cst_48 {dimension_numbers = #tpu.dot_dimension_numbers<[1], [0], [0], [1], [0, 0, 1, 1], [], []>} : vector<256x16xbf16>, vector<16x16xbf16>, vector<256x16xf32> -> vector<256x16xf32>
    %56 = arith.addf %48, %55 : vector<256x16xf32>
    %c0_49 = arith.constant 0 : index
    %c2_50 = arith.constant 2 : index
    %c1_51 = arith.constant 1 : index
    %c0_52 = arith.constant 0 : index
    %57 = vector.load %arg1[%c0_49, %c2_50, %c1_51, %c0_52] : memref<1x18x18x16xf32, #tpu.memory_space<vmem>>, vector<1x16x16x16xf32>
    %58 = vector.shape_cast %57 : vector<1x16x16x16xf32> to vector<16x16x16xf32>
    %59 = vector.shape_cast %58 : vector<16x16x16xf32> to vector<256x16xf32>
    %60 = arith.truncf %59 : vector<256x16xf32> to vector<256x16xbf16>
    %c7 = arith.constant 7 : index
    %c0_53 = arith.constant 0 : index
    %c0_54 = arith.constant 0 : index
    %61 = vector.load %arg2[%c7, %c0_53, %c0_54] : memref<9x16x16xbf16, #tpu.memory_space<vmem>>, vector<1x16x16xbf16>
    %62 = vector.shape_cast %61 : vector<1x16x16xbf16> to vector<16x16xbf16>
    %cst_55 = arith.constant dense<0.000000e+00> : vector<256x16xf32>
    %63 = tpu.matmul %60, %62, %cst_55 {dimension_numbers = #tpu.dot_dimension_numbers<[1], [0], [0], [1], [0, 0, 1, 1], [], []>} : vector<256x16xbf16>, vector<16x16xbf16>, vector<256x16xf32> -> vector<256x16xf32>
    %64 = arith.addf %56, %63 : vector<256x16xf32>
    %c0_56 = arith.constant 0 : index
    %c2_57 = arith.constant 2 : index
    %c2_58 = arith.constant 2 : index
    %c0_59 = arith.constant 0 : index
    %65 = vector.load %arg1[%c0_56, %c2_57, %c2_58, %c0_59] : memref<1x18x18x16xf32, #tpu.memory_space<vmem>>, vector<1x16x16x16xf32>
    %66 = vector.shape_cast %65 : vector<1x16x16x16xf32> to vector<16x16x16xf32>
    %67 = vector.shape_cast %66 : vector<16x16x16xf32> to vector<256x16xf32>
    %68 = arith.truncf %67 : vector<256x16xf32> to vector<256x16xbf16>
    %c8 = arith.constant 8 : index
    %c0_60 = arith.constant 0 : index
    %c0_61 = arith.constant 0 : index
    %69 = vector.load %arg2[%c8, %c0_60, %c0_61] : memref<9x16x16xbf16, #tpu.memory_space<vmem>>, vector<1x16x16xbf16>
    %70 = vector.shape_cast %69 : vector<1x16x16xbf16> to vector<16x16xbf16>
    %cst_62 = arith.constant dense<0.000000e+00> : vector<256x16xf32>
    %71 = tpu.matmul %68, %70, %cst_62 {dimension_numbers = #tpu.dot_dimension_numbers<[1], [0], [0], [1], [0, 0, 1, 1], [], []>} : vector<256x16xbf16>, vector<16x16xbf16>, vector<256x16xf32> -> vector<256x16xf32>
    %72 = arith.addf %64, %71 : vector<256x16xf32>
    %c0_63 = arith.constant 0 : index
    %c0_64 = arith.constant 0 : index
    %73 = vector.load %arg3[%c0_63, %c0_64] : memref<1x16xf32, #tpu.memory_space<vmem>>, vector<1x16xf32>
    %74 = vector.broadcast %73 : vector<1x16xf32> to vector<256x16xf32>
    %75 = arith.addf %72, %74 : vector<256x16xf32>
    %cst_65 = arith.constant 0.000000e+00 : f32
    %76 = vector.broadcast %cst_65 : f32 to vector<256x16xf32>
    %77 = arith.maximumf %75, %76 : vector<256x16xf32>
    %78 = vector.shape_cast %77 : vector<256x16xf32> to vector<1x16x16x16xf32>
    %c0_66 = arith.constant 0 : index
    %c0_67 = arith.constant 0 : index
    %c0_68 = arith.constant 0 : index
    %c0_69 = arith.constant 0 : index
    %79 = vector.load %arg4[%c0_66, %c0_67, %c0_68, %c0_69] : memref<1x16x16x16xf32, #tpu.memory_space<vmem>>, vector<1x16x16x16xf32>
    tpu.vector_store %arg4[%c0_66, %c0_67, %c0_68, %c0_69], %78 {strides = array<i32>} : memref<1x16x16x16xf32, #tpu.memory_space<vmem>>, vector<1x16x16x16xf32>,
    return
  }
  func.func @transform_0(%arg0: i32) -> (i32, i32, i32, i32) {
    %c0_i32 = arith.constant 0 : i32
    %c0_i32_0 = arith.constant 0 : i32
    %c0_i32_1 = arith.constant 0 : i32
    %c0_i32_2 = arith.constant 0 : i32
    return %arg0, %c0_i32, %c0_i32_0, %c0_i32_1 : i32, i32, i32, i32
  }
  func.func @transform_1(%arg0: i32) -> (i32, i32, i32) {
    %c0_i32 = arith.constant 0 : i32
    %c0_i32_0 = arith.constant 0 : i32
    %c0_i32_1 = arith.constant 0 : i32
    %c0_i32_2 = arith.constant 0 : i32
    return %c0_i32, %c0_i32_0, %c0_i32_1 : i32, i32, i32
  }
  func.func @transform_2(%arg0: i32) -> (i32, i32) {
    %c0_i32 = arith.constant 0 : i32
    %c0_i32_0 = arith.constant 0 : i32
    %c0_i32_1 = arith.constant 0 : i32
    return %c0_i32, %c0_i32_0 : i32, i32
  }
  func.func @transform_3(%arg0: i32) -> (i32, i32, i32, i32) {
    %c0_i32 = arith.constant 0 : i32
    %c0_i32_0 = arith.constant 0 : i32
    %c0_i32_1 = arith.constant 0 : i32
    %c0_i32_2 = arith.constant 0 : i32
    return %arg0, %c0_i32, %c0_i32_0, %c0_i32_1 : i32, i32, i32, i32
  }
}

module attributes {stable_mosaic.version = 11 : i64} {
  func.func @_dense1_sigmoid_kernel(%arg0: i32, %arg1: memref<256x96xf32, #tpu.memory_space<vmem>>, %arg2: memref<1x96xf32, #tpu.memory_space<vmem>>, %arg3: memref<1x1xf32, #tpu.memory_space<vmem>>, %arg4: memref<256x1xf32, #tpu.memory_space<vmem>>) attributes {dimension_semantics = [#tpu.dimension_semantics<parallel>], iteration_bounds = array<i64: 2>, scalar_prefetch = 0 : i64, scratch_operands = 0 : i64, tpu.core_type = #tpu.core_type<tc>, window_params = [{transform_indices = @transform_0, window_bounds = array<i64: 256, 96>}, {pipeline_mode = #tpu.pipeline_mode<synchronous>, transform_indices = @transform_1, window_bounds = array<i64: 1, 96>}, {pipeline_mode = #tpu.pipeline_mode<synchronous>, transform_indices = @transform_2, window_bounds = array<i64: 1, 1>}, {transform_indices = @transform_3, window_bounds = array<i64: 256, 1>}]} {
    %c0 = arith.constant 0 : index
    %c0_0 = arith.constant 0 : index
    %0 = vector.load %arg1[%c0, %c0_0] : memref<256x96xf32, #tpu.memory_space<vmem>>, vector<256x96xf32>
    %c0_1 = arith.constant 0 : index
    %c0_2 = arith.constant 0 : index
    %1 = vector.load %arg2[%c0_1, %c0_2] : memref<1x96xf32, #tpu.memory_space<vmem>>, vector<1x96xf32>
    %2 = vector.broadcast %1 : vector<1x96xf32> to vector<256x96xf32>
    %3 = arith.mulf %0, %2 : vector<256x96xf32>
    %cst = arith.constant dense<0.000000e+00> : vector<256xf32>
    %4 = vector.multi_reduction <add>, %3, %cst [1] : vector<256x96xf32> to vector<256xf32>
    %5 = vector.shape_cast %4 : vector<256xf32> to vector<256x1xf32>
    %c0_3 = arith.constant 0 : index
    %c0_4 = arith.constant 0 : index
    %6 = vector.load %arg3[%c0_3, %c0_4] : memref<1x1xf32, #tpu.memory_space<vmem>>, vector<1x1xf32>
    %7 = vector.broadcast %6 : vector<1x1xf32> to vector<256x1xf32>
    %8 = arith.addf %5, %7 : vector<256x1xf32>
    %9 = arith.negf %8 : vector<256x1xf32>
    %10 = math.exp %9 : vector<256x1xf32>
    %cst_5 = arith.constant 1.000000e+00 : f32
    %11 = vector.broadcast %cst_5 : f32 to vector<256x1xf32>
    %12 = arith.addf %11, %10 : vector<256x1xf32>
    %13 = arith.divf %11, %12 : vector<256x1xf32>
    %c0_6 = arith.constant 0 : index
    %c0_7 = arith.constant 0 : index
    %14 = vector.load %arg4[%c0_6, %c0_7] : memref<256x1xf32, #tpu.memory_space<vmem>>, vector<256x1xf32>
    tpu.vector_store %arg4[%c0_6, %c0_7], %13 {strides = array<i32>} : memref<256x1xf32, #tpu.memory_space<vmem>>, vector<256x1xf32>,
    return
  }
  func.func @transform_0(%arg0: i32) -> (i32, i32) {
    %c0_i32 = arith.constant 0 : i32
    %c0_i32_0 = arith.constant 0 : i32
    return %arg0, %c0_i32 : i32, i32
  }
  func.func @transform_1(%arg0: i32) -> (i32, i32) {
    %c0_i32 = arith.constant 0 : i32
    %c0_i32_0 = arith.constant 0 : i32
    %c0_i32_1 = arith.constant 0 : i32
    return %c0_i32, %c0_i32_0 : i32, i32
  }
  func.func @transform_2(%arg0: i32) -> (i32, i32) {
    %c0_i32 = arith.constant 0 : i32
    %c0_i32_0 = arith.constant 0 : i32
    %c0_i32_1 = arith.constant 0 : i32
    return %c0_i32, %c0_i32_0 : i32, i32
  }
  func.func @transform_3(%arg0: i32) -> (i32, i32) {
    %c0_i32 = arith.constant 0 : i32
    %c0_i32_0 = arith.constant 0 : i32
    return %arg0, %c0_i32 : i32, i32
  }
}

</mosaic_0001>

<bundles_post_ra>
// kernel: contour_prediction_forward.5
= control target key start
LH: loop header
LB: loop body
LE: loop exit
PB: predicated region body
PF: predicated region fallthrough
CT: control target
= control target key end

     0   :  { %8 = vsyncpa [#allocation3], 0  ;;  %s1079_s0 = inlined_call_operand.hbm [shape: f32[512,64], index: 0, kind: input, shape index: {}]   ;;  %s1080_s1 = inlined_call_operand.hbm [shape: bf16[64,64], index: 1, kind: input, shape index: {}]   ;;  %s1081_s2 = inlined_call_operand.vmem [shape: f32[1,64], index: 2, kind: input, shape index: {}]   ;;  %s1082_s3 = inlined_call_operand.vmem [shape: f32[512,64], index: 3, kind: output, shape index: {}]  }
   0x1   :  { %10 = vsyncpa [#allocation3 + $0x1], 0 }
   0x2   :  { %11 = vsyncpa [#allocation5], 0  ;;  %s820_s12 = smov 0   ;;  %s822_s13 = smov 0  }
   0x3   :  { %s824_s14 = smov 0   ;;  %s826_s15 = smov 0  }
   0x4 LB: > { %s576_s16 = sadd.s32 4294967295, %s793_s15   ;;  %p37_p0 = scmp.ne.s32.totalorder %s785_s13, %s781_s12  ;;  %s793_s15 = sphi %s826_s15, %s1090_s15   ;;  %s789_s14 = sphi %s824_s14, %s1089_s14   ;;  %s785_s13 = sphi %s822_s13, %s1088_s13   ;;  %s781_s12 = sphi %s820_s12, %s1087_s12  }
   0x5   : > { %p842_p1 = scmp.eq.s32.totalorder %s576_s16, 0  ;;  %p578_p2 = scmp.ge.s32.totalorder %s793_s15, 1 }
   0x6   : > { %p116_p3 = scmp.lt.s32.totalorder %s793_s15, 3  ;;  %s127_s21 = sshll.u32 %s1080_s1, 4  ;;  %s128_s21 = int_to_ptr.hbm [resolvable:$true] %s127_s21 }
   0x7   : > { %p850_p4 = por %p842_p1, %p37_p0  ;;  %s795_s23 = smov [#allocation4]  }
   0x8   : > { %p857_p5 = pnand %p578_p2, %p116_p3  ;;  %s129_s24 = sshll.u32 %s795_s23, 4  ;;  %s130_s24 = int_to_ptr.vmem [resolvable:$true] %s129_s24 }
   0x9   : > { %s866_s25 = sadd.s32 1, %s793_s15   ;;  %s796_s26 = smov 64  }
   0xa   : > { %p646_p6 = pneg %p857_p5  ;;  %s797_s27 = smov 4  }
   0xb   : > { %s21_s28 = ssub.s32 %s793_s15, %s866_s25  ;;  %s24_s29 = sadd.s32 1, %s789_s14 }
   0xc   : > { %p647_p7 = pnand %p646_p6, %p842_p1  ;;  %p22_p8 = scmp.eq.s32.totalorder %s21_s28, 0 }
   0xd   : > { %p31_p9 = scmp.ne.s32.totalorder %s789_s14, %s785_s13  ;;  %p32_p10 = scmp.eq.s32.totalorder %s793_s15, 0 }
   0xe   : > { %649 = dma.hbm_to_vmem [thread:$0]  (!%p647_p7), %s128_s21, 512, %s130_s24, [#allocation5], %s796_s26, %s796_s26, %s797_s27  }
   0xf   : > { %p655_p11 = scmp.lt.s32.totalorder %s793_s15, 2  ;;  %p33_p12 = por %p32_p10, %p31_p9 }
  0x10   : > { %s876_s30 = scalar_select %p22_p8, %s789_s14, %s24_s29  }
  0x11   : > { %s146_s4 = sand.u32 1, %s789_s14   ;;  %s623_s6 = sshll.u32 %s793_s15, 8 }
  0x12   : > { %s581_s5 = sshll.u32 %s146_s4, 8  ;;  %s155_s9 = scalar_lea.hbm %s1079_s0, %s623_s6 }
  0x13   : > { %s150_s10 = scalar_lea.vmem [#allocation2], %s581_s5  ;;  %s156_s12 = sshll.u32 %s155_s9, 4  ;;  %s157_s12 = int_to_ptr.hbm [resolvable:$true] %s156_s12 }
  0x14   : > { %s158_s11 = sshll.u32 %s150_s10, 4  ;;  %p883_p13 = pnand %p655_p11, %p33_p12  ;;  %s159_s11 = int_to_ptr.vmem [resolvable:$true] %s158_s11 }
  0x15   : > { %s147_s20 = scalar_lea.sflag [#allocation3], %s146_s4  ;;  %s725_s21 = sshra.s32 %s157_s12, 4  ;;  %s726_s21 = int_to_ptr.hbm [resolvable:$true] %s725_s21 }
  0x16   : > { %s727_s23 = scalar_lea.hbm %s726_s21, 256  ;;  %p729_p2 = pneg %p883_p13 }
  0x17   : > { %p728_p0 = scmp.ne.s32.totalorder %s726_s21, %s727_s23  ;;  %s732_s27 = scalar_lea.hbm %s1079_s0, 512 }
  0x18   : > { %p733_p7 = scmp.lt.s32.totalorder %s726_s21, %s1079_s0  ;;  %p734_p8 = scmp.lt.s32.totalorder %s732_s27, %s727_s23 }
  0x19   : > { %p730_p3 = pnand %p729_p2, %p728_p0 }
  0x1a   : > { %p735_p9 = por %p734_p8, %p733_p7 }
  0x1b   : > { %p731_p6 = pneg %p730_p3 }
  0x1d   : > { %p736_p10 = pnand %p735_p9, %p731_p6 }
  0x1f   : > { %739 = shalt.err (!%p736_p10)
}
  0x20   : > { %s798_s4 = smov 128   ;;  %s799_s5 = smov 8  }
  0x21   : > { %653 = dma.hbm_to_vmem [thread:$0]  (!%p883_p13), %s157_s12, 4096, %s159_s11, %s147_s20, %s798_s4, %s798_s4, %s799_s5  }
  0x22   : > { %170 = sbr.rel (%p857_p5) target bundleno = 253 (0xfd), region = 32  ;;  %s172_s6 = sand.u32 (!%p857_p5), 1, %s785_s13  }
  0x23   : > { %s585_s7 = sshll.u32 (!%p857_p5), %s172_s6, 8  ;;  %s173_s8 = scalar_lea.sflag (!%p857_p5), [#allocation3], %s172_s6 }
  0x24   : > { %s900_s9 = scalar_lea.vmem (!%p857_p5), [#allocation2], %s585_s7 }
  0x27   : > { %772 = dma.done.wait (%p850_p4), %s173_s8, 4096  }
  0x28   : > { %774 = vsyncadd (%p850_p4), %s173_s8, 4294963200 }
  0x29   : > { %776 = dma.done.wait (%p842_p1), [#allocation5], 512  }
  0x2a   : > { %778 = vsyncadd (%p842_p1), [#allocation5], 4294966784  ;;  %v627_v0 = vld [vmem:[#allocation4 + $0x18] sm:$0xff]  ;;  %v626_v1 = vld [vmem:[#allocation4 + $0x10] sm:$0xff]  ;;  %vm297_vm0 = vcmask 523264   ;;  %s587_s17 = sshll.u32 %s576_s16, 5 }
  0x2b   : > { %350 = vmatpush.bf16.msra.mxu0 %v627_v0  ;;  %628 = vmatpush.bf16.msra.mxu1 %v627_v0  ;;  %v625_v2 = vld [vmem:[#allocation4 + $0x8] sm:$0xff]  ;;  %v624_v3 = vld [vmem:[#allocation4] sm:$0xff]  ;;  %v215_v16 = vld [vmem:[%s900_s9 + $0x10] sm:$0xff]  ;;  %p207_p1 = scmp.lt.s32.totalorder %s587_s17, 63 }
  0x2c   : > { %629 = vmatpush.bf16.msra.mxu2 %v627_v0  ;;  %630 = vmatpush.bf16.msra.mxu3 %v627_v0  ;;  %v213_v4 = vld [vmem:[%s900_s9] sm:$0xff]  ;;  %v214_v5 = vld [vmem:[%s900_s9 + $0x8] sm:$0xff]  ;;  %v216_v17 = vld [vmem:[%s900_s9 + $0x18] sm:$0xff] }
  0x2d   : > { %v221_v6 = vld [vmem:[%s900_s9 + $0x40] sm:$0xff]  ;;  %v222_v7 = vld [vmem:[%s900_s9 + $0x48] sm:$0xff]  ;;  %v245_v12 = vpack.c.bf16 %v214_v5, %v213_v4  ;;  %v223_v18 = vld [vmem:[%s900_s9 + $0x50] sm:$0xff]  ;;  %v246_v24 = vpack.c.bf16 %v216_v17, %v215_v16  ;;  %s1092_s17 = smov (!%p207_p1, %s587_s17), 63 }
  0x2e   : > { %v229_v8 = vld [vmem:[%s900_s9 + $0x80] sm:$0xff]  ;;  %v230_v9 = vld [vmem:[%s900_s9 + $0x88] sm:$0xff]  ;;  %v249_v13 = vpack.c.bf16 %v222_v7, %v221_v6  ;;  %v224_v19 = vld [vmem:[%s900_s9 + $0x58] sm:$0xff]  ;;  %s588_s10 = sshll.u32 %s1092_s17, 3 }
  0x2f   : > { %351 = vmatpush.bf16.msra.mxu0 %v626_v1  ;;  %631 = vmatpush.bf16.msra.mxu1 %v626_v1  ;;  %v237_v10 = vld [vmem:[%s900_s9 + $0xc0] sm:$0xff]  ;;  %v238_v11 = vld [vmem:[%s900_s9 + $0xc8] sm:$0xff]  ;;  %v253_v14 = vpack.c.bf16 %v230_v9, %v229_v8  ;;  %v231_v20 = vld [vmem:[%s900_s9 + $0x90] sm:$0xff]  ;;  %v250_v25 = vpack.c.bf16 %v224_v19, %v223_v18  ;;  %s970_s19 = scalar_lea.vmem %s1082_s3, %s588_s10 }
  0x30   : > { %632 = vmatpush.bf16.msra.mxu2 %v626_v1  ;;  %633 = vmatpush.bf16.msra.mxu3 %v626_v1  ;;  %v257_v15 = vpack.c.bf16 %v238_v11, %v237_v10  ;;  %v232_v21 = vld [vmem:[%s900_s9 + $0x98] sm:$0xff]  ;;  %v239_v22 = vld [vmem:[%s900_s9 + $0xd0] sm:$0xff]  ;;  %v217_v28 = vld [vmem:[%s900_s9 + $0x20] sm:$0xff] }
  0x31   : > { %v240_v23 = vld [vmem:[%s900_s9 + $0xd8] sm:$0xff]  ;;  %v254_v26 = vpack.c.bf16 %v232_v21, %v231_v20  ;;  %v218_v29 = vld [vmem:[%s900_s9 + $0x28] sm:$0xff]  ;;  %v225_v30 = vld [vmem:[%s900_s9 + $0x60] sm:$0xff] }
  0x32   : > { %v258_v27 = vpack.c.bf16 %v240_v23, %v239_v22  ;;  %v226_v31 = vld [vmem:[%s900_s9 + $0x68] sm:$0xff]  ;;  %v233_v32 = vld [vmem:[%s900_s9 + $0xa0] sm:$0xff]  ;;  %v247_v36 = vpack.c.bf16 %v218_v29, %v217_v28  ;;  %v219_v40 = vld [vmem:[%s900_s9 + $0x30] sm:$0xff] }
  0x33   : > { %352 = vmatpush.bf16.msra.mxu0 %v625_v2  ;;  %634 = vmatpush.bf16.msra.mxu1 %v625_v2  ;;  %v234_v33 = vld [vmem:[%s900_s9 + $0xa8] sm:$0xff]  ;;  %v241_v34 = vld [vmem:[%s900_s9 + $0xe0] sm:$0xff]  ;;  %v251_v37 = vpack.c.bf16 %v226_v31, %v225_v30  ;;  %v220_v41 = vld [vmem:[%s900_s9 + $0x38] sm:$0xff] }
  0x34   : > { %635 = vmatpush.bf16.msra.mxu2 %v625_v2  ;;  %636 = vmatpush.bf16.msra.mxu3 %v625_v2  ;;  %v242_v35 = vld [vmem:[%s900_s9 + $0xe8] sm:$0xff]  ;;  %v255_v38 = vpack.c.bf16 %v234_v33, %v233_v32  ;;  %v227_v42 = vld [vmem:[%s900_s9 + $0x70] sm:$0xff]  ;;  %v228_v43 = vld [vmem:[%s900_s9 + $0x78] sm:$0xff]  ;;  %v248_v48 = vpack.c.bf16 %v220_v41, %v219_v40 }
  0x35   : > { %v259_v39 = vpack.c.bf16 %v242_v35, %v241_v34  ;;  %v235_v44 = vld [vmem:[%s900_s9 + $0xb0] sm:$0xff]  ;;  %v236_v45 = vld [vmem:[%s900_s9 + $0xb8] sm:$0xff]  ;;  %v252_v49 = vpack.c.bf16 %v228_v43, %v227_v42  ;;  %v963_v52 = vld [vmem:[%s1081_s2] ss:$0 sm:$0xff] }
  0x36   : > { %v243_v46 = vld [vmem:[%s900_s9 + $0xf0] sm:$0xff]  ;;  %v244_v47 = vld [vmem:[%s900_s9 + $0xf8] sm:$0xff]  ;;  %v256_v50 = vpack.c.bf16 %v236_v45, %v235_v44 }
  0x37   : > { %353 = vmatpush.bf16.msra.mxu0 %v624_v3  ;;  %637 = vmatpush.bf16.msra.mxu1 %v624_v3  ;;  %v260_v51 = vpack.c.bf16 %v244_v47, %v243_v46 }
  0x38   : > { %638 = vmatpush.bf16.msra.mxu2 %v624_v3  ;;  %639 = vmatpush.bf16.msra.mxu3 %v624_v3 }
  0x3a   : > { %605 = vmatmul.msk.bf16.vlgmr.msra.gmra.mxu0 %vm297_vm0, %v245_v12  ;;  %609 = vmatmul.msk.bf16.vlgmr.msra.gmra.mxu1 %vm297_vm0, %v249_v13 }
  0x3b   : > { %613 = vmatmul.msk.bf16.vlgmr.msra.gmra.mxu2 %vm297_vm0, %v253_v14  ;;  %617 = vmatmul.msk.bf16.vlgmr.msra.gmra.mxu3 %vm297_vm0, %v257_v15 }
  0x4a   : > { %606 = vmatmul.msk.bf16.gmra.mxu0 %vm297_vm0, %v246_v24  ;;  %610 = vmatmul.msk.bf16.gmra.mxu1 %vm297_vm0, %v250_v25 }
  0x4b   : > { %614 = vmatmul.msk.bf16.gmra.mxu2 %vm297_vm0, %v254_v26  ;;  %618 = vmatmul.msk.bf16.gmra.mxu3 %vm297_vm0, %v258_v27 }
  0x5a   : > { %607 = vmatmul.msk.bf16.gmra.mxu0 %vm297_vm0, %v247_v36  ;;  %611 = vmatmul.msk.bf16.gmra.mxu1 %vm297_vm0, %v251_v37 }
  0x5b   : > { %615 = vmatmul.msk.bf16.gmra.mxu2 %vm297_vm0, %v255_v38  ;;  %619 = vmatmul.msk.bf16.gmra.mxu3 %vm297_vm0, %v259_v39 }
  0x6a   : > { %608 = vmatmul.msk.bf16.gmra.mxu0 %vm297_vm0, %v248_v48  ;;  %612 = vmatmul.msk.bf16.gmra.mxu1 %vm297_vm0, %v252_v49 }
  0x6b   : > { %616 = vmatmul.msk.bf16.gmra.mxu2 %vm297_vm0, %v256_v50  ;;  %620 = vmatmul.msk.bf16.gmra.mxu3 %vm297_vm0, %v260_v51 }
  0xb7   : > { %v355_v53 = vpop.f32.mrf.mxu0  ;;  %v375_v54 = vpop.f32.mrf.mxu1 }
  0xb8   : > { %v356_v55 = vadd.f32 %v963_v52, %v355_v53  ;;  %v376_v56 = vadd.f32 %v963_v52, %v375_v54 }
  0xba   : > { %v435_v57 = vmax.f32 %v356_v55, 0.0  ;;  %v443_v58 = vmax.f32 %v376_v56, 0.0 }
  0xbc   : > { %467 = vst.msk [vmem:[%s970_s19] sm:$0xff] %vm297_vm0, %v435_v57 }
  0xbd   : > { %475 = vst.msk [vmem:[%s970_s19 + $0x40] sm:$0xff] %vm297_vm0, %v443_v58 }
  0xbe   : > { %v395_v59 = vpop.f32.mrf.mxu2  ;;  %v415_v60 = vpop.f32.mrf.mxu3 }
  0xbf   : > { %v396_v61 = vadd.f32 %v963_v52, %v395_v59  ;;  %v416_v62 = vadd.f32 %v963_v52, %v415_v60  ;;  %v357_v63 = vpop.f32.mrf.mxu0  ;;  %v377_v0 = vpop.f32.mrf.mxu1 }
  0xc0   : > { %v358_v1 = vadd.f32 %v963_v52, %v357_v63  ;;  %v378_v2 = vadd.f32 %v963_v52, %v377_v0 }
  0xc1   : > { %v451_v3 = vmax.f32 %v396_v61, 0.0  ;;  %v459_v4 = vmax.f32 %v416_v62, 0.0 }
  0xc2   : > { %v436_v5 = vmax.f32 %v358_v1, 0.0  ;;  %v444_v6 = vmax.f32 %v378_v2, 0.0 }
  0xc3   : > { %483 = vst.msk [vmem:[%s970_s19 + $0x80] sm:$0xff] %vm297_vm0, %v451_v3 }
  0xc4   : > { %491 = vst.msk [vmem:[%s970_s19 + $0xc0] sm:$0xff] %vm297_vm0, %v459_v4 }
  0xc5   : > { %468 = vst.msk [vmem:[%s970_s19 + $0x8] sm:$0xff] %vm297_vm0, %v436_v5 }
  0xc6   : > { %476 = vst.msk [vmem:[%s970_s19 + $0x48] sm:$0xff] %vm297_vm0, %v444_v6  ;;  %v397_v7 = vpop.f32.mrf.mxu2  ;;  %v417_v8 = vpop.f32.mrf.mxu3 }
  0xc7   : > { %v398_v9 = vadd.f32 %v963_v52, %v397_v7  ;;  %v418_v10 = vadd.f32 %v963_v52, %v417_v8  ;;  %v360_v11 = vpop.f32.mrf.mxu0  ;;  %v380_v12 = vpop.f32.mrf.mxu1 }
  0xc8   : > { %v361_v13 = vadd.f32 %v963_v52, %v360_v11  ;;  %v381_v14 = vadd.f32 %v963_v52, %v380_v12 }
  0xc9   : > { %v452_v15 = vmax.f32 %v398_v9, 0.0  ;;  %v460_v16 = vmax.f32 %v418_v10, 0.0 }
  0xca   : > { %v437_v17 = vmax.f32 %v361_v13, 0.0  ;;  %v445_v18 = vmax.f32 %v381_v14, 0.0 }
  0xcb   : > { %484 = vst.msk [vmem:[%s970_s19 + $0x88] sm:$0xff] %vm297_vm0, %v452_v15 }
  0xcc   : > { %492 = vst.msk [vmem:[%s970_s19 + $0xc8] sm:$0xff] %vm297_vm0, %v460_v16 }
  0xcd   : > { %469 = vst.msk [vmem:[%s970_s19 + $0x10] sm:$0xff] %vm297_vm0, %v437_v17 }
  0xce   : > { %477 = vst.msk [vmem:[%s970_s19 + $0x50] sm:$0xff] %vm297_vm0, %v445_v18  ;;  %v400_v19 = vpop.f32.mrf.mxu2  ;;  %v420_v20 = vpop.f32.mrf.mxu3 }
  0xcf   : > { %v401_v21 = vadd.f32 %v963_v52, %v400_v19  ;;  %v421_v22 = vadd.f32 %v963_v52, %v420_v20  ;;  %v362_v23 = vpop.f32.mrf.mxu0  ;;  %v382_v24 = vpop.f32.mrf.mxu1 }
  0xd0   : > { %v363_v25 = vadd.f32 %v963_v52, %v362_v23  ;;  %v383_v26 = vadd.f32 %v963_v52, %v382_v24 }
  0xd1   : > { %v453_v27 = vmax.f32 %v401_v21, 0.0  ;;  %v461_v28 = vmax.f32 %v421_v22, 0.0 }
  0xd2   : > { %v438_v29 = vmax.f32 %v363_v25, 0.0  ;;  %v446_v30 = vmax.f32 %v383_v26, 0.0 }
  0xd3   : > { %485 = vst.msk [vmem:[%s970_s19 + $0x90] sm:$0xff] %vm297_vm0, %v453_v27 }
  0xd4   : > { %493 = vst.msk [vmem:[%s970_s19 + $0xd0] sm:$0xff] %vm297_vm0, %v461_v28 }
  0xd5   : > { %470 = vst.msk [vmem:[%s970_s19 + $0x18] sm:$0xff] %vm297_vm0, %v438_v29 }
  0xd6   : > { %478 = vst.msk [vmem:[%s970_s19 + $0x58] sm:$0xff] %vm297_vm0, %v446_v30  ;;  %v402_v31 = vpop.f32.mrf.mxu2  ;;  %v422_v32 = vpop.f32.mrf.mxu3 }
  0xd7   : > { %v403_v33 = vadd.f32 %v963_v52, %v402_v31  ;;  %v423_v34 = vadd.f32 %v963_v52, %v422_v32  ;;  %v365_v35 = vpop.f32.mrf.mxu0  ;;  %v385_v36 = vpop.f32.mrf.mxu1 }
  0xd8   : > { %v366_v37 = vadd.f32 %v963_v52, %v365_v35  ;;  %v386_v38 = vadd.f32 %v963_v52, %v385_v36 }
  0xd9   : > { %v454_v39 = vmax.f32 %v403_v33, 0.0  ;;  %v462_v40 = vmax.f32 %v423_v34, 0.0 }
  0xda   : > { %v439_v41 = vmax.f32 %v366_v37, 0.0  ;;  %v447_v42 = vmax.f32 %v386_v38, 0.0 }
  0xdb   : > { %486 = vst.msk [vmem:[%s970_s19 + $0x98] sm:$0xff] %vm297_vm0, %v454_v39 }
  0xdc   : > { %494 = vst.msk [vmem:[%s970_s19 + $0xd8] sm:$0xff] %vm297_vm0, %v462_v40 }
  0xdd   : > { %471 = vst.msk [vmem:[%s970_s19 + $0x20] sm:$0xff] %vm297_vm0, %v439_v41 }
  0xde   : > { %479 = vst.msk [vmem:[%s970_s19 + $0x60] sm:$0xff] %vm297_vm0, %v447_v42  ;;  %v405_v43 = vpop.f32.mrf.mxu2  ;;  %v425_v44 = vpop.f32.mrf.mxu3 }
  0xdf   : > { %v406_v45 = vadd.f32 %v963_v52, %v405_v43  ;;  %v426_v46 = vadd.f32 %v963_v52, %v425_v44  ;;  %v367_v47 = vpop.f32.mrf.mxu0  ;;  %v387_v48 = vpop.f32.mrf.mxu1 }
  0xe0   : > { %v368_v49 = vadd.f32 %v963_v52, %v367_v47  ;;  %v388_v50 = vadd.f32 %v963_v52, %v387_v48 }
  0xe1   : > { %v455_v51 = vmax.f32 %v406_v45, 0.0  ;;  %v463_v53 = vmax.f32 %v426_v46, 0.0 }
  0xe2   : > { %v440_v54 = vmax.f32 %v368_v49, 0.0  ;;  %v448_v55 = vmax.f32 %v388_v50, 0.0 }
  0xe3   : > { %487 = vst.msk [vmem:[%s970_s19 + $0xa0] sm:$0xff] %vm297_vm0, %v455_v51 }
  0xe4   : > { %495 = vst.msk [vmem:[%s970_s19 + $0xe0] sm:$0xff] %vm297_vm0, %v463_v53 }
  0xe5   : > { %472 = vst.msk [vmem:[%s970_s19 + $0x28] sm:$0xff] %vm297_vm0, %v440_v54 }
  0xe6   : > { %480 = vst.msk [vmem:[%s970_s19 + $0x68] sm:$0xff] %vm297_vm0, %v448_v55  ;;  %v407_v56 = vpop.f32.mrf.mxu2  ;;  %v427_v57 = vpop.f32.mrf.mxu3 }
  0xe7   : > { %v408_v58 = vadd.f32 %v963_v52, %v407_v56  ;;  %v428_v59 = vadd.f32 %v963_v52, %v427_v57  ;;  %v370_v60 = vpop.f32.mrf.mxu0  ;;  %v390_v61 = vpop.f32.mrf.mxu1 }
  0xe8   : > { %v371_v62 = vadd.f32 %v963_v52, %v370_v60  ;;  %v391_v63 = vadd.f32 %v963_v52, %v390_v61 }
  0xe9   : > { %v456_v0 = vmax.f32 %v408_v58, 0.0  ;;  %v464_v1 = vmax.f32 %v428_v59, 0.0 }
  0xea   : > { %v441_v2 = vmax.f32 %v371_v62, 0.0  ;;  %v449_v3 = vmax.f32 %v391_v63, 0.0 }
  0xeb   : > { %488 = vst.msk [vmem:[%s970_s19 + $0xa8] sm:$0xff] %vm297_vm0, %v456_v0 }
  0xec   : > { %496 = vst.msk [vmem:[%s970_s19 + $0xe8] sm:$0xff] %vm297_vm0, %v464_v1 }
  0xed   : > { %473 = vst.msk [vmem:[%s970_s19 + $0x30] sm:$0xff] %vm297_vm0, %v441_v2 }
  0xee   : > { %481 = vst.msk [vmem:[%s970_s19 + $0x70] sm:$0xff] %vm297_vm0, %v449_v3  ;;  %v410_v4 = vpop.f32.mrf.mxu2  ;;  %v430_v5 = vpop.f32.mrf.mxu3 }
  0xef   : > { %v411_v6 = vadd.f32 %v963_v52, %v410_v4  ;;  %v431_v7 = vadd.f32 %v963_v52, %v430_v5  ;;  %v372_v8 = vpop.f32.mrf.mxu0  ;;  %v392_v9 = vpop.f32.mrf.mxu1 }
  0xf0   : > { %v373_v10 = vadd.f32 %v963_v52, %v372_v8  ;;  %v393_v11 = vadd.f32 %v963_v52, %v392_v9 }
  0xf1   : > { %v457_v12 = vmax.f32 %v411_v6, 0.0  ;;  %v465_v13 = vmax.f32 %v431_v7, 0.0 }
  0xf2   : > { %v442_v14 = vmax.f32 %v373_v10, 0.0  ;;  %v450_v15 = vmax.f32 %v393_v11, 0.0 }
  0xf3   : > { %489 = vst.msk [vmem:[%s970_s19 + $0xb0] sm:$0xff] %vm297_vm0, %v457_v12 }
  0xf4   : > { %497 = vst.msk [vmem:[%s970_s19 + $0xf0] sm:$0xff] %vm297_vm0, %v465_v13 }
  0xf5   : > { %474 = vst.msk [vmem:[%s970_s19 + $0x38] sm:$0xff] %vm297_vm0, %v442_v14 }
  0xf6   : > { %482 = vst.msk [vmem:[%s970_s19 + $0x78] sm:$0xff] %vm297_vm0, %v450_v15  ;;  %v412_v16 = vpop.f32.mrf.mxu2  ;;  %v432_v17 = vpop.f32.mrf.mxu3 }
  0xf7   : > { %v413_v18 = vadd.f32 %v963_v52, %v412_v16  ;;  %v433_v19 = vadd.f32 %v963_v52, %v432_v17 }
  0xf9   : > { %v458_v20 = vmax.f32 %v413_v18, 0.0  ;;  %v466_v21 = vmax.f32 %v433_v19, 0.0 }
  0xfb   : > { %490 = vst.msk [vmem:[%s970_s19 + $0xb8] sm:$0xff] %vm297_vm0, %v458_v20 }
  0xfc   : > { %498 = vst.msk [vmem:[%s970_s19 + $0xf8] sm:$0xff] %vm297_vm0, %v466_v21 }
  0xfd PF: > { %p14_p4 = scmp.ge.s32.totalorder %s866_s25, 4   ;;  %s1087_s12 = smov %s785_s13 }
  0xfe   : > { %s1088_s13 = smov %s789_s14  ;;  %s1089_s14 = smov %s876_s30 }
  0xff   : > { %s1090_s15 = smov %s866_s25  ;;  %16 = sbr.rel (!%p14_p4) target bundleno = 4 (0x4), region = 76 }
 0x104   :  { %521 = vsyncpa [#allocation3], 1 }
 0x105   :  { %523 = vsyncpa [#allocation3 + $0x1], 1 }
 0x106   :  { %524 = vsyncpa [#allocation5], 1 }

// kernel: contour_prediction_forward.7
= control target key start
LH: loop header
LB: loop body
LE: loop exit
PB: predicated region body
PF: predicated region fallthrough
CT: control target
= control target key end

     0   :  { %s2885_s12 = smov 0   ;;  %s3743_s0 = inlined_call_operand.vmem [shape: f32[2,18,18,32], index: 0, kind: input, shape index: {}]   ;;  %s3744_s1 = inlined_call_operand.vmem [shape: bf16[9,32,16], index: 1, kind: input, shape index: {}]   ;;  %s3745_s2 = inlined_call_operand.vmem [shape: f32[1,16], index: 2, kind: input, shape index: {}]   ;;  %s3746_s3 = inlined_call_operand.vmem [shape: f32[2,16,16,16], index: 3, kind: output, shape index: {}]  }
   0x1 LB: > { %s2372_s13 = sadd.s32 4294967295, %s2863_s12   ;;  %p2376_p0 = scmp.ge.s32.totalorder %s2863_s12, 1  ;;  %s2863_s12 = sphi %s2885_s12, %s13_s12  }
   0x2   : > { %p137_p1 = scmp.lt.s32.totalorder %s2863_s12, 3 }
   0x4   : > { %p138_p2 = pnand %p2376_p0, %p137_p1 }
   0x6   : > { %141 = sbr.rel (%p138_p2) target bundleno = 733 (0x2dd), region = 32 }
   0xb   : > { %v2826_v0 = vld [vmem:[%s3744_s1 + $0x18] sm:$0xff]  ;;  %p161_p3 = scmp.lt.s32.totalorder %s2372_s13, 1  ;;  %v2825_v1 = vld [vmem:[%s3744_s1 + $0x10] sm:$0xff]  ;;  %v2828_v2 = vld [vmem:[%s3744_s1 + $0x28] sm:$0xff]  ;;  %vm289_vm0 = vcmask 261120   ;;  %vm2284_vm1 = vcmask 130048  }
   0xc   : > { %2841 = vmatpush.bf16.msra.mxu1 %v2826_v0  ;;  %2842 = vmatpush.bf16.msra.mxu2 %v2826_v0  ;;  %v2830_v3 = vld [vmem:[%s3744_s1 + $0x38] sm:$0xff]  ;;  %v2824_v4 = vld [vmem:[%s3744_s1 + $0x8] sm:$0xff]  ;;  %v2827_v18 = vld [vmem:[%s3744_s1 + $0x20] sm:$0xff] }
   0xd   : > { %s3790_s13 = smov (!%p161_p3, %s2372_s13), 1  ;;  %2843 = vmatpush.bf16.msra.mxu3 %v2826_v0  ;;  %344 = vmatpush.bf16.msra.mxu0 %v2826_v0  ;;  %v2832_v5 = vld [vmem:[%s3744_s1 + $0x48] sm:$0xff]  ;;  %v2829_v19 = vld [vmem:[%s3744_s1 + $0x30] sm:$0xff]  ;;  %v2823_v20 = vld [vmem:[%s3744_s1] sm:$0xff] }
   0xe   : > { %s2847_s18 = smul.u32 432, %s3790_s13  ;;  %v2831_v21 = vld [vmem:[%s3744_s1 + $0x40] sm:$0xff]  ;;  %v2836_v46 = vld [vmem:[%s3744_s1 + $0x68] sm:$0xff]  ;;  %v2838_v47 = vld [vmem:[%s3744_s1 + $0x78] sm:$0xff]  ;;  %s2822_s5 = sshll.u32 %s3790_s13, 8 }
   0xf   : > { %v2834_v48 = vld [vmem:[%s3744_s1 + $0x58] sm:$0xff]  ;;  %v2840_v49 = vld [vmem:[%s3744_s1 + $0x88] sm:$0xff]  ;;  %s3551_s8 = scalar_lea.vmem %s3746_s3, %s2822_s5 }
  0x10   : > { %2844 = vmatpush.bf16.msra.mxu1 %v2825_v1  ;;  %2845 = vmatpush.bf16.msra.mxu2 %v2825_v1  ;;  %s2917_s29 = scalar_lea.vmem %s3743_s0, %s2847_s18 }
  0x11   : > { %2846 = vmatpush.bf16.msra.mxu3 %v2825_v1  ;;  %345 = vmatpush.bf16.msra.mxu0 %v2825_v1  ;;  %v232_v6 = vld [vmem:[%s2917_s29 + $0x61] sm:$0xff]  ;;  %v233_v7 = vld [vmem:[%s2917_s29 + $0x69] sm:$0xff]  ;;  %v234_v22 = vld [vmem:[%s2917_s29 + $0x79] sm:$0xff] }
  0x12   : > { %v240_v8 = vld [vmem:[%s2917_s29 + $0xc1] sm:$0xff]  ;;  %v2922_v9 = vpack.c.bf16 %v233_v7, %v232_v6  ;;  %v241_v10 = vld [vmem:[%s2917_s29 + $0xc9] sm:$0xff]  ;;  %v242_v24 = vld [vmem:[%s2917_s29 + $0xd9] sm:$0xff] }
  0x13   : > { %v248_v11 = vld [vmem:[%s2917_s29 + $0x121] sm:$0xff]  ;;  %v249_v12 = vld [vmem:[%s2917_s29 + $0x129] sm:$0xff]  ;;  %v2927_v13 = vpack.c.bf16 %v241_v10, %v240_v8  ;;  %v250_v26 = vld [vmem:[%s2917_s29 + $0x139] sm:$0xff] }
  0x14   : > { %695 = vmatpush.bf16.msrb.mxu2 %v2828_v2  ;;  %v2929_v14 = vpack.c.bf16 %v249_v12, %v248_v11  ;;  %v224_v15 = vld [vmem:[%s2917_s29 + $0x1] sm:$0xff]  ;;  %v225_v16 = vld [vmem:[%s2917_s29 + $0x9] sm:$0xff]  ;;  %493 = vmatpush.bf16.msrb.mxu1 %v2824_v4  ;;  %v226_v28 = vld [vmem:[%s2917_s29 + $0x19] sm:$0xff] }
  0x15   : > { %930 = vmatpush.bf16.msrb.mxu3 %v2830_v3  ;;  %1164 = vmatpush.bf16.msrb.mxu0 %v2832_v5  ;;  %v256_v17 = vpack.c.bf16 %v225_v16, %v224_v15  ;;  %v235_v23 = vld [vmem:[%s2917_s29 + $0x81] sm:$0xff]  ;;  %v236_v34 = vld [vmem:[%s2917_s29 + $0x91] sm:$0xff]  ;;  %v237_v35 = vld [vmem:[%s2917_s29 + $0x99] sm:$0xff] }
  0x16   : > { %2396 = vmatmul.msk.bf16.vlgmr.msra.gmra.mxu1 %vm289_vm0, %v2922_v9  ;;  %2400 = vmatmul.msk.bf16.vlgmr.msra.gmra.mxu2 %vm289_vm0, %v2927_v13  ;;  %v243_v25 = vld [vmem:[%s2917_s29 + $0xe1] sm:$0xff]  ;;  %v2960_v30 = vpack.c.bf16 %v235_v23, %v234_v22  ;;  %v244_v36 = vld [vmem:[%s2917_s29 + $0xf1] sm:$0xff]  ;;  %v245_v37 = vld [vmem:[%s2917_s29 + $0xf9] sm:$0xff]  ;;  %v2981_v42 = vpack.c.bf16 %v237_v35, %v236_v34 }
  0x17   : > { %2404 = vmatmul.msk.bf16.vlgmr.msra.gmra.mxu3 %vm289_vm0, %v2929_v14  ;;  %2392 = vmatmul.msk.bf16.vlgmr.msra.gmra.mxu0 %vm289_vm0, %v256_v17  ;;  %v251_v27 = vld [vmem:[%s2917_s29 + $0x141] sm:$0xff]  ;;  %v2962_v31 = vpack.c.bf16 %v243_v25, %v242_v24  ;;  %v252_v38 = vld [vmem:[%s2917_s29 + $0x151] sm:$0xff]  ;;  %v253_v39 = vld [vmem:[%s2917_s29 + $0x159] sm:$0xff]  ;;  %v2983_v43 = vpack.c.bf16 %v245_v37, %v244_v36 }
  0x18   : > { %696 = vmatpush.bf16.msrb.mxu2 %v2827_v18  ;;  %494 = vmatpush.bf16.msrb.mxu1 %v2823_v20  ;;  %v227_v29 = vld [vmem:[%s2917_s29 + $0x21] sm:$0xff]  ;;  %v2964_v32 = vpack.c.bf16 %v251_v27, %v250_v26  ;;  %v228_v40 = vld [vmem:[%s2917_s29 + $0x31] sm:$0xff]  ;;  %v229_v41 = vld [vmem:[%s2917_s29 + $0x39] sm:$0xff]  ;;  %v2985_v44 = vpack.c.bf16 %v253_v39, %v252_v38 }
  0x19   : > { %931 = vmatpush.bf16.msrb.mxu3 %v2829_v19  ;;  %1165 = vmatpush.bf16.msrb.mxu0 %v2831_v21  ;;  %v257_v33 = vpack.c.bf16 %v227_v29, %v226_v28  ;;  %v2987_v45 = vpack.c.bf16 %v229_v41, %v228_v40  ;;  %v238_v50 = vld [vmem:[%s2917_s29 + $0xa9] sm:$0xff]  ;;  %v239_v51 = vld [vmem:[%s2917_s29 + $0xb1] sm:$0xff]  ;;  %v172_v62 = vld [vmem:[%s2917_s29] sm:$0xff] }
  0x1a   : > { %v246_v52 = vld [vmem:[%s2917_s29 + $0x109] sm:$0xff]  ;;  %v247_v53 = vld [vmem:[%s2917_s29 + $0x111] sm:$0xff]  ;;  %v3017_v58 = vpack.c.bf16 %v239_v51, %v238_v50  ;;  %v2461_v3 = vld [vmem:[%s2917_s29 + $0x20] sm:$0xff] }
  0x1b   : > { %v254_v54 = vld [vmem:[%s2917_s29 + $0x169] sm:$0xff]  ;;  %v255_v55 = vld [vmem:[%s2917_s29 + $0x171] sm:$0xff]  ;;  %v3019_v59 = vpack.c.bf16 %v247_v53, %v246_v52  ;;  %v578_v7 = vld [vmem:[%s2917_s29 + $0x1a] sm:$0xff] }
  0x1c   : > { %1633 = vmatpush.bf16.msra.mxu2 %v2836_v46  ;;  %1398 = vmatpush.bf16.msra.mxu1 %v2834_v48  ;;  %v230_v56 = vld [vmem:[%s2917_s29 + $0x49] sm:$0xff]  ;;  %v231_v57 = vld [vmem:[%s2917_s29 + $0x51] sm:$0xff]  ;;  %v3021_v60 = vpack.c.bf16 %v255_v55, %v254_v54  ;;  %v581_v17 = vld [vmem:[%s2917_s29 + $0x3a] sm:$0xff] }
  0x1d   : > { %1867 = vmatpush.bf16.msra.mxu3 %v2838_v47  ;;  %2101 = vmatpush.bf16.msra.mxu0 %v2840_v49  ;;  %v3023_v61 = vpack.c.bf16 %v231_v57, %v230_v56  ;;  %v173_v63 = vld [vmem:[%s2917_s29 + $0x8] sm:$0xff]  ;;  %v2460_v2 = vld [vmem:[%s2917_s29 + $0x18] sm:$0xff]  ;;  %v2462_v10 = vld [vmem:[%s2917_s29 + $0x30] sm:$0xff] }
  0x1e   : > { %v576_v0 = vld [vmem:[%s2917_s29 + $0x2] sm:$0xff]  ;;  %v577_v1 = vld [vmem:[%s2917_s29 + $0xa] sm:$0xff]  ;;  %v204_v4 = vpack.c.bf16 %v173_v63, %v172_v62  ;;  %v843_v6 = vpack.c.bf16 %v2461_v3, %v2460_v2  ;;  %v2463_v11 = vld [vmem:[%s2917_s29 + $0x38] sm:$0xff] }
  0x1f   : > { %v608_v5 = vpack.c.bf16 %v577_v1, %v576_v0  ;;  %v579_v8 = vld [vmem:[%s2917_s29 + $0x22] sm:$0xff]  ;;  %v3049_v15 = vpack.c.bf16 %v2463_v11, %v2462_v10  ;;  %v580_v16 = vld [vmem:[%s2917_s29 + $0x32] sm:$0xff]  ;;  %v582_v22 = vld [vmem:[%s2917_s29 + $0x4a] sm:$0xff] }
  0x20   : > { %v3047_v12 = vpack.c.bf16 %v579_v8, %v578_v7  ;;  %v2464_v18 = vld [vmem:[%s2917_s29 + $0x48] sm:$0xff]  ;;  %v2465_v19 = vld [vmem:[%s2917_s29 + $0x50] sm:$0xff]  ;;  %v3062_v20 = vpack.c.bf16 %v581_v17, %v580_v16  ;;  %v2466_v24 = vld [vmem:[%s2917_s29 + $0x60] sm:$0xff] }
  0x21   : > { %v3064_v21 = vpack.c.bf16 %v2465_v19, %v2464_v18  ;;  %v583_v23 = vld [vmem:[%s2917_s29 + $0x52] sm:$0xff]  ;;  %v2467_v25 = vld [vmem:[%s2917_s29 + $0x68] sm:$0xff]  ;;  %v2469_v34 = vld [vmem:[%s2917_s29 + $0x80] sm:$0xff] }
  0x22   : > { %v3078_v26 = vpack.c.bf16 %v583_v23, %v582_v22  ;;  %v3080_v27 = vpack.c.bf16 %v2467_v25, %v2466_v24  ;;  %v584_v28 = vld [vmem:[%s2917_s29 + $0x62] sm:$0xff]  ;;  %v585_v29 = vld [vmem:[%s2917_s29 + $0x6a] sm:$0xff]  ;;  %v586_v46 = vld [vmem:[%s2917_s29 + $0x7a] sm:$0xff] }
  0x23   : > { %v3096_v36 = vpack.c.bf16 %v585_v29, %v584_v28  ;;  %v587_v47 = vld [vmem:[%s2917_s29 + $0x82] sm:$0xff]  ;;  %v2470_v48 = vld [vmem:[%s2917_s29 + $0x90] sm:$0xff]  ;;  %v2471_v49 = vld [vmem:[%s2917_s29 + $0x98] sm:$0xff] }
  0x24   : > { %v3128_v52 = vpack.c.bf16 %v587_v47, %v586_v46  ;;  %v3130_v53 = vpack.c.bf16 %v2471_v49, %v2470_v48  ;;  %v588_v63 = vld [vmem:[%s2917_s29 + $0x92] sm:$0xff]  ;;  %v589_v0 = vld [vmem:[%s2917_s29 + $0x9a] sm:$0xff]  ;;  %v2472_v1 = vld [vmem:[%s2917_s29 + $0xa8] sm:$0xff] }
  0x25   : > { %v2473_v2 = vld [vmem:[%s2917_s29 + $0xb0] sm:$0xff]  ;;  %v2835_v8 = vld [vmem:[%s3744_s1 + $0x60] sm:$0xff]  ;;  %v2475_v25 = vld [vmem:[%s2917_s29 + $0xc8] sm:$0xff] }
  0x26   : > { %2397 = vmatmul.msk.bf16.gmra.mxu1 %vm289_vm0, %v2960_v30  ;;  %2401 = vmatmul.msk.bf16.gmra.mxu2 %vm289_vm0, %v2962_v31  ;;  %v2837_v10 = vld [vmem:[%s3744_s1 + $0x70] sm:$0xff]  ;;  %v2474_v24 = vld [vmem:[%s2917_s29 + $0xc0] sm:$0xff] }
  0x27   : > { %2405 = vmatmul.msk.bf16.gmra.mxu3 %vm289_vm0, %v2964_v32  ;;  %2393 = vmatmul.msk.bf16.gmra.mxu0 %vm289_vm0, %v257_v33  ;;  %v2833_v19 = vld [vmem:[%s3744_s1 + $0x50] sm:$0xff]  ;;  %v3206_v46 = vpack.c.bf16 %v2475_v25, %v2474_v24 }
  0x28   : > { %1634 = vmatpush.bf16.msra.mxu2 %v2835_v8  ;;  %1868 = vmatpush.bf16.msra.mxu3 %v2837_v10  ;;  %v590_v22 = vld [vmem:[%s2917_s29 + $0xaa] sm:$0xff]  ;;  %v591_v23 = vld [vmem:[%s2917_s29 + $0xb2] sm:$0xff]  ;;  %v2477_v10 = vld [vmem:[%s2917_s29 + $0xe0] sm:$0xff] }
  0x29   : > { %1399 = vmatpush.bf16.msra.mxu1 %v2833_v19  ;;  %3760 = vst [vmem:[#allocation9_spill] sm:$0xff] %v3206_v46  ;;  %v2476_v8 = vld [vmem:[%s2917_s29 + $0xd8] sm:$0xff] }
  0x36   : > { %2398 = vmatmul.msk.bf16.gmra.mxu1 %vm289_vm0, %v2981_v42  ;;  %2402 = vmatmul.msk.bf16.gmra.mxu2 %vm289_vm0, %v2983_v43 }
  0x37   : > { %2406 = vmatmul.msk.bf16.gmra.mxu3 %vm289_vm0, %v2985_v44  ;;  %2394 = vmatmul.msk.bf16.gmra.mxu0 %vm289_vm0, %v2987_v45 }
  0x46   : > { %2399 = vmatmul.msk.bf16.gmra.mxu1 %vm289_vm0, %v3017_v58  ;;  %2403 = vmatmul.msk.bf16.gmra.mxu2 %vm289_vm0, %v3019_v59 }
  0x47   : > { %2407 = vmatmul.msk.bf16.gmra.mxu3 %vm289_vm0, %v3021_v60  ;;  %2395 = vmatmul.msk.bf16.gmra.mxu0 %vm289_vm0, %v3023_v61 }
  0x56   : > { %2416 = vmatmul.msk.bf16.vlgmr.msrb.gmra.mxu1 %vm289_vm0, %v204_v4  ;;  %2444 = vmatmul.msk.bf16.vlgmr.msrb.gmra.mxu2 %vm289_vm0, %v608_v5 }
  0x57   : > { %2504 = vmatmul.msk.bf16.vlgmr.msrb.gmra.mxu3 %vm289_vm0, %v843_v6  ;;  %2564 = vmatmul.msk.bf16.vlgmr.msrb.gmra.mxu0 %vm289_vm0, %v257_v33  ;;  %v2468_v33 = vld [vmem:[%s2917_s29 + $0x78] sm:$0xff] }
  0x58   : > { %v3098_v37 = vpack.c.bf16 %v2469_v34, %v2468_v33  ;;  %v3204_v34 = vpack.c.bf16 %v591_v23, %v590_v22 }
  0x5a   : > { %3759 = vst [vmem:[#allocation8_spill] sm:$0xff] %v3204_v34 }
  0x66   : > { %2417 = vmatmul.msk.bf16.gmra.mxu1 %vm289_vm0, %v843_v6  ;;  %2445 = vmatmul.msk.bf16.gmra.mxu2 %vm289_vm0, %v3047_v12  ;;  %v3160_v6 = vpack.c.bf16 %v589_v0, %v588_v63 }
  0x67   : > { %2505 = vmatmul.msk.bf16.gmra.mxu3 %vm289_vm0, %v3049_v15  ;;  %2565 = vmatmul.msk.bf16.gmra.mxu0 %vm289_vm0, %v2987_v45 }
  0x76   : > { %2418 = vmatmul.msk.bf16.gmra.mxu1 %vm289_vm0, %v3049_v15  ;;  %2446 = vmatmul.msk.bf16.gmra.mxu2 %vm289_vm0, %v3062_v20 }
  0x77   : > { %2506 = vmatmul.msk.bf16.gmra.mxu3 %vm289_vm0, %v3064_v21  ;;  %2566 = vmatmul.msk.bf16.gmra.mxu0 %vm289_vm0, %v3023_v61 }
  0x86   : > { %2419 = vmatmul.msk.bf16.gmra.mxu1 %vm289_vm0, %v3064_v21  ;;  %2447 = vmatmul.msk.bf16.gmra.mxu2 %vm289_vm0, %v3078_v26 }
  0x87   : > { %2507 = vmatmul.msk.bf16.gmra.mxu3 %vm289_vm0, %v3080_v27  ;;  %2567 = vmatmul.msk.bf16.gmra.mxu0 %vm289_vm0, %v2922_v9 }
  0x93   : > { %v3094_v35 = vpop.f32.mrf.mxu1 }
  0x94   : > { %v3100_v38 = vpop.f32.mrf.mxu0 }
  0x96   : > { %2420 = vmatmul.msk.bf16.gmra.mxu1 %vm289_vm0, %v3080_v27  ;;  %2448 = vmatmul.msk.bf16.gmra.mxu2 %vm289_vm0, %v3096_v36 }
  0x97   : > { %2508 = vmatmul.msk.bf16.gmra.mxu3 %vm289_vm0, %v3098_v37  ;;  %2568 = vmatmul.msk.bf16.gmra.mxu0 %vm289_vm0, %v2960_v30 }
  0x99   : > { %v3110_v9 = vpop.f32.mrf.mxu2 }
  0x9a   : > { %v3112_v39 = vpop.f32.mrf.mxu3 }
  0x9b   : > { %v3114_v40 = vpop.f32.mrf.mxu1 }
  0x9c   : > { %v3116_v41 = vpop.f32.mrf.mxu0 }
  0xa1   : > { %v3122_v50 = vpop.f32.mrf.mxu2 }
  0xa2   : > { %v3124_v51 = vpop.f32.mrf.mxu3 }
  0xa3   : > { %3753 = vst [vmem:[#allocation2_spill] sm:$0xff] %v3124_v51  ;;  %v3126_v30 = vpop.f32.mrf.mxu1 }
  0xa4   : > { %v3132_v54 = vpop.f32.mrf.mxu0 }
  0xa6   : > { %2421 = vmatmul.msk.bf16.gmra.mxu1 %vm289_vm0, %v3098_v37  ;;  %2449 = vmatmul.msk.bf16.gmra.mxu2 %vm289_vm0, %v3128_v52 }
  0xa7   : > { %2509 = vmatmul.msk.bf16.gmra.mxu3 %vm289_vm0, %v3130_v53  ;;  %2569 = vmatmul.msk.bf16.gmra.mxu0 %vm289_vm0, %v2981_v42  ;;  %v3162_v42 = vpack.c.bf16 %v2473_v2, %v2472_v1  ;;  %v592_v1 = vld [vmem:[%s2917_s29 + $0xc2] sm:$0xff]  ;;  %v593_v2 = vld [vmem:[%s2917_s29 + $0xca] sm:$0xff] }
  0xa8   : > { %v3234_v23 = vpack.c.bf16 %v593_v2, %v592_v1 }
  0xa9   : > { %v3142_v55 = vpop.f32.mrf.mxu2  ;;  %3756 = vst [vmem:[#allocation5_spill] sm:$0xff] %v3162_v42 }
  0xaa   : > { %v3144_v56 = vpop.f32.mrf.mxu3  ;;  %3763 = vst [vmem:[#allocation12_spill] sm:$0xff] %v3234_v23 }
  0xab   : > { %3754 = vst [vmem:[#allocation3_spill] sm:$0xff] %v3144_v56  ;;  %v3146_v57 = vpop.f32.mrf.mxu1 }
  0xac   : > { %v3148_v62 = vpop.f32.mrf.mxu0 }
  0xb1   : > { %v3154_v3 = vpop.f32.mrf.mxu2 }
  0xb2   : > { %v3156_v4 = vpop.f32.mrf.mxu3 }
  0xb3   : > { %3755 = vst [vmem:[#allocation4_spill] sm:$0xff] %v3156_v4  ;;  %v3158_v5 = vpop.f32.mrf.mxu1 }
  0xb4   : > { %v3164_v7 = vpop.f32.mrf.mxu0 }
  0xb6   : > { %2422 = vmatmul.msk.bf16.gmra.mxu1 %vm289_vm0, %v3130_v53  ;;  %2450 = vmatmul.msk.bf16.gmra.mxu2 %vm289_vm0, %v3160_v6 }
  0xb7   : > { %2510 = vmatmul.msk.bf16.gmra.mxu3 %vm289_vm0, %v3162_v42  ;;  %2570 = vmatmul.msk.bf16.gmra.mxu0 %vm289_vm0, %v3017_v58  ;;  %v2839_v58 = vld [vmem:[%s3744_s1 + $0x80] sm:$0xff] }
  0xb8   : > { %2102 = vmatpush.bf16.msra.mxu0 %v2839_v58 }
  0xb9   : > { %v3180_v11 = vpop.f32.mrf.mxu2 }
  0xba   : > { %v3182_v16 = vpop.f32.mrf.mxu3 }
  0xbb   : > { %3757 = vst [vmem:[#allocation6_spill] sm:$0xff] %v3182_v16  ;;  %v3184_v17 = vpop.f32.mrf.mxu1  ;;  %v595_v16 = vld [vmem:[%s2917_s29 + $0xe2] sm:$0xff] }
  0xbc   : > { %v3186_v18 = vpop.f32.mrf.mxu0 }
  0xc1   : > { %v3198_v28 = vpop.f32.mrf.mxu2 }
  0xc2   : > { %v3200_v29 = vpop.f32.mrf.mxu3 }
  0xc3   : > { %3758 = vst [vmem:[#allocation7_spill] sm:$0xff] %v3200_v29  ;;  %v3202_v33 = vpop.f32.mrf.mxu1 }
  0xc4   : > { %v3208_v47 = vpop.f32.mrf.mxu0 }
  0xc6   : > { %2423 = vmatmul.msk.bf16.gmra.mxu1 %vm289_vm0, %v3162_v42  ;;  %2451 = vmatmul.msk.bf16.gmra.mxu2 %vm289_vm0, %v3204_v34 }
  0xc7   : > { %2511 = vmatmul.msk.bf16.gmra.mxu3 %vm289_vm0, %v3206_v46  ;;  %2571 = vmatmul.msk.bf16.gmra.mxu0 %vm289_vm0, %v2927_v13  ;;  %v3236_v13 = vpack.c.bf16 %v2477_v10, %v2476_v8 }
  0xc9   : > { %v3218_v48 = vpop.f32.mrf.mxu2 }
  0xca   : > { %v3220_v49 = vpop.f32.mrf.mxu3 }
  0xcb   : > { %3761 = vst [vmem:[#allocation10_spill] sm:$0xff] %v3220_v49  ;;  %v3222_v63 = vpop.f32.mrf.mxu1  ;;  %v594_v49 = vld [vmem:[%s2917_s29 + $0xda] sm:$0xff] }
  0xcc   : > { %v3224_v0 = vpop.f32.mrf.mxu0  ;;  %v3254_v51 = vpack.c.bf16 %v595_v16, %v594_v49 }
  0xd1   : > { %v3230_v19 = vpop.f32.mrf.mxu2 }
  0xd2   : > { %v3232_v58 = vpop.f32.mrf.mxu3 }
  0xd3   : > { %3762 = vst [vmem:[#allocation11_spill] sm:$0xff] %v3232_v58  ;;  %v496_v22 = vpop.f32.mrf.mxu1 }
  0xd4   : > { %v497_v24 = vadd.f32 %v496_v22, %v3100_v38  ;;  %v1167_v25 = vpop.f32.mrf.mxu0 }
  0xd6   : > { %2424 = vmatmul.msk.bf16.gmra.mxu1 %vm289_vm0, %v3206_v46  ;;  %2452 = vmatmul.msk.bf16.gmra.mxu2 %vm289_vm0, %v3234_v23  ;;  %v2478_v46 = vld [vmem:[%s2917_s29 + $0xf0] sm:$0xff]  ;;  %v2479_v23 = vld [vmem:[%s2917_s29 + $0xf8] sm:$0xff] }
  0xd7   : > { %2512 = vmatmul.msk.bf16.gmra.mxu3 %vm289_vm0, %v3236_v13  ;;  %2572 = vmatmul.msk.bf16.gmra.mxu0 %vm289_vm0, %v2962_v31  ;;  %v3256_v31 = vpack.c.bf16 %v2479_v23, %v2478_v46  ;;  %v596_v23 = vld [vmem:[%s2917_s29 + $0xf2] sm:$0xff] }
  0xd9   : > { %v698_v1 = vpop.f32.mrf.mxu2 }
  0xda   : > { %v933_v2 = vpop.f32.mrf.mxu3  ;;  %v778_v8 = vadd.f32 %v698_v1, %v497_v24 }
  0xdb   : > { %v498_v10 = vpop.f32.mrf.mxu1 }
  0xdc   : > { %v499_v38 = vadd.f32 %v498_v10, %v3116_v41  ;;  %v1013_v22 = vadd.f32 %v933_v2, %v778_v8  ;;  %v1169_v58 = vpop.f32.mrf.mxu0  ;;  %v597_v2 = vld [vmem:[%s2917_s29 + $0xfa] sm:$0xff]  ;;  %v2480_v8 = vld [vmem:[%s2917_s29 + $0x108] sm:$0xff]  ;;  %v2481_v10 = vld [vmem:[%s2917_s29 + $0x110] sm:$0xff] }
  0xde   : > { %v3249_v29 = vadd.f32 %v1167_v25, %v1013_v22 }
  0xe1   : > { %v700_v4 = vpop.f32.mrf.mxu2 }
  0xe2   : > { %v935_v56 = vpop.f32.mrf.mxu3  ;;  %v779_v34 = vadd.f32 %v700_v4, %v499_v38 }
  0xe3   : > { %v501_v42 = vpop.f32.mrf.mxu1 }
  0xe4   : > { %v502_v24 = vadd.f32 %v501_v42, %v3132_v54  ;;  %v1014_v41 = vadd.f32 %v935_v56, %v779_v34  ;;  %v1172_v1 = vpop.f32.mrf.mxu0 }
  0xe6   : > { %2425 = vmatmul.msk.bf16.gmra.mxu1 %vm289_vm0, %v3236_v13  ;;  %2453 = vmatmul.msk.bf16.gmra.mxu2 %vm289_vm0, %v3254_v51  ;;  %v3265_v4 = vadd.f32 %v1169_v58, %v1014_v41 }
  0xe7   : > { %2513 = vmatmul.msk.bf16.gmra.mxu3 %vm289_vm0, %v3256_v31  ;;  %2573 = vmatmul.msk.bf16.gmra.mxu0 %vm289_vm0, %v2983_v43  ;;  %v3278_v43 = vpack.c.bf16 %v2481_v10, %v2480_v8  ;;  %v599_v10 = vld [vmem:[%s2917_s29 + $0x112] sm:$0xff] }
  0xe8   : > { %3764 = vst [vmem:[#allocation13_spill] sm:$0xff] %v3265_v4  ;;  %v3276_v4 = vpack.c.bf16 %v597_v2, %v596_v23  ;;  %v598_v2 = vld [vmem:[%s2917_s29 + $0x10a] sm:$0xff] }
  0xe9   : > { %v703_v54 = vpop.f32.mrf.mxu2 }
  0xea   : > { %v938_v56 = vpop.f32.mrf.mxu3  ;;  %v780_v42 = vadd.f32 %v703_v54, %v502_v24 }
  0xeb   : > { %v503_v16 = vpop.f32.mrf.mxu1 }
  0xec   : > { %v504_v34 = vadd.f32 %v503_v16, %v3148_v62  ;;  %v1015_v46 = vadd.f32 %v938_v56, %v780_v42  ;;  %v1174_v49 = vpop.f32.mrf.mxu0 }
  0xee   : > { %v3271_v25 = vadd.f32 %v1172_v1, %v1015_v46 }
  0xf1   : > { %v705_v38 = vpop.f32.mrf.mxu2 }
  0xf2   : > { %v940_v58 = vpop.f32.mrf.mxu3  ;;  %v781_v22 = vadd.f32 %v705_v38, %v504_v34  ;;  %v2482_v38 = vld [vmem:[%s2917_s29 + $0x120] sm:$0xff] }
  0xf3   : > { %v506_v41 = vpop.f32.mrf.mxu1 }
  0xf4   : > { %v507_v24 = vadd.f32 %v506_v41, %v3164_v7  ;;  %v1016_v62 = vadd.f32 %v940_v58, %v781_v22  ;;  %v1177_v54 = vpop.f32.mrf.mxu0  ;;  %v2483_v58 = vld [vmem:[%s2917_s29 + $0x128] sm:$0xff] }
  0xf6   : > { %2426 = vmatmul.msk.bf16.gmra.mxu1 %vm289_vm0, %v3256_v31  ;;  %2454 = vmatmul.msk.bf16.gmra.mxu2 %vm289_vm0, %v3276_v4  ;;  %v3287_v1 = vadd.f32 %v1174_v49, %v1016_v62 }
  0xf7   : > { %2514 = vmatmul.msk.bf16.gmra.mxu3 %vm289_vm0, %v3278_v43  ;;  %2574 = vmatmul.msk.bf16.gmra.mxu0 %vm289_vm0, %v3019_v59  ;;  %v3300_v59 = vpack.c.bf16 %v2483_v58, %v2482_v38  ;;  %v601_v58 = vld [vmem:[%s2917_s29 + $0x12a] sm:$0xff] }
  0xf8   : > { %3765 = vst [vmem:[#allocation14_spill] sm:$0xff] %v3287_v1  ;;  %v3298_v1 = vpack.c.bf16 %v599_v10, %v598_v2  ;;  %v600_v10 = vld [vmem:[%s2917_s29 + $0x122] sm:$0xff] }
  0xf9   : > { %v708_v7 = vpop.f32.mrf.mxu2 }
  0xfa   : > { %v943_v56 = vpop.f32.mrf.mxu3  ;;  %v782_v42 = vadd.f32 %v708_v7, %v507_v24 }
  0xfb   : > { %v508_v16 = vpop.f32.mrf.mxu1 }
  0xfc   : > { %v509_v34 = vadd.f32 %v508_v16, %v3186_v18  ;;  %v1017_v46 = vadd.f32 %v943_v56, %v782_v42  ;;  %v1179_v23 = vpop.f32.mrf.mxu0 }
  0xfe   : > { %v3293_v8 = vadd.f32 %v1177_v54, %v1017_v46 }
 0x101   : > { %v710_v22 = vpop.f32.mrf.mxu2 }
 0x102   : > { %v945_v49 = vpop.f32.mrf.mxu3  ;;  %v783_v41 = vadd.f32 %v710_v22, %v509_v34  ;;  %v2484_v22 = vld [vmem:[%s2917_s29 + $0x138] sm:$0xff] }
 0x103   : > { %v511_v62 = vpop.f32.mrf.mxu1 }
 0x104   : > { %v512_v24 = vadd.f32 %v511_v62, %v3208_v47  ;;  %v1018_v18 = vadd.f32 %v945_v49, %v783_v41  ;;  %v1182_v7 = vpop.f32.mrf.mxu0  ;;  %v2485_v49 = vld [vmem:[%s2917_s29 + $0x140] sm:$0xff] }
 0x106   : > { %2427 = vmatmul.msk.bf16.gmra.mxu1 %vm289_vm0, %v3278_v43  ;;  %2455 = vmatmul.msk.bf16.gmra.mxu2 %vm289_vm0, %v3298_v1  ;;  %v3309_v54 = vadd.f32 %v1179_v23, %v1018_v18 }
 0x107   : > { %2515 = vmatmul.msk.bf16.gmra.mxu3 %vm289_vm0, %v3300_v59  ;;  %2575 = vmatmul.msk.bf16.gmra.mxu0 %vm289_vm0, %v2929_v14  ;;  %v3322_v14 = vpack.c.bf16 %v2485_v49, %v2484_v22  ;;  %v603_v49 = vld [vmem:[%s2917_s29 + $0x142] sm:$0xff] }
 0x108   : > { %3766 = vst [vmem:[#allocation15_spill] sm:$0xff] %v3309_v54  ;;  %v3320_v54 = vpack.c.bf16 %v601_v58, %v600_v10  ;;  %v602_v58 = vld [vmem:[%s2917_s29 + $0x13a] sm:$0xff] }
 0x109   : > { %v713_v47 = vpop.f32.mrf.mxu2 }
 0x10a   : > { %v948_v56 = vpop.f32.mrf.mxu3  ;;  %v784_v42 = vadd.f32 %v713_v47, %v512_v24 }
 0x10b   : > { %v513_v16 = vpop.f32.mrf.mxu1 }
 0x10c   : > { %v514_v34 = vadd.f32 %v513_v16, %v3224_v0  ;;  %v1019_v46 = vadd.f32 %v948_v56, %v784_v42  ;;  %v1184_v2 = vpop.f32.mrf.mxu0 }
 0x10e   : > { %v3315_v38 = vadd.f32 %v1182_v7, %v1019_v46 }
 0x110   : > { %3767 = vst [vmem:[#allocation16_spill] sm:$0xff] %v3315_v38  ;;  %v3342_v38 = vpack.c.bf16 %v603_v49, %v602_v58  ;;  %v604_v58 = vld [vmem:[%s2917_s29 + $0x152] sm:$0xff] }
 0x111   : > { %v715_v41 = vpop.f32.mrf.mxu2 }
 0x112   : > { %v950_v23 = vpop.f32.mrf.mxu3  ;;  %v785_v62 = vadd.f32 %v715_v41, %v514_v34  ;;  %v2486_v41 = vld [vmem:[%s2917_s29 + $0x150] sm:$0xff] }
 0x113   : > { %v516_v18 = vpop.f32.mrf.mxu1 }
 0x114   : > { %v1020_v24 = vadd.f32 %v950_v23, %v785_v62  ;;  %v1187_v0 = vpop.f32.mrf.mxu0  ;;  %v517_v47 = vadd.f32 %v516_v18, %v3094_v35  ;;  %v2487_v23 = vld [vmem:[%s2917_s29 + $0x158] sm:$0xff] }
 0x115   : > { %v3344_v35 = vpack.c.bf16 %v2487_v23, %v2486_v41  ;;  %v605_v41 = vld [vmem:[%s2917_s29 + $0x15a] sm:$0xff]  ;;  %v2488_v23 = vld [vmem:[%s2917_s29 + $0x168] sm:$0xff] }
 0x116   : > { %2428 = vmatmul.msk.bf16.gmra.mxu1 %vm289_vm0, %v3300_v59  ;;  %2456 = vmatmul.msk.bf16.gmra.mxu2 %vm289_vm0, %v3320_v54  ;;  %v3330_v7 = vadd.f32 %v1184_v2, %v1020_v24 }
 0x117   : > { %2516 = vmatmul.msk.bf16.gmra.mxu3 %vm289_vm0, %v3322_v14  ;;  %2576 = vmatmul.msk.bf16.gmra.mxu0 %vm289_vm0, %v2964_v32 }
 0x118   : > { %3768 = vst [vmem:[#allocation17_spill] sm:$0xff] %v3330_v7 }
 0x119   : > { %v718_v56 = vpop.f32.mrf.mxu2 }
 0x11a   : > { %v953_v42 = vpop.f32.mrf.mxu3  ;;  %v786_v16 = vadd.f32 %v718_v56, %v517_v47 }
 0x11b   : > { %v518_v34 = vpop.f32.mrf.mxu1 }
 0x11c   : > { %v1021_v46 = vadd.f32 %v953_v42, %v786_v16  ;;  %v1189_v10 = vpop.f32.mrf.mxu0  ;;  %v519_v2 = vadd.f32 %v518_v34, %v3114_v40 }
 0x11e   : > { %v3336_v22 = vadd.f32 %v1187_v0, %v1021_v46 }
 0x121   : > { %v720_v62 = vpop.f32.mrf.mxu2 }
 0x122   : > { %v955_v24 = vpop.f32.mrf.mxu3  ;;  %v787_v7 = vadd.f32 %v720_v62, %v519_v2  ;;  %v2489_v2 = vld [vmem:[%s2917_s29 + $0x170] sm:$0xff] }
 0x123   : > { %v521_v32 = vpop.f32.mrf.mxu1 }
 0x124   : > { %v1022_v18 = vadd.f32 %v955_v24, %v787_v7  ;;  %v1192_v47 = vpop.f32.mrf.mxu0  ;;  %v522_v0 = vadd.f32 %v521_v32, %v3126_v30  ;;  %v3366_v30 = vpack.c.bf16 %v2489_v2, %v2488_v23  ;;  %v607_v2 = vld [vmem:[%s2917_s29 + $0x172] sm:$0xff] }
 0x126   : > { %2429 = vmatmul.msk.bf16.gmra.mxu1 %vm289_vm0, %v3322_v14  ;;  %2457 = vmatmul.msk.bf16.gmra.mxu2 %vm289_vm0, %v3342_v38  ;;  %v3352_v40 = vadd.f32 %v1189_v10, %v1022_v18 }
 0x127   : > { %2517 = vmatmul.msk.bf16.gmra.mxu3 %vm289_vm0, %v3344_v35  ;;  %2577 = vmatmul.msk.bf16.gmra.mxu0 %vm289_vm0, %v2985_v44 }
 0x128   : > { %3769 = vst [vmem:[#allocation18_spill] sm:$0xff] %v3352_v40  ;;  %v3364_v40 = vpack.c.bf16 %v605_v41, %v604_v58  ;;  %v606_v41 = vld [vmem:[%s2917_s29 + $0x16a] sm:$0xff] }
 0x129   : > { %v723_v7 = vpop.f32.mrf.mxu2 }
 0x12a   : > { %v958_v56 = vpop.f32.mrf.mxu3  ;;  %v788_v42 = vadd.f32 %v723_v7, %v522_v0 }
 0x12b   : > { %v523_v16 = vpop.f32.mrf.mxu1 }
 0x12c   : > { %v1023_v34 = vadd.f32 %v958_v56, %v788_v42  ;;  %v1194_v46 = vpop.f32.mrf.mxu0  ;;  %v524_v10 = vadd.f32 %v523_v16, %v3146_v57 }
 0x12e   : > { %v3358_v49 = vadd.f32 %v1192_v47, %v1023_v34 }
 0x131   : > { %v725_v62 = vpop.f32.mrf.mxu2 }
 0x132   : > { %v960_v24 = vpop.f32.mrf.mxu3  ;;  %v789_v18 = vadd.f32 %v725_v62, %v524_v10  ;;  %v2490_v10 = vld [vmem:[%s2917_s29 + $0x180] sm:$0xff]  ;;  %v2491_v62 = vld [vmem:[%s2917_s29 + $0x188] sm:$0xff] }
 0x133   : > { %v526_v44 = vpop.f32.mrf.mxu1 }
 0x134   : > { %v1024_v32 = vadd.f32 %v960_v24, %v789_v18  ;;  %v1197_v0 = vpop.f32.mrf.mxu0  ;;  %v527_v47 = vadd.f32 %v526_v44, %v3158_v5  ;;  %v2550_v24 = vld [vmem:[%s2917_s29 + $0x181] sm:$0xff]  ;;  %v2551_v18 = vld [vmem:[%s2917_s29 + $0x189] sm:$0xff]  ;;  %v3388_v44 = vpack.c.bf16 %v607_v2, %v606_v41 }
 0x136   : > { %2430 = vmatmul.msk.bf16.gmra.mxu1 %vm289_vm0, %v3344_v35  ;;  %2458 = vmatmul.msk.bf16.gmra.mxu2 %vm289_vm0, %v3364_v40  ;;  %v3374_v57 = vadd.f32 %v1194_v46, %v1024_v32 }
 0x137   : > { %2518 = vmatmul.msk.bf16.gmra.mxu3 %vm289_vm0, %v3366_v30  ;;  %2578 = vmatmul.msk.bf16.gmra.mxu0 %vm289_vm0, %v3021_v60 }
 0x138   : > { %3770 = vst [vmem:[#allocation19_spill] sm:$0xff] %v3374_v57 }
 0x139   : > { %v728_v7 = vpop.f32.mrf.mxu2 }
 0x13a   : > { %v963_v56 = vpop.f32.mrf.mxu3  ;;  %v790_v42 = vadd.f32 %v728_v7, %v527_v47  ;;  %v3390_v47 = vpack.c.bf16 %v2491_v62, %v2490_v10  ;;  %v3392_v7 = vpack.c.bf16 %v2551_v18, %v2550_v24 }
 0x13b   : > { %v528_v16 = vpop.f32.mrf.mxu1 }
 0x13c   : > { %v1025_v34 = vadd.f32 %v963_v56, %v790_v42  ;;  %v1199_v58 = vpop.f32.mrf.mxu0  ;;  %v529_v46 = vadd.f32 %v528_v16, %v3184_v17 }
 0x13e   : > { %v3380_v23 = vadd.f32 %v1197_v0, %v1025_v34 }
 0x141   : > { %v730_v32 = vpop.f32.mrf.mxu2 }
 0x142   : > { %v965_v60 = vpop.f32.mrf.mxu3  ;;  %v791_v57 = vadd.f32 %v730_v32, %v529_v46 }
 0x143   : > { %v531_v5 = vpop.f32.mrf.mxu1 }
 0x144   : > { %v1026_v56 = vadd.f32 %v965_v60, %v791_v57  ;;  %v1202_v0 = vpop.f32.mrf.mxu0  ;;  %v532_v42 = vadd.f32 %v531_v5, %v3202_v33 }
 0x146   : > { %2431 = vmatmul.msk.bf16.gmra.mxu1 %vm289_vm0, %v3366_v30  ;;  %2459 = vmatmul.msk.bf16.gmra.mxu2 %vm289_vm0, %v3388_v44  ;;  %v3400_v17 = vadd.f32 %v1199_v58, %v1026_v56 }
 0x147   : > { %2519 = vmatmul.msk.bf16.gmra.mxu3 %vm289_vm0, %v3390_v47  ;;  %2579 = vmatmul.msk.bf16.gmra.mxu0 %vm289_vm0, %v3392_v7 }
 0x149   : > { %v733_v16 = vpop.f32.mrf.mxu2 }
 0x14a   : > { %v968_v34 = vpop.f32.mrf.mxu3  ;;  %v792_v57 = vadd.f32 %v733_v16, %v532_v42 }
 0x14b   : > { %v533_v41 = vpop.f32.mrf.mxu1 }
 0x14c   : > { %v1027_v2 = vadd.f32 %v968_v34, %v792_v57  ;;  %v1204_v10 = vpop.f32.mrf.mxu0  ;;  %v534_v46 = vadd.f32 %v533_v41, %v3222_v63 }
 0x14e   : > { %v3405_v62 = vadd.f32 %v1202_v0, %v1027_v2 }
 0x151   : > { %v735_v24 = vpop.f32.mrf.mxu2 }
 0x152   : > { %v970_v18 = vpop.f32.mrf.mxu3  ;;  %v793_v32 = vadd.f32 %v735_v24, %v534_v46 }
 0x153   : > { %v536_v58 = vpop.f32.mrf.mxu1 }
 0x154   : > { %v1028_v60 = vadd.f32 %v970_v18, %v793_v32  ;;  %v1207_v56 = vpop.f32.mrf.mxu0  ;;  %v537_v63 = vadd.f32 %v536_v58, %v3110_v9 }
 0x156   : > { %2624 = vmatmul.msk.bf16.vlgmr.msra.gmra.mxu1 %vm289_vm0, %v3047_v12  ;;  %2684 = vmatmul.msk.bf16.vlgmr.msra.gmra.mxu2 %vm289_vm0, %v3049_v15  ;;  %v3414_v33 = vadd.f32 %v1204_v10, %v1028_v60 }
 0x157   : > { %2744 = vmatmul.msk.bf16.vlgmr.msra.gmra.mxu3 %vm289_vm0, %v2987_v45  ;;  %2804 = vmatmul.msk.bf16.vlgmr.msra.gmra.mxu0 %vm289_vm0, %v3062_v20 }
 0x159   : > { %v738_v5 = vpop.f32.mrf.mxu2 }
 0x15a   : > { %v973_v0 = vpop.f32.mrf.mxu3  ;;  %v794_v42 = vadd.f32 %v738_v5, %v537_v63  ;;  %v2704_v5 = vld [vmem:[%s2917_s29 + $0x61] sm:$0xff] }
 0x15b   : > { %v538_v16 = vpop.f32.mrf.mxu1 }
 0x15c   : > { %v1029_v34 = vadd.f32 %v973_v0, %v794_v42  ;;  %v1209_v57 = vpop.f32.mrf.mxu0  ;;  %v539_v15 = vadd.f32 %v538_v16, %v3122_v50 }
 0x15e   : > { %v3419_v12 = vadd.f32 %v1207_v56, %v1029_v34 }
 0x161   : > { %v740_v41 = vpop.f32.mrf.mxu2 }
 0x162   : > { %v975_v2 = vpop.f32.mrf.mxu3  ;;  %v795_v45 = vadd.f32 %v740_v41, %v539_v15 }
 0x163   : > { %v541_v10 = vpop.f32.mrf.mxu1 }
 0x164   : > { %v1030_v46 = vadd.f32 %v975_v2, %v795_v45  ;;  %v1212_v24 = vpop.f32.mrf.mxu0  ;;  %v542_v50 = vadd.f32 %v541_v10, %v3142_v55 }
 0x166   : > { %2625 = vmatmul.msk.bf16.gmra.mxu1 %vm289_vm0, %v3062_v20  ;;  %2685 = vmatmul.msk.bf16.gmra.mxu2 %vm289_vm0, %v3064_v21  ;;  %v3428_v9 = vadd.f32 %v1209_v57, %v1030_v46  ;;  %v2705_v21 = vld [vmem:[%s2917_s29 + $0x69] sm:$0xff] }
 0x167   : > { %2745 = vmatmul.msk.bf16.gmra.mxu3 %vm289_vm0, %v3023_v61  ;;  %2805 = vmatmul.msk.bf16.gmra.mxu0 %vm289_vm0, %v3078_v26  ;;  %v1782_v57 = vpack.c.bf16 %v2705_v21, %v2704_v5 }
 0x169   : > { %v743_v18 = vpop.f32.mrf.mxu2 }
 0x16a   : > { %v978_v32 = vpop.f32.mrf.mxu3  ;;  %v796_v58 = vadd.f32 %v743_v18, %v542_v50 }
 0x16b   : > { %v543_v60 = vpop.f32.mrf.mxu1 }
 0x16c   : > { %v1031_v56 = vadd.f32 %v978_v32, %v796_v58  ;;  %v1214_v63 = vpop.f32.mrf.mxu0  ;;  %v544_v0 = vadd.f32 %v543_v60, %v3154_v3  ;;  %v2707_v32 = vld [vmem:[%s2917_s29 + $0x81] sm:$0xff] }
 0x16e   : > { %v3433_v20 = vadd.f32 %v1212_v24, %v1031_v56 }
 0x171   : > { %v745_v61 = vpop.f32.mrf.mxu2 }
 0x172   : > { %v980_v42 = vpop.f32.mrf.mxu3  ;;  %v797_v16 = vadd.f32 %v745_v61, %v544_v0 }
 0x173   : > { %v546_v34 = vpop.f32.mrf.mxu1 }
 0x174   : > { %v1032_v15 = vadd.f32 %v980_v42, %v797_v16  ;;  %v1217_v55 = vpop.f32.mrf.mxu0  ;;  %v547_v3 = vadd.f32 %v546_v34, %v3180_v11 }
 0x176   : > { %2626 = vmatmul.msk.bf16.gmra.mxu1 %vm289_vm0, %v3078_v26  ;;  %2686 = vmatmul.msk.bf16.gmra.mxu2 %vm289_vm0, %v3080_v27  ;;  %v3443_v41 = vadd.f32 %v1214_v63, %v1032_v15  ;;  %v2706_v26 = vld [vmem:[%s2917_s29 + $0x79] sm:$0xff] }
 0x177   : > { %2746 = vmatmul.msk.bf16.gmra.mxu3 %vm289_vm0, %v1782_v57  ;;  %2806 = vmatmul.msk.bf16.gmra.mxu0 %vm289_vm0, %v3096_v36  ;;  %v1783_v5 = vpack.c.bf16 %v2707_v32, %v2706_v26 }
 0x179   : > { %v748_v2 = vpop.f32.mrf.mxu2 }
 0x17a   : > { %v983_v45 = vpop.f32.mrf.mxu3  ;;  %v798_v10 = vadd.f32 %v748_v2, %v547_v3  ;;  %v2709_v3 = vld [vmem:[%s2917_s29 + $0x99] sm:$0xff] }
 0x17b   : > { %v548_v46 = vpop.f32.mrf.mxu1 }
 0x17c   : > { %v1033_v24 = vadd.f32 %v983_v45, %v798_v10  ;;  %v1219_v50 = vpop.f32.mrf.mxu0  ;;  %v549_v27 = vadd.f32 %v548_v46, %v3198_v28 }
 0x17e   : > { %v3448_v18 = vadd.f32 %v1217_v55, %v1033_v24 }
 0x181   : > { %v750_v58 = vpop.f32.mrf.mxu2 }
 0x182   : > { %v985_v60 = vpop.f32.mrf.mxu3  ;;  %v799_v56 = vadd.f32 %v750_v58, %v549_v27 }
 0x183   : > { %v551_v63 = vpop.f32.mrf.mxu1 }
 0x184   : > { %v1034_v21 = vadd.f32 %v985_v60, %v799_v56  ;;  %v1222_v11 = vpop.f32.mrf.mxu0  ;;  %v552_v28 = vadd.f32 %v551_v63, %v3218_v48 }
 0x186   : > { %2627 = vmatmul.msk.bf16.gmra.mxu1 %vm289_vm0, %v3096_v36  ;;  %2687 = vmatmul.msk.bf16.gmra.mxu2 %vm289_vm0, %v3098_v37  ;;  %v3458_v0 = vadd.f32 %v1219_v50, %v1034_v21  ;;  %v2708_v36 = vld [vmem:[%s2917_s29 + $0x91] sm:$0xff] }
 0x187   : > { %2747 = vmatmul.msk.bf16.gmra.mxu3 %vm289_vm0, %v1783_v5  ;;  %2807 = vmatmul.msk.bf16.gmra.mxu0 %vm289_vm0, %v3128_v52  ;;  %v1784_v24 = vpack.c.bf16 %v2709_v3, %v2708_v36  ;;  %v2711_v21 = vld [vmem:[%s2917_s29 + $0xb1] sm:$0xff] }
 0x188   : > { %v3773_v3 = vld [vmem:[#allocation8_spill] sm:$0xff] }
 0x189   : > { %v753_v61 = vpop.f32.mrf.mxu2 }
 0x18a   : > { %v988_v42 = vpop.f32.mrf.mxu3  ;;  %v800_v16 = vadd.f32 %v753_v61, %v552_v28 }
 0x18b   : > { %v553_v34 = vpop.f32.mrf.mxu1 }
 0x18c   : > { %v1035_v57 = vadd.f32 %v988_v42, %v800_v16  ;;  %v1224_v15 = vpop.f32.mrf.mxu0  ;;  %v554_v37 = vadd.f32 %v553_v34, %v3230_v19 }
 0x18e   : > { %v3463_v55 = vadd.f32 %v1222_v11, %v1035_v57 }
 0x191   : > { %v755_v2 = vpop.f32.mrf.mxu2 }
 0x192   : > { %v990_v45 = vpop.f32.mrf.mxu3  ;;  %v801_v10 = vadd.f32 %v755_v2, %v554_v37  ;;  %v3774_v37 = vld [vmem:[#allocation3_spill] sm:$0xff] }
 0x193   : > { %v556_v46 = vpop.f32.mrf.mxu1 }
 0x194   : > { %v1036_v50 = vadd.f32 %v990_v45, %v801_v10  ;;  %v1227_v48 = vpop.f32.mrf.mxu0  ;;  %v557_v19 = vadd.f32 %v556_v46, %v3112_v39 }
 0x196   : > { %2628 = vmatmul.msk.bf16.gmra.mxu1 %vm289_vm0, %v3128_v52  ;;  %2688 = vmatmul.msk.bf16.gmra.mxu2 %vm289_vm0, %v3130_v53  ;;  %v3473_v26 = vadd.f32 %v1224_v15, %v1036_v50  ;;  %v2710_v52 = vld [vmem:[%s2917_s29 + $0xa9] sm:$0xff]  ;;  %v3771_v53 = vld [vmem:[#allocation2_spill] sm:$0xff]  ;;  %v3772_v15 = vld [vmem:[#allocation5_spill] sm:$0xff] }
 0x197   : > { %2748 = vmatmul.msk.bf16.gmra.mxu3 %vm289_vm0, %v1784_v24  ;;  %2808 = vmatmul.msk.bf16.gmra.mxu0 %vm289_vm0, %v3160_v6  ;;  %v1785_v34 = vpack.c.bf16 %v2711_v21, %v2710_v52 }
 0x199   : > { %v758_v32 = vpop.f32.mrf.mxu2 }
 0x19a   : > { %v993_v27 = vpop.f32.mrf.mxu3  ;;  %v802_v58 = vadd.f32 %v758_v32, %v557_v19  ;;  %v2713_v32 = vld [vmem:[%s2917_s29 + $0xc9] sm:$0xff] }
 0x19b   : > { %v558_v60 = vpop.f32.mrf.mxu1 }
 0x19c   : > { %v1037_v56 = vadd.f32 %v993_v27, %v802_v58  ;;  %v1229_v63 = vpop.f32.mrf.mxu0  ;;  %v559_v11 = vadd.f32 %v558_v60, %v3771_v53  ;;  %v3775_v27 = vld [vmem:[#allocation4_spill] sm:$0xff] }
 0x19e   : > { %v3478_v5 = vadd.f32 %v1227_v48, %v1037_v56 }
 0x1a1   : > { %v760_v28 = vpop.f32.mrf.mxu2 }
 0x1a2   : > { %v995_v61 = vpop.f32.mrf.mxu3  ;;  %v803_v42 = vadd.f32 %v760_v28, %v559_v11  ;;  %v3776_v28 = vld [vmem:[#allocation9_spill] sm:$0xff] }
 0x1a3   : > { %v561_v16 = vpop.f32.mrf.mxu1 }
 0x1a4   : > { %v1038_v57 = vadd.f32 %v995_v61, %v803_v42  ;;  %v1232_v39 = vpop.f32.mrf.mxu0  ;;  %v562_v2 = vadd.f32 %v561_v16, %v3774_v37  ;;  %v3777_v42 = vld [vmem:[#allocation12_spill] sm:$0xff]  ;;  %v3778_v16 = vld [vmem:[#allocation6_spill] sm:$0xff] }
 0x1a6   : > { %2629 = vmatmul.msk.bf16.gmra.mxu1 %vm289_vm0, %v3160_v6  ;;  %2689 = vmatmul.msk.bf16.gmra.mxu2 %vm289_vm0, %v3772_v15  ;;  %v3488_v36 = vadd.f32 %v1229_v63, %v1038_v57  ;;  %v2712_v6 = vld [vmem:[%s2917_s29 + $0xc1] sm:$0xff] }
 0x1a7   : > { %2749 = vmatmul.msk.bf16.gmra.mxu3 %vm289_vm0, %v1785_v34  ;;  %2809 = vmatmul.msk.bf16.gmra.mxu0 %vm289_vm0, %v3773_v3  ;;  %v1786_v21 = vpack.c.bf16 %v2713_v32, %v2712_v6 }
 0x1a9   : > { %v763_v45 = vpop.f32.mrf.mxu2 }
 0x1aa   : > { %v998_v10 = vpop.f32.mrf.mxu3  ;;  %v804_v46 = vadd.f32 %v763_v45, %v562_v2 }
 0x1ab   : > { %v563_v24 = vpop.f32.mrf.mxu1 }
 0x1ac   : > { %v1039_v50 = vadd.f32 %v998_v10, %v804_v46  ;;  %v1234_v48 = vpop.f32.mrf.mxu0  ;;  %v564_v58 = vadd.f32 %v563_v24, %v3775_v27  ;;  %v2715_v46 = vld [vmem:[%s2917_s29 + $0xe1] sm:$0xff] }
 0x1ad   : > { %v3779_v24 = vld [vmem:[#allocation7_spill] sm:$0xff] }
 0x1ae   : > { %v3493_v19 = vadd.f32 %v1232_v39, %v1039_v50 }
 0x1b1   : > { %v765_v60 = vpop.f32.mrf.mxu2 }
 0x1b2   : > { %v1000_v56 = vpop.f32.mrf.mxu3  ;;  %v805_v63 = vadd.f32 %v765_v60, %v564_v58 }
 0x1b3   : > { %v566_v52 = vpop.f32.mrf.mxu1 }
 0x1b4   : > { %v1040_v53 = vadd.f32 %v1000_v56, %v805_v63  ;;  %v1237_v11 = vpop.f32.mrf.mxu0  ;;  %v567_v34 = vadd.f32 %v566_v52, %v3778_v16  ;;  %v3780_v52 = vld [vmem:[#allocation10_spill] sm:$0xff] }
 0x1b6   : > { %2630 = vmatmul.msk.bf16.gmra.mxu1 %vm289_vm0, %v3773_v3  ;;  %2690 = vmatmul.msk.bf16.gmra.mxu2 %vm289_vm0, %v3776_v28  ;;  %v3503_v61 = vadd.f32 %v1234_v48, %v1040_v53  ;;  %v2714_v3 = vld [vmem:[%s2917_s29 + $0xd9] sm:$0xff] }
 0x1b7   : > { %2750 = vmatmul.msk.bf16.gmra.mxu3 %vm289_vm0, %v1786_v21  ;;  %2810 = vmatmul.msk.bf16.gmra.mxu0 %vm289_vm0, %v3777_v42  ;;  %v1787_v58 = vpack.c.bf16 %v2715_v46, %v2714_v3 }
 0x1b9   : > { %v768_v57 = vpop.f32.mrf.mxu2 }
 0x1ba   : > { %v1003_v39 = vpop.f32.mrf.mxu3  ;;  %v806_v15 = vadd.f32 %v768_v57, %v567_v34 }
 0x1bb   : > { %v568_v37 = vpop.f32.mrf.mxu1 }
 0x1bc   : > { %v1041_v2 = vadd.f32 %v1003_v39, %v806_v15  ;;  %v1239_v45 = vpop.f32.mrf.mxu0  ;;  %v569_v50 = vadd.f32 %v568_v37, %v3779_v24  ;;  %v2717_v15 = vld [vmem:[%s2917_s29 + $0xf9] sm:$0xff] }
 0x1be   : > { %v3508_v10 = vadd.f32 %v1237_v11, %v1041_v2 }
 0x1c1   : > { %v770_v6 = vpop.f32.mrf.mxu2 }
 0x1c2   : > { %v1005_v48 = vpop.f32.mrf.mxu3  ;;  %v807_v32 = vadd.f32 %v770_v6, %v569_v50 }
 0x1c3   : > { %v571_v27 = vpop.f32.mrf.mxu1 }
 0x1c4   : > { %v1042_v60 = vadd.f32 %v1005_v48, %v807_v32  ;;  %v1242_v56 = vpop.f32.mrf.mxu0  ;;  %v572_v21 = vadd.f32 %v571_v27, %v3780_v52 }
 0x1c6   : > { %2631 = vmatmul.msk.bf16.gmra.mxu1 %vm289_vm0, %v3777_v42  ;;  %2691 = vmatmul.msk.bf16.gmra.mxu2 %vm289_vm0, %v3236_v13  ;;  %v3518_v63 = vadd.f32 %v1239_v45, %v1042_v60  ;;  %v2716_v42 = vld [vmem:[%s2917_s29 + $0xf1] sm:$0xff]  ;;  %v3781_v13 = vld [vmem:[#allocation11_spill] sm:$0xff] }
 0x1c7   : > { %2751 = vmatmul.msk.bf16.gmra.mxu3 %vm289_vm0, %v1787_v58  ;;  %2811 = vmatmul.msk.bf16.gmra.mxu0 %vm289_vm0, %v3254_v51  ;;  %v1788_v24 = vpack.c.bf16 %v2717_v15, %v2716_v42 }
 0x1c9   : > { %v773_v53 = vpop.f32.mrf.mxu2 }
 0x1ca   : > { %v1008_v11 = vpop.f32.mrf.mxu3  ;;  %v808_v28 = vadd.f32 %v773_v53, %v572_v21  ;;  %v2718_v53 = vld [vmem:[%s2917_s29 + $0x109] sm:$0xff] }
 0x1cb   : > { %v573_v16 = vpop.f32.mrf.mxu1 }
 0x1cc   : > { %v1043_v34 = vadd.f32 %v1008_v11, %v808_v28  ;;  %v1244_v57 = vpop.f32.mrf.mxu0  ;;  %v574_v37 = vadd.f32 %v573_v16, %v3781_v13  ;;  %v2719_v11 = vld [vmem:[%s2917_s29 + $0x111] sm:$0xff] }
 0x1cd   : > { %v3782_v16 = vld [vmem:[#allocation13_spill] sm:$0xff] }
 0x1ce   : > { %v3523_v39 = vadd.f32 %v1242_v56, %v1043_v34 }
 0x1d1   : > { %v775_v2 = vpop.f32.mrf.mxu2 }
 0x1d2   : > { %v1010_v45 = vpop.f32.mrf.mxu3  ;;  %v809_v3 = vadd.f32 %v775_v2, %v574_v37  ;;  %v1789_v37 = vpack.c.bf16 %v2719_v11, %v2718_v53 }
 0x1d3   : > { %v1401_v46 = vpop.f32.mrf.mxu1 }
 0x1d4   : > { %v1044_v50 = vadd.f32 %v1010_v45, %v809_v3  ;;  %v2104_v6 = vpop.f32.mrf.mxu0  ;;  %v1481_v32 = vadd.f32 %v1401_v46, %v3249_v29 }
 0x1d6   : > { %2632 = vmatmul.msk.bf16.gmra.mxu1 %vm289_vm0, %v3254_v51  ;;  %2692 = vmatmul.msk.bf16.gmra.mxu2 %vm289_vm0, %v3256_v31  ;;  %v3533_v48 = vadd.f32 %v1244_v57, %v1044_v50  ;;  %v3541_v51 = vld [vmem:[%s3745_s2] ss:$0 sm:$0xff] }
 0x1d7   : > { %2752 = vmatmul.msk.bf16.gmra.mxu3 %vm289_vm0, %v1788_v24  ;;  %2812 = vmatmul.msk.bf16.gmra.mxu0 %vm289_vm0, %v3276_v4 }
 0x1d9   : > { %v1636_v27 = vpop.f32.mrf.mxu2 }
 0x1da   : > { %v1870_v58 = vpop.f32.mrf.mxu3  ;;  %v1716_v60 = vadd.f32 %v1636_v27, %v1481_v32 }
 0x1db   : > { %v1403_v56 = vpop.f32.mrf.mxu1 }
 0x1dc   : > { %v1950_v52 = vadd.f32 %v1870_v58, %v1716_v60  ;;  %v2106_v31 = vpop.f32.mrf.mxu0  ;;  %v1482_v34 = vadd.f32 %v1403_v56, %v3782_v16  ;;  %v2720_v56 = vld [vmem:[%s2917_s29 + $0x121] sm:$0xff] }
 0x1de   : > { %v2184_v21 = vadd.f32 %v2104_v6, %v1950_v52  ;;  %v2721_v52 = vld [vmem:[%s2917_s29 + $0x129] sm:$0xff] }
 0x1e0   : > { %v2220_v28 = vadd.f32 %v3541_v51, %v2184_v21  ;;  %v3783_v21 = vld [vmem:[#allocation14_spill] sm:$0xff] }
 0x1e1   : > { %v1638_v29 = vpop.f32.mrf.mxu2 }
 0x1e2   : > { %v1872_v57 = vpop.f32.mrf.mxu3  ;;  %v2252_v42 = vmax.f32 %v2220_v28, 0.0  ;;  %v1717_v15 = vadd.f32 %v1638_v29, %v1482_v34  ;;  %v1790_v29 = vpack.c.bf16 %v2721_v52, %v2720_v56 }
 0x1e3   : > { %v1406_v13 = vpop.f32.mrf.mxu1 }
 0x1e4   : > { %2285 = vst.msk [vmem:[%s3551_s8] sm:$0xff] %vm2284_vm1, %v2252_v42  ;;  %v1951_v2 = vadd.f32 %v1872_v57, %v1717_v15  ;;  %v2109_v45 = vpop.f32.mrf.mxu0  ;;  %v1483_v24 = vadd.f32 %v1406_v13, %v3271_v25 }
 0x1e6   : > { %2633 = vmatmul.msk.bf16.gmra.mxu1 %vm289_vm0, %v3276_v4  ;;  %v2185_v3 = vadd.f32 %v2106_v31, %v1951_v2  ;;  %2693 = vmatmul.msk.bf16.gmra.mxu2 %vm289_vm0, %v3278_v43 }
 0x1e7   : > { %2753 = vmatmul.msk.bf16.gmra.mxu3 %vm289_vm0, %v1789_v37  ;;  %2813 = vmatmul.msk.bf16.gmra.mxu0 %vm289_vm0, %v3298_v1 }
 0x1e8   : > { %v2221_v46 = vadd.f32 %v3541_v51, %v2185_v3 }
 0x1e9   : > { %v1641_v50 = vpop.f32.mrf.mxu2 }
 0x1ea   : > { %v1875_v6 = vpop.f32.mrf.mxu3  ;;  %v2253_v32 = vmax.f32 %v2221_v46, 0.0  ;;  %v1718_v27 = vadd.f32 %v1641_v50, %v1483_v24 }
 0x1eb   : > { %v1408_v4 = vpop.f32.mrf.mxu1 }
 0x1ec   : > { %2286 = vst.msk [vmem:[%s3551_s8 + $0x8] sm:$0xff] %vm2284_vm1, %v2253_v32  ;;  %v1952_v58 = vadd.f32 %v1875_v6, %v1718_v27  ;;  %v2111_v60 = vpop.f32.mrf.mxu0  ;;  %v1484_v53 = vadd.f32 %v1408_v4, %v3783_v21  ;;  %v2722_v6 = vld [vmem:[%s2917_s29 + $0x139] sm:$0xff]  ;;  %v2723_v32 = vld [vmem:[%s2917_s29 + $0x141] sm:$0xff] }
 0x1ed   : > { %v3784_v4 = vld [vmem:[#allocation15_spill] sm:$0xff] }
 0x1ee   : > { %v2186_v43 = vadd.f32 %v2109_v45, %v1952_v58 }
 0x1f0   : > { %v2222_v31 = vadd.f32 %v3541_v51, %v2186_v43 }
 0x1f1   : > { %v1643_v11 = vpop.f32.mrf.mxu2 }
 0x1f2   : > { %v1877_v28 = vpop.f32.mrf.mxu3  ;;  %v2254_v25 = vmax.f32 %v2222_v31, 0.0  ;;  %v1719_v16 = vadd.f32 %v1643_v11, %v1484_v53  ;;  %v1791_v31 = vpack.c.bf16 %v2723_v32, %v2722_v6 }
 0x1f3   : > { %v1411_v34 = vpop.f32.mrf.mxu1 }
 0x1f4   : > { %2287 = vst.msk [vmem:[%s3551_s8 + $0x10] sm:$0xff] %vm2284_vm1, %v2254_v25  ;;  %v1953_v57 = vadd.f32 %v1877_v28, %v1719_v16  ;;  %v2114_v42 = vpop.f32.mrf.mxu0  ;;  %v1485_v37 = vadd.f32 %v1411_v34, %v3293_v8  ;;  %v3785_v25 = vld [vmem:[#allocation16_spill] sm:$0xff] }
 0x1f6   : > { %2634 = vmatmul.msk.bf16.gmra.mxu1 %vm289_vm0, %v3298_v1  ;;  %v2187_v15 = vadd.f32 %v2111_v60, %v1953_v57  ;;  %2694 = vmatmul.msk.bf16.gmra.mxu2 %vm289_vm0, %v3300_v59 }
 0x1f7   : > { %2754 = vmatmul.msk.bf16.gmra.mxu3 %vm289_vm0, %v1790_v29  ;;  %2814 = vmatmul.msk.bf16.gmra.mxu0 %vm289_vm0, %v3320_v54 }
 0x1f8   : > { %v2223_v13 = vadd.f32 %v3541_v51, %v2187_v15 }
 0x1f9   : > { %v1646_v2 = vpop.f32.mrf.mxu2 }
 0x1fa   : > { %v1880_v45 = vpop.f32.mrf.mxu3  ;;  %v2255_v3 = vmax.f32 %v2223_v13, 0.0  ;;  %v1720_v46 = vadd.f32 %v1646_v2, %v1485_v37  ;;  %v2724_v37 = vld [vmem:[%s2917_s29 + $0x151] sm:$0xff]  ;;  %v2725_v2 = vld [vmem:[%s2917_s29 + $0x159] sm:$0xff] }
 0x1fb   : > { %v1413_v1 = vpop.f32.mrf.mxu1  ;;  %v1792_v32 = vpack.c.bf16 %v2725_v2, %v2724_v37 }
 0x1fc   : > { %2288 = vst.msk [vmem:[%s3551_s8 + $0x18] sm:$0xff] %vm2284_vm1, %v2255_v3  ;;  %v1954_v24 = vadd.f32 %v1880_v45, %v1720_v46  ;;  %v2116_v50 = vpop.f32.mrf.mxu0  ;;  %v1486_v58 = vadd.f32 %v1413_v1, %v3784_v4  ;;  %v3786_v3 = vld [vmem:[#allocation17_spill] sm:$0xff] }
 0x1fe   : > { %v2188_v59 = vadd.f32 %v2114_v42, %v1954_v24 }
 0x200   : > { %v2224_v27 = vadd.f32 %v3541_v51, %v2188_v59 }
 0x201   : > { %v1648_v60 = vpop.f32.mrf.mxu2 }
 0x202   : > { %v1882_v43 = vpop.f32.mrf.mxu3  ;;  %v2256_v8 = vmax.f32 %v2224_v27, 0.0  ;;  %v1721_v56 = vadd.f32 %v1648_v60, %v1486_v58 }
 0x203   : > { %v1416_v52 = vpop.f32.mrf.mxu1 }
 0x204   : > { %2289 = vst.msk [vmem:[%s3551_s8 + $0x20] sm:$0xff] %vm2284_vm1, %v2256_v8  ;;  %v1955_v21 = vadd.f32 %v1882_v43, %v1721_v56  ;;  %v2119_v53 = vpop.f32.mrf.mxu0  ;;  %v1487_v16 = vadd.f32 %v1416_v52, %v3785_v25 }
 0x206   : > { %2635 = vmatmul.msk.bf16.gmra.mxu1 %vm289_vm0, %v3320_v54  ;;  %v2189_v11 = vadd.f32 %v2116_v50, %v1955_v21  ;;  %2695 = vmatmul.msk.bf16.gmra.mxu2 %vm289_vm0, %v3322_v14 }
 0x207   : > { %2755 = vmatmul.msk.bf16.gmra.mxu3 %vm289_vm0, %v1791_v31  ;;  %2815 = vmatmul.msk.bf16.gmra.mxu0 %vm289_vm0, %v3342_v38 }
 0x208   : > { %v2225_v28 = vadd.f32 %v3541_v51, %v2189_v11  ;;  %v2726_v11 = vld [vmem:[%s2917_s29 + $0x169] sm:$0xff] }
 0x209   : > { %v1651_v34 = vpop.f32.mrf.mxu2 }
 0x20a   : > { %v1885_v29 = vpop.f32.mrf.mxu3  ;;  %v2257_v57 = vmax.f32 %v2225_v28, 0.0  ;;  %v1722_v42 = vadd.f32 %v1651_v34, %v1487_v16  ;;  %v2727_v28 = vld [vmem:[%s2917_s29 + $0x171] sm:$0xff]  ;;  %v3787_v16 = vld [vmem:[#allocation18_spill] sm:$0xff] }
 0x20b   : > { %v1418_v54 = vpop.f32.mrf.mxu1 }
 0x20c   : > { %2290 = vst.msk [vmem:[%s3551_s8 + $0x28] sm:$0xff] %vm2284_vm1, %v2257_v57  ;;  %v1956_v15 = vadd.f32 %v1885_v29, %v1722_v42  ;;  %v2121_v13 = vpop.f32.mrf.mxu0  ;;  %v1488_v46 = vadd.f32 %v1418_v54, %v3786_v3 }
 0x20e   : > { %v2190_v14 = vadd.f32 %v2119_v53, %v1956_v15  ;;  %v1793_v15 = vpack.c.bf16 %v2727_v28, %v2726_v11 }
 0x210   : > { %v2226_v45 = vadd.f32 %v3541_v51, %v2190_v14 }
 0x211   : > { %v1653_v1 = vpop.f32.mrf.mxu2 }
 0x212   : > { %v1887_v24 = vpop.f32.mrf.mxu3  ;;  %v2258_v50 = vmax.f32 %v2226_v45, 0.0  ;;  %v1723_v59 = vadd.f32 %v1653_v1, %v1488_v46 }
 0x213   : > { %v1421_v6 = vpop.f32.mrf.mxu1 }
 0x214   : > { %2291 = vst.msk [vmem:[%s3551_s8 + $0x30] sm:$0xff] %vm2284_vm1, %v2258_v50  ;;  %v1957_v27 = vadd.f32 %v1887_v24, %v1723_v59  ;;  %v2124_v4 = vpop.f32.mrf.mxu0  ;;  %v1489_v43 = vadd.f32 %v1421_v6, %v3336_v22 }
 0x216   : > { %2636 = vmatmul.msk.bf16.gmra.mxu1 %vm289_vm0, %v3342_v38  ;;  %v2191_v58 = vadd.f32 %v2121_v13, %v1957_v27  ;;  %2696 = vmatmul.msk.bf16.gmra.mxu2 %vm289_vm0, %v3344_v35 }
 0x217   : > { %2756 = vmatmul.msk.bf16.gmra.mxu3 %vm289_vm0, %v1792_v32  ;;  %2816 = vmatmul.msk.bf16.gmra.mxu0 %vm289_vm0, %v3364_v40  ;;  %v3788_v32 = vld [vmem:[#allocation19_spill] sm:$0xff] }
 0x218   : > { %v2227_v60 = vadd.f32 %v3541_v51, %v2191_v58  ;;  %v2789_v58 = vld [vmem:[%s2917_s29 + $0x18a] sm:$0xff] }
 0x219   : > { %v1656_v8 = vpop.f32.mrf.mxu2 }
 0x21a   : > { %v1890_v56 = vpop.f32.mrf.mxu3  ;;  %v2259_v52 = vmax.f32 %v2227_v60, 0.0  ;;  %v1724_v31 = vadd.f32 %v1656_v8, %v1489_v43 }
 0x21b   : > { %v1423_v38 = vpop.f32.mrf.mxu1 }
 0x21c   : > { %2292 = vst.msk [vmem:[%s3551_s8 + $0x38] sm:$0xff] %vm2284_vm1, %v2259_v52  ;;  %v1958_v21 = vadd.f32 %v1890_v56, %v1724_v31  ;;  %v2126_v53 = vpop.f32.mrf.mxu0  ;;  %v1490_v34 = vadd.f32 %v1423_v38, %v3787_v16 }
 0x21e   : > { %v2192_v35 = vadd.f32 %v2124_v4, %v1958_v21  ;;  %v2788_v4 = vld [vmem:[%s2917_s29 + $0x182] sm:$0xff] }
 0x21f   : > { %v2028_v52 = vpack.c.bf16 %v2789_v58, %v2788_v4 }
 0x220   : > { %v2228_v25 = vadd.f32 %v3541_v51, %v2192_v35 }
 0x221   : > { %v1658_v29 = vpop.f32.mrf.mxu2 }
 0x222   : > { %v1892_v57 = vpop.f32.mrf.mxu3  ;;  %v2260_v22 = vmax.f32 %v2228_v25, 0.0  ;;  %v1725_v42 = vadd.f32 %v1658_v29, %v1490_v34 }
 0x223   : > { %v1426_v54 = vpop.f32.mrf.mxu1 }
 0x224   : > { %2293 = vst.msk [vmem:[%s3551_s8 + $0x40] sm:$0xff] %vm2284_vm1, %v2260_v22  ;;  %v1959_v13 = vadd.f32 %v1892_v57, %v1725_v42  ;;  %v2129_v14 = vpop.f32.mrf.mxu0  ;;  %v1491_v45 = vadd.f32 %v1426_v54, %v3358_v49  ;;  %v2671_v57 = vld [vmem:[%s2917_s29 + $0x1a0] sm:$0xff] }
 0x225   : > { %v2730_v22 = vld [vmem:[%s2917_s29 + $0x199] sm:$0xff]  ;;  %v2731_v42 = vld [vmem:[%s2917_s29 + $0x1a1] sm:$0xff] }
 0x226   : > { %2637 = vmatmul.msk.bf16.gmra.mxu1 %vm289_vm0, %v3364_v40  ;;  %v2193_v37 = vadd.f32 %v2126_v53, %v1959_v13  ;;  %2697 = vmatmul.msk.bf16.gmra.mxu2 %vm289_vm0, %v3366_v30  ;;  %v2791_v13 = vld [vmem:[%s2917_s29 + $0x1a2] sm:$0xff] }
 0x227   : > { %2757 = vmatmul.msk.bf16.gmra.mxu3 %vm289_vm0, %v1793_v15  ;;  %2817 = vmatmul.msk.bf16.gmra.mxu0 %vm289_vm0, %v3388_v44  ;;  %v2790_v15 = vld [vmem:[%s2917_s29 + $0x19a] sm:$0xff] }
 0x228   : > { %v2229_v2 = vadd.f32 %v3541_v51, %v2193_v37 }
 0x229   : > { %v1661_v3 = vpop.f32.mrf.mxu2 }
 0x22a   : > { %v1895_v46 = vpop.f32.mrf.mxu3  ;;  %v2261_v1 = vmax.f32 %v2229_v2, 0.0  ;;  %v1726_v24 = vadd.f32 %v1661_v3, %v1491_v45 }
 0x22b   : > { %v1428_v40 = vpop.f32.mrf.mxu1 }
 0x22c   : > { %2294 = vst.msk [vmem:[%s3551_s8 + $0x48] sm:$0xff] %vm2284_vm1, %v2261_v1  ;;  %v1960_v30 = vadd.f32 %v1895_v46, %v1726_v24  ;;  %v2131_v50 = vpop.f32.mrf.mxu0  ;;  %v1492_v27 = vadd.f32 %v1428_v40, %v3788_v32  ;;  %v1795_v1 = vpack.c.bf16 %v2731_v42, %v2730_v22  ;;  %v2029_v24 = vpack.c.bf16 %v2791_v13, %v2790_v15 }
 0x22e   : > { %v2194_v59 = vadd.f32 %v2129_v14, %v1960_v30 }
 0x230   : > { %v2230_v6 = vadd.f32 %v3541_v51, %v2194_v59 }
 0x231   : > { %v1663_v60 = vpop.f32.mrf.mxu2 }
 0x232   : > { %v1897_v43 = vpop.f32.mrf.mxu3  ;;  %v2262_v49 = vmax.f32 %v2230_v6, 0.0  ;;  %v1727_v8 = vadd.f32 %v1663_v60, %v1492_v27 }
 0x233   : > { %v1431_v56 = vpop.f32.mrf.mxu1 }
 0x234   : > { %2295 = vst.msk [vmem:[%s3551_s8 + $0x50] sm:$0xff] %vm2284_vm1, %v2262_v49  ;;  %v1961_v31 = vadd.f32 %v1897_v43, %v1727_v8  ;;  %v2134_v38 = vpop.f32.mrf.mxu0  ;;  %v1493_v35 = vadd.f32 %v1431_v56, %v3380_v23 }
 0x236   : > { %2638 = vmatmul.msk.bf16.gmra.mxu1 %vm289_vm0, %v3388_v44  ;;  %v2195_v21 = vadd.f32 %v2131_v50, %v1961_v31  ;;  %2698 = vmatmul.msk.bf16.gmra.mxu2 %vm289_vm0, %v3390_v47 }
 0x237   : > { %2758 = vmatmul.msk.bf16.gmra.mxu3 %vm289_vm0, %v3392_v7  ;;  %2818 = vmatmul.msk.bf16.gmra.mxu0 %vm289_vm0, %v2028_v52  ;;  %v2670_v7 = vld [vmem:[%s2917_s29 + $0x198] sm:$0xff] }
 0x238   : > { %v2231_v53 = vadd.f32 %v3541_v51, %v2195_v21  ;;  %v1561_v46 = vpack.c.bf16 %v2671_v57, %v2670_v7 }
 0x239   : > { %v1666_v11 = vpop.f32.mrf.mxu2 }
 0x23a   : > { %v1900_v44 = vpop.f32.mrf.mxu3  ;;  %v2263_v28 = vmax.f32 %v2231_v53, 0.0  ;;  %v1728_v25 = vadd.f32 %v1666_v11, %v1493_v35 }
 0x23b   : > { %v1433_v16 = vpop.f32.mrf.mxu1 }
 0x23c   : > { %2296 = vst.msk [vmem:[%s3551_s8 + $0x58] sm:$0xff] %vm2284_vm1, %v2263_v28  ;;  %v1962_v47 = vadd.f32 %v1900_v44, %v1728_v25  ;;  %v2136_v34 = vpop.f32.mrf.mxu0  ;;  %v1494_v23 = vadd.f32 %v1433_v16, %v3400_v17 }
 0x23e   : > { %v2196_v29 = vadd.f32 %v2134_v38, %v1962_v47 }
 0x240   : > { %v2232_v54 = vadd.f32 %v3541_v51, %v2196_v29 }
 0x241   : > { %v1668_v14 = vpop.f32.mrf.mxu2 }
 0x242   : > { %v1902_v37 = vpop.f32.mrf.mxu3  ;;  %v2264_v2 = vmax.f32 %v2232_v54, 0.0  ;;  %v1729_v45 = vadd.f32 %v1668_v14, %v1494_v23 }
 0x243   : > { %v1436_v3 = vpop.f32.mrf.mxu1 }
 0x244   : > { %2297 = vst.msk [vmem:[%s3551_s8 + $0x60] sm:$0xff] %vm2284_vm1, %v2264_v2  ;;  %v1963_v40 = vadd.f32 %v1902_v37, %v1729_v45  ;;  %v2139_v30 = vpop.f32.mrf.mxu0  ;;  %v1495_v59 = vadd.f32 %v1436_v3, %v3405_v62 }
 0x246   : > { %2639 = vmatmul.msk.bf16.gmra.mxu1 %vm289_vm0, %v2028_v52  ;;  %v2197_v50 = vadd.f32 %v2136_v34, %v1963_v40  ;;  %2699 = vmatmul.msk.bf16.gmra.mxu2 %vm289_vm0, %v1561_v46 }
 0x247   : > { %2759 = vmatmul.msk.bf16.gmra.mxu3 %vm289_vm0, %v1795_v1  ;;  %2819 = vmatmul.msk.bf16.gmra.mxu0 %vm289_vm0, %v2029_v24 }
 0x248   : > { %v2233_v17 = vadd.f32 %v3541_v51, %v2197_v50 }
 0x249   : > { %v1671_v6 = vpop.f32.mrf.mxu2 }
 0x24a   : > { %v1905_v32 = vpop.f32.mrf.mxu3  ;;  %v2265_v27 = vmax.f32 %v2233_v17, 0.0  ;;  %v1730_v4 = vadd.f32 %v1671_v6, %v1495_v59 }
 0x24b   : > { %v1438_v58 = vpop.f32.mrf.mxu1 }
 0x24c   : > { %2298 = vst.msk [vmem:[%s3551_s8 + $0x68] sm:$0xff] %vm2284_vm1, %v2265_v27  ;;  %v1964_v60 = vadd.f32 %v1905_v32, %v1730_v4  ;;  %v2141_v43 = vpop.f32.mrf.mxu0  ;;  %v1496_v56 = vadd.f32 %v1438_v58, %v3414_v33 }
 0x24e   : > { %v2198_v49 = vadd.f32 %v2139_v30, %v1964_v60 }
 0x250   : > { %v2234_v8 = vadd.f32 %v3541_v51, %v2198_v49 }
 0x251   : > { %v1673_v52 = vpop.f32.mrf.mxu2 }
 0x252   : > { %v1907_v31 = vpop.f32.mrf.mxu3  ;;  %v2266_v38 = vmax.f32 %v2234_v8, 0.0  ;;  %v1731_v62 = vadd.f32 %v1673_v52, %v1496_v56 }
 0x253   : > { %v1441_v21 = vpop.f32.mrf.mxu1 }
 0x254   : > { %2299 = vst.msk [vmem:[%s3551_s8 + $0x70] sm:$0xff] %vm2284_vm1, %v2266_v38  ;;  %v1965_v53 = vadd.f32 %v1907_v31, %v1731_v62  ;;  %v2144_v35 = vpop.f32.mrf.mxu0  ;;  %v1497_v28 = vadd.f32 %v1441_v21, %v3419_v12 }
 0x256   : > { %v2199_v11 = vadd.f32 %v2141_v43, %v1965_v53 }
 0x258   : > { %v2235_v44 = vadd.f32 %v3541_v51, %v2199_v11 }
 0x259   : > { %v1676_v25 = vpop.f32.mrf.mxu2 }
 0x25a   : > { %v1910_v16 = vpop.f32.mrf.mxu3  ;;  %v2267_v47 = vmax.f32 %v2235_v44, 0.0  ;;  %v1732_v33 = vadd.f32 %v1676_v25, %v1497_v28 }
 0x25b   : > { %v1443_v34 = vpop.f32.mrf.mxu1 }
 0x25c   : > { %2300 = vst.msk [vmem:[%s3551_s8 + $0x78] sm:$0xff] %vm2284_vm1, %v2267_v47  ;;  %v1966_v29 = vadd.f32 %v1910_v16, %v1732_v33  ;;  %v2146_v7 = vpop.f32.mrf.mxu0  ;;  %v1498_v42 = vadd.f32 %v1443_v34, %v3428_v9 }
 0x25e   : > { %v2200_v57 = vadd.f32 %v2144_v35, %v1966_v29 }
 0x260   : > { %v2236_v22 = vadd.f32 %v3541_v51, %v2200_v57 }
 0x261   : > { %v1678_v54 = vpop.f32.mrf.mxu2 }
 0x262   : > { %v1912_v23 = vpop.f32.mrf.mxu3  ;;  %v2268_v15 = vmax.f32 %v2236_v22, 0.0  ;;  %v1733_v12 = vadd.f32 %v1678_v54, %v1498_v42 }
 0x263   : > { %v1446_v13 = vpop.f32.mrf.mxu1 }
 0x264   : > { %2301 = vst.msk [vmem:[%s3551_s8 + $0x80] sm:$0xff] %vm2284_vm1, %v2268_v15  ;;  %v1967_v14 = vadd.f32 %v1912_v23, %v1733_v12  ;;  %v2149_v37 = vpop.f32.mrf.mxu0  ;;  %v1499_v3 = vadd.f32 %v1446_v13, %v3433_v20 }
 0x266   : > { %v2201_v2 = vadd.f32 %v2146_v7, %v1967_v14 }
 0x268   : > { %v2237_v45 = vadd.f32 %v3541_v51, %v2201_v2 }
 0x269   : > { %v1681_v46 = vpop.f32.mrf.mxu2 }
 0x26a   : > { %v1915_v1 = vpop.f32.mrf.mxu3  ;;  %v2269_v24 = vmax.f32 %v2237_v45, 0.0  ;;  %v1734_v9 = vadd.f32 %v1681_v46, %v1499_v3 }
 0x26b   : > { %v1448_v40 = vpop.f32.mrf.mxu1 }
 0x26c   : > { %2302 = vst.msk [vmem:[%s3551_s8 + $0x88] sm:$0xff] %vm2284_vm1, %v2269_v24  ;;  %v1968_v30 = vadd.f32 %v1915_v1, %v1734_v9  ;;  %v2151_v50 = vpop.f32.mrf.mxu0  ;;  %v1500_v6 = vadd.f32 %v1448_v40, %v3443_v41 }
 0x26e   : > { %v2202_v17 = vadd.f32 %v2149_v37, %v1968_v30 }
 0x270   : > { %v2238_v59 = vadd.f32 %v3541_v51, %v2202_v17 }
 0x271   : > { %v1683_v32 = vpop.f32.mrf.mxu2 }
 0x272   : > { %v1917_v27 = vpop.f32.mrf.mxu3  ;;  %v2270_v4 = vmax.f32 %v2238_v59, 0.0  ;;  %v1735_v20 = vadd.f32 %v1683_v32, %v1500_v6 }
 0x273   : > { %v1451_v58 = vpop.f32.mrf.mxu1 }
 0x274   : > { %2303 = vst.msk [vmem:[%s3551_s8 + $0x90] sm:$0xff] %vm2284_vm1, %v2270_v4  ;;  %v1969_v60 = vadd.f32 %v1917_v27, %v1735_v20  ;;  %v2154_v43 = vpop.f32.mrf.mxu0  ;;  %v1501_v56 = vadd.f32 %v1451_v58, %v3448_v18 }
 0x276   : > { %v2203_v49 = vadd.f32 %v2151_v50, %v1969_v60 }
 0x278   : > { %v2239_v8 = vadd.f32 %v3541_v51, %v2203_v49 }
 0x279   : > { %v1686_v52 = vpop.f32.mrf.mxu2 }
 0x27a   : > { %v1920_v31 = vpop.f32.mrf.mxu3  ;;  %v2271_v38 = vmax.f32 %v2239_v8, 0.0  ;;  %v1736_v41 = vadd.f32 %v1686_v52, %v1501_v56 }
 0x27b   : > { %v1453_v62 = vpop.f32.mrf.mxu1 }
 0x27c   : > { %2304 = vst.msk [vmem:[%s3551_s8 + $0x98] sm:$0xff] %vm2284_vm1, %v2271_v38  ;;  %v1970_v21 = vadd.f32 %v1920_v31, %v1736_v41  ;;  %v2156_v53 = vpop.f32.mrf.mxu0  ;;  %v1502_v44 = vadd.f32 %v1453_v62, %v3458_v0 }
 0x27e   : > { %v2204_v35 = vadd.f32 %v2154_v43, %v1970_v21 }
 0x280   : > { %v2240_v11 = vadd.f32 %v3541_v51, %v2204_v35 }
 0x281   : > { %v1688_v28 = vpop.f32.mrf.mxu2 }
 0x282   : > { %v1922_v25 = vpop.f32.mrf.mxu3  ;;  %v2272_v16 = vmax.f32 %v2240_v11, 0.0  ;;  %v1737_v18 = vadd.f32 %v1688_v28, %v1502_v44 }
 0x283   : > { %v1456_v47 = vpop.f32.mrf.mxu1 }
 0x284   : > { %2305 = vst.msk [vmem:[%s3551_s8 + $0xa0] sm:$0xff] %vm2284_vm1, %v2272_v16  ;;  %v1971_v33 = vadd.f32 %v1922_v25, %v1737_v18  ;;  %v2159_v34 = vpop.f32.mrf.mxu0  ;;  %v1503_v57 = vadd.f32 %v1456_v47, %v3463_v55 }
 0x286   : > { %v2205_v29 = vadd.f32 %v2156_v53, %v1971_v33 }
 0x288   : > { %v2241_v7 = vadd.f32 %v3541_v51, %v2205_v29 }
 0x289   : > { %v1691_v22 = vpop.f32.mrf.mxu2 }
 0x28a   : > { %v1925_v42 = vpop.f32.mrf.mxu3  ;;  %v2273_v54 = vmax.f32 %v2241_v7, 0.0  ;;  %v1738_v0 = vadd.f32 %v1691_v22, %v1503_v57 }
 0x28b   : > { %v1458_v23 = vpop.f32.mrf.mxu1 }
 0x28c   : > { %2306 = vst.msk [vmem:[%s3551_s8 + $0xa8] sm:$0xff] %vm2284_vm1, %v2273_v54  ;;  %v1972_v15 = vadd.f32 %v1925_v42, %v1738_v0  ;;  %v2161_v12 = vpop.f32.mrf.mxu0  ;;  %v1504_v37 = vadd.f32 %v1458_v23, %v3473_v26 }
 0x28e   : > { %v2206_v13 = vadd.f32 %v2159_v34, %v1972_v15 }
 0x290   : > { %v2242_v14 = vadd.f32 %v3541_v51, %v2206_v13 }
 0x291   : > { %v1693_v2 = vpop.f32.mrf.mxu2 }
 0x292   : > { %v1927_v45 = vpop.f32.mrf.mxu3  ;;  %v2274_v3 = vmax.f32 %v2242_v14, 0.0  ;;  %v1739_v55 = vadd.f32 %v1693_v2, %v1504_v37 }
 0x293   : > { %v1461_v46 = vpop.f32.mrf.mxu1 }
 0x294   : > { %2307 = vst.msk [vmem:[%s3551_s8 + $0xb0] sm:$0xff] %vm2284_vm1, %v2274_v3  ;;  %v1973_v1 = vadd.f32 %v1927_v45, %v1739_v55  ;;  %v2164_v24 = vpop.f32.mrf.mxu0  ;;  %v1505_v30 = vadd.f32 %v1461_v46, %v3478_v5 }
 0x296   : > { %v2207_v9 = vadd.f32 %v2161_v12, %v1973_v1 }
 0x298   : > { %v2243_v40 = vadd.f32 %v3541_v51, %v2207_v9 }
 0x299   : > { %v1696_v50 = vpop.f32.mrf.mxu2 }
 0x29a   : > { %v1930_v17 = vpop.f32.mrf.mxu3  ;;  %v2275_v59 = vmax.f32 %v2243_v40, 0.0  ;;  %v1740_v26 = vadd.f32 %v1696_v50, %v1505_v30 }
 0x29b   : > { %v1463_v6 = vpop.f32.mrf.mxu1 }
 0x29c   : > { %2308 = vst.msk [vmem:[%s3551_s8 + $0xb8] sm:$0xff] %vm2284_vm1, %v2275_v59  ;;  %v1974_v32 = vadd.f32 %v1930_v17, %v1740_v26  ;;  %v2166_v27 = vpop.f32.mrf.mxu0  ;;  %v1506_v58 = vadd.f32 %v1463_v6, %v3488_v36 }
 0x29e   : > { %v2208_v4 = vadd.f32 %v2164_v24, %v1974_v32 }
 0x2a0   : > { %v2244_v20 = vadd.f32 %v3541_v51, %v2208_v4 }
 0x2a1   : > { %v1698_v60 = vpop.f32.mrf.mxu2 }
 0x2a2   : > { %v1932_v43 = vpop.f32.mrf.mxu3  ;;  %v2276_v49 = vmax.f32 %v2244_v20, 0.0  ;;  %v1741_v5 = vadd.f32 %v1698_v60, %v1506_v58 }
 0x2a3   : > { %v1466_v8 = vpop.f32.mrf.mxu1 }
 0x2a4   : > { %2309 = vst.msk [vmem:[%s3551_s8 + $0xc0] sm:$0xff] %vm2284_vm1, %v2276_v49  ;;  %v1975_v56 = vadd.f32 %v1932_v43, %v1741_v5  ;;  %v2169_v52 = vpop.f32.mrf.mxu0  ;;  %v1507_v41 = vadd.f32 %v1466_v8, %v3493_v19 }
 0x2a6   : > { %v2209_v31 = vadd.f32 %v2166_v27, %v1975_v56 }
 0x2a8   : > { %v2245_v38 = vadd.f32 %v3541_v51, %v2209_v31 }
 0x2a9   : > { %v1701_v62 = vpop.f32.mrf.mxu2 }
 0x2aa   : > { %v1935_v21 = vpop.f32.mrf.mxu3  ;;  %v2277_v53 = vmax.f32 %v2245_v38, 0.0  ;;  %v1742_v36 = vadd.f32 %v1701_v62, %v1507_v41 }
 0x2ab   : > { %v1468_v35 = vpop.f32.mrf.mxu1 }
 0x2ac   : > { %2310 = vst.msk [vmem:[%s3551_s8 + $0xc8] sm:$0xff] %vm2284_vm1, %v2277_v53  ;;  %v1976_v11 = vadd.f32 %v1935_v21, %v1742_v36  ;;  %v2171_v44 = vpop.f32.mrf.mxu0  ;;  %v1508_v16 = vadd.f32 %v1468_v35, %v3503_v61 }
 0x2ae   : > { %v2210_v28 = vadd.f32 %v2169_v52, %v1976_v11 }
 0x2b0   : > { %v2246_v25 = vadd.f32 %v3541_v51, %v2210_v28 }
 0x2b1   : > { %v1703_v18 = vpop.f32.mrf.mxu2 }
 0x2b2   : > { %v1937_v47 = vpop.f32.mrf.mxu3  ;;  %v2278_v33 = vmax.f32 %v2246_v25, 0.0  ;;  %v1743_v19 = vadd.f32 %v1703_v18, %v1508_v16 }
 0x2b3   : > { %v1471_v34 = vpop.f32.mrf.mxu1 }
 0x2b4   : > { %2311 = vst.msk [vmem:[%s3551_s8 + $0xd0] sm:$0xff] %vm2284_vm1, %v2278_v33  ;;  %v1977_v29 = vadd.f32 %v1937_v47, %v1743_v19  ;;  %v2174_v57 = vpop.f32.mrf.mxu0  ;;  %v1509_v42 = vadd.f32 %v1471_v34, %v3508_v10 }
 0x2b6   : > { %v2211_v7 = vadd.f32 %v2171_v44, %v1977_v29 }
 0x2b8   : > { %v2247_v22 = vadd.f32 %v3541_v51, %v2211_v7 }
 0x2b9   : > { %v1706_v54 = vpop.f32.mrf.mxu2 }
 0x2ba   : > { %v1940_v0 = vpop.f32.mrf.mxu3  ;;  %v2279_v23 = vmax.f32 %v2247_v22, 0.0  ;;  %v1744_v61 = vadd.f32 %v1706_v54, %v1509_v42 }
 0x2bb   : > { %v1473_v15 = vpop.f32.mrf.mxu1 }
 0x2bc   : > { %2312 = vst.msk [vmem:[%s3551_s8 + $0xd8] sm:$0xff] %vm2284_vm1, %v2279_v23  ;;  %v1978_v12 = vadd.f32 %v1940_v0, %v1744_v61  ;;  %v1510_v37 = vadd.f32 %v1473_v15, %v3518_v63  ;;  %v2176_v2 = vpop.f32.mrf.mxu0 }
 0x2be   : > { %v2212_v13 = vadd.f32 %v2174_v57, %v1978_v12 }
 0x2c0   : > { %v2248_v14 = vadd.f32 %v3541_v51, %v2212_v13 }
 0x2c1   : > { %v1708_v45 = vpop.f32.mrf.mxu2 }
 0x2c2   : > { %v1942_v3 = vpop.f32.mrf.mxu3  ;;  %v2280_v55 = vmax.f32 %v2248_v14, 0.0  ;;  %v1745_v10 = vadd.f32 %v1708_v45, %v1510_v37 }
 0x2c3   : > { %v1476_v46 = vpop.f32.mrf.mxu1 }
 0x2c4   : > { %2313 = vst.msk [vmem:[%s3551_s8 + $0xe0] sm:$0xff] %vm2284_vm1, %v2280_v55  ;;  %v1979_v1 = vadd.f32 %v1942_v3, %v1745_v10  ;;  %v1511_v40 = vadd.f32 %v1476_v46, %v3523_v39  ;;  %v2179_v59 = vpop.f32.mrf.mxu0 }
 0x2c6   : > { %v2213_v24 = vadd.f32 %v2176_v2, %v1979_v1 }
 0x2c8   : > { %v2249_v9 = vadd.f32 %v3541_v51, %v2213_v24 }
 0x2c9   : > { %v1711_v30 = vpop.f32.mrf.mxu2 }
 0x2ca   : > { %v1945_v50 = vpop.f32.mrf.mxu3  ;;  %v2281_v17 = vmax.f32 %v2249_v9, 0.0  ;;  %v1746_v63 = vadd.f32 %v1711_v30, %v1511_v40 }
 0x2cb   : > { %v1478_v6 = vpop.f32.mrf.mxu1 }
 0x2cc   : > { %2314 = vst.msk [vmem:[%s3551_s8 + $0xe8] sm:$0xff] %vm2284_vm1, %v2281_v17  ;;  %v1980_v26 = vadd.f32 %v1945_v50, %v1746_v63  ;;  %v1512_v4 = vadd.f32 %v1478_v6, %v3533_v48  ;;  %v2181_v49 = vpop.f32.mrf.mxu0 }
 0x2ce   : > { %v2214_v32 = vadd.f32 %v2179_v59, %v1980_v26 }
 0x2d0   : > { %v2250_v27 = vadd.f32 %v3541_v51, %v2214_v32 }
 0x2d1   : > { %v1713_v20 = vpop.f32.mrf.mxu2 }
 0x2d2   : > { %v2282_v58 = vmax.f32 %v2250_v27, 0.0  ;;  %v1747_v60 = vadd.f32 %v1713_v20, %v1512_v4  ;;  %v1947_v39 = vpop.f32.mrf.mxu3 }
 0x2d4   : > { %2315 = vst.msk [vmem:[%s3551_s8 + $0xf0] sm:$0xff] %vm2284_vm1, %v2282_v58  ;;  %v1981_v43 = vadd.f32 %v1947_v39, %v1747_v60 }
 0x2d6   : > { %v2215_v5 = vadd.f32 %v2181_v49, %v1981_v43 }
 0x2d8   : > { %v2251_v8 = vadd.f32 %v3541_v51, %v2215_v5 }
 0x2da   : > { %v2283_v56 = vmax.f32 %v2251_v8, 0.0 }
 0x2dc   : > { %2316 = vst.msk [vmem:[%s3551_s8 + $0xf8] sm:$0xff] %vm2284_vm1, %v2283_v56 }
 0x2dd PF: > { %s13_s12 = sadd.s32 1, %s2863_s12  }
 0x2de   : > { %p10_p4 = scmp.ge.s32.totalorder %s13_s12, 4  }
 0x2e0   :  { %12 = sbr.rel (!%p10_p4) target bundleno = 1 (0x1), region = 72 }

// kernel: contour_prediction_forward.9
= control target key start
LH: loop header
LB: loop body
LE: loop exit
PB: predicated region body
PF: predicated region fallthrough
CT: control target
= control target key end

     0   :  { %s1287_s14 = smov 0   ;;  %s1944_s0 = inlined_call_operand.vmem [shape: f32[512,96], index: 0, kind: input, shape index: {}]   ;;  %s1945_s1 = inlined_call_operand.vmem [shape: f32[1,96], index: 1, kind: input, shape index: {}]   ;;  %s1946_s2 = inlined_call_operand.<no memory space> [shape: f32[1,1], index: 2, kind: input, shape index: {}]   ;;  %s1947_s3 = inlined_call_operand.vmem [shape: f32[512,1], index: 3, kind: output, shape index: {}]  }
   0x1   :  { %v8_v0 = vstv %s1946_s2 }
   0x2   :  { %9 = vst [vmem:[#allocation2] sm:$0x1] %v8_v0 }
   0x3 LB: > { %s1074_s15 = sadd.s32 4294967295, %s1262_s14   ;;  %p1078_p0 = scmp.ge.s32.totalorder %s1262_s14, 1  ;;  %s1262_s14 = sphi %s1287_s14, %s15_s14  }
   0x4   : > { %p140_p1 = scmp.lt.s32.totalorder %s1262_s14, 3 }
   0x6   : > { %p141_p2 = pnand %p1078_p0, %p140_p1 }
   0x7   : > { %s1079_s16 = sshll.u32 (!%p141_p2), %s1074_s15, 5 }
   0x8   : > { %144 = sbr.rel (%p141_p2) target bundleno = 289 (0x121), region = 32  ;;  %p165_p3 = scmp.lt.s32.totalorder (!%p141_p2), %s1079_s16, 63 }
   0xd   : > { %s1993_s16 = smov (!%p165_p3, %s1079_s16), 63  ;;  %v1300_v1 = vld [vmem:[%s1945_s1] ss:$0 sm:$0xff]  ;;  %vm244_vm0 = vcmask 785408   ;;  %vm985_vm1 = vcmask 7168  }
   0xe   : > { %s1080_s18 = sshll.u32 %s1993_s16, 3 }
   0xf   : > { %s1308_s21 = scalar_lea.vmem %s1944_s0, %s1080_s18  ;;  %s1472_s24 = scalar_lea.vmem %s1947_s3, %s1080_s18 }
  0x10   : > { %v180_v2 = vld [vmem:[%s1308_s21 + $0x20] sm:$0xff]  ;;  %v178_v3 = vld [vmem:[%s1308_s21 + $0x10] sm:$0xff]  ;;  %v181_v8 = vld [vmem:[%s1308_s21 + $0x28] sm:$0xff] }
  0x11   : > { %v176_v4 = vld [vmem:[%s1308_s21] sm:$0xff]  ;;  %v216_v5 = vmul.f32 %v1300_v1, %v180_v2  ;;  %v214_v6 = vmul.f32 %v1300_v1, %v178_v3  ;;  %v179_v9 = vld [vmem:[%s1308_s21 + $0x18] sm:$0xff]  ;;  %v177_v13 = vld [vmem:[%s1308_s21 + $0x8] sm:$0xff]  ;;  %v217_v14 = vmul.f32 %v1300_v1, %v181_v8 }
  0x12   : > { %v212_v7 = vmul.f32 %v1300_v1, %v176_v4  ;;  %v215_v15 = vmul.f32 %v1300_v1, %v179_v9  ;;  %v213_v16 = vmul.f32 %v1300_v1, %v177_v13  ;;  %v184_v20 = vld [vmem:[%s1308_s21 + $0x40] sm:$0xff]  ;;  %v183_v21 = vld [vmem:[%s1308_s21 + $0x38] sm:$0xff]  ;;  %v182_v22 = vld [vmem:[%s1308_s21 + $0x30] sm:$0xff] }
  0x13   : > { %v257_v10 = vsel %vm244_vm0, %v216_v5, 0.0  ;;  %v251_v11 = vsel %vm244_vm0, %v214_v6, 0.0  ;;  %v260_v17 = vsel %vm244_vm0, %v217_v14, 0.0  ;;  %v220_v23 = vmul.f32 %v1300_v1, %v184_v20  ;;  %v187_v29 = vld [vmem:[%s1308_s21 + $0x58] sm:$0xff]  ;;  %v186_v30 = vld [vmem:[%s1308_s21 + $0x50] sm:$0xff]  ;;  %v185_v31 = vld [vmem:[%s1308_s21 + $0x48] sm:$0xff] }
  0x14   : > { %v245_v12 = vsel %vm244_vm0, %v212_v7, 0.0  ;;  %258 = vadd.xlane.f32.xlu2 %v257_v10  ;;  %252 = vadd.xlane.f32.xlu1 %v251_v11  ;;  %v254_v18 = vsel %vm244_vm0, %v215_v15, 0.0  ;;  %v248_v19 = vsel %vm244_vm0, %v213_v16, 0.0  ;;  %v219_v24 = vmul.f32 %v1300_v1, %v183_v21  ;;  %v190_v38 = vld [vmem:[%s1308_s21 + $0x70] sm:$0xff]  ;;  %v189_v39 = vld [vmem:[%s1308_s21 + $0x68] sm:$0xff]  ;;  %v188_v40 = vld [vmem:[%s1308_s21 + $0x60] sm:$0xff] }
  0x15   : > { %246 = vadd.xlane.f32.xlu0 %v245_v12  ;;  %v218_v25 = vmul.f32 %v1300_v1, %v182_v22  ;;  %v269_v26 = vsel %vm244_vm0, %v220_v23, 0.0  ;;  %v223_v32 = vmul.f32 %v1300_v1, %v187_v29  ;;  %v222_v33 = vmul.f32 %v1300_v1, %v186_v30  ;;  %v202_v43 = vld [vmem:[%s1308_s21 + $0xd0] sm:$0xff]  ;;  %v201_v49 = vld [vmem:[%s1308_s21 + $0xc8] sm:$0xff]  ;;  %v200_v50 = vld [vmem:[%s1308_s21 + $0xc0] sm:$0xff] }
  0x16   : > { %v266_v27 = vsel %vm244_vm0, %v219_v24, 0.0  ;;  %v221_v34 = vmul.f32 %v1300_v1, %v185_v31  ;;  %v226_v41 = vmul.f32 %v1300_v1, %v190_v38  ;;  %v225_v42 = vmul.f32 %v1300_v1, %v189_v39  ;;  %v193_v52 = vld [vmem:[%s1308_s21 + $0x88] sm:$0xff]  ;;  %v192_v53 = vld [vmem:[%s1308_s21 + $0x80] sm:$0xff]  ;;  %v191_v56 = vld [vmem:[%s1308_s21 + $0x78] sm:$0xff] }
  0x17   : > { %v263_v28 = vsel %vm244_vm0, %v218_v25, 0.0  ;;  %v278_v35 = vsel %vm244_vm0, %v223_v32, 0.0  ;;  %v275_v36 = vsel %vm244_vm0, %v222_v33, 0.0  ;;  %v224_v44 = vmul.f32 %v1300_v1, %v188_v40  ;;  %v205_v61 = vld [vmem:[%s1308_s21 + $0xe8] sm:$0xff]  ;;  %v204_v4 = vld [vmem:[%s1308_s21 + $0xe0] sm:$0xff]  ;;  %v203_v5 = vld [vmem:[%s1308_s21 + $0xd8] sm:$0xff] }
  0x18   : > { %v272_v37 = vsel %vm244_vm0, %v221_v34, 0.0  ;;  %v238_v45 = vmul.f32 %v1300_v1, %v202_v43  ;;  %v287_v47 = vsel %vm244_vm0, %v226_v41, 0.0  ;;  %v284_v48 = vsel %vm244_vm0, %v225_v42, 0.0  ;;  %v196_v7 = vld [vmem:[%s1308_s21 + $0xa0] sm:$0xff]  ;;  %v195_v8 = vld [vmem:[%s1308_s21 + $0x98] sm:$0xff]  ;;  %v194_v11 = vld [vmem:[%s1308_s21 + $0x90] sm:$0xff] }
  0x19   : > { %v281_v51 = vsel %vm244_vm0, %v224_v44, 0.0  ;;  %v237_v54 = vmul.f32 %v1300_v1, %v201_v49  ;;  %v236_v55 = vmul.f32 %v1300_v1, %v200_v50  ;;  %v229_v59 = vmul.f32 %v1300_v1, %v193_v52  ;;  %v207_v16 = vld [vmem:[%s1308_s21 + $0xf8] sm:$0xff]  ;;  %v206_v22 = vld [vmem:[%s1308_s21 + $0xf0] sm:$0xff] }
  0x1a   : > { %v1355_v46 = vsel %vm244_vm0, %v238_v45, 0.0  ;;  %v228_v60 = vmul.f32 %v1300_v1, %v192_v53  ;;  %v227_v62 = vmul.f32 %v1300_v1, %v191_v56  ;;  %v241_v63 = vmul.f32 %v1300_v1, %v205_v61  ;;  %v199_v24 = vld [vmem:[%s1308_s21 + $0xb8] sm:$0xff]  ;;  %v198_v25 = vld [vmem:[%s1308_s21 + $0xb0] sm:$0xff] }
  0x1b   : > { %v320_v57 = vsel %vm244_vm0, %v237_v54, 0.0  ;;  %v317_v58 = vsel %vm244_vm0, %v236_v55, 0.0  ;;  %v296_v2 = vsel %vm244_vm0, %v229_v59, 0.0  ;;  %v240_v9 = vmul.f32 %v1300_v1, %v204_v4 }
  0x1c   : > { %261 = vadd.xlane.f32.xlu2 %v260_v17  ;;  %255 = vadd.xlane.f32.xlu1 %v254_v18  ;;  %v332_v0 = vsel %vm244_vm0, %v241_v63, 0.0  ;;  %v293_v3 = vsel %vm244_vm0, %v228_v60, 0.0  ;;  %v290_v6 = vsel %vm244_vm0, %v227_v62, 0.0  ;;  %v239_v10 = vmul.f32 %v1300_v1, %v203_v5 }
  0x1d   : > { %249 = vadd.xlane.f32.xlu0 %v248_v19  ;;  %v329_v12 = vsel %vm244_vm0, %v240_v9, 0.0  ;;  %v232_v14 = vmul.f32 %v1300_v1, %v196_v7  ;;  %v231_v15 = vmul.f32 %v1300_v1, %v195_v8  ;;  %v230_v17 = vmul.f32 %v1300_v1, %v194_v11 }
  0x1e   : > { %v326_v13 = vsel %vm244_vm0, %v239_v10, 0.0  ;;  %v243_v18 = vmul.f32 %v1300_v1, %v207_v16  ;;  %v235_v29 = vmul.f32 %v1300_v1, %v199_v24  ;;  %v234_v30 = vmul.f32 %v1300_v1, %v198_v25 }
  0x1f   : > { %v305_v20 = vsel %vm244_vm0, %v232_v14, 0.0  ;;  %v302_v21 = vsel %vm244_vm0, %v231_v15, 0.0  ;;  %v299_v23 = vsel %vm244_vm0, %v230_v17, 0.0 }
  0x20   : > { %v338_v19 = vsel %vm244_vm0, %v243_v18, 0.0  ;;  %v314_v32 = vsel %vm244_vm0, %v235_v29, 0.0  ;;  %v311_v33 = vsel %vm244_vm0, %v234_v30, 0.0 }
  0x24   : > { %270 = vadd.xlane.f32.xlu2 %v269_v26  ;;  %267 = vadd.xlane.f32.xlu1 %v266_v27  ;;  %v242_v26 = vmul.f32 %v1300_v1, %v206_v22  ;;  %v197_v27 = vld [vmem:[%s1308_s21 + $0xa8] sm:$0xff] }
  0x25   : > { %264 = vadd.xlane.f32.xlu0 %v263_v28  ;;  %v233_v31 = vmul.f32 %v1300_v1, %v197_v27 }
  0x26   : > { %v335_v28 = vsel %vm244_vm0, %v242_v26, 0.0 }
  0x27   : > { %v308_v34 = vsel %vm244_vm0, %v233_v31, 0.0 }
  0x2c   : > { %279 = vadd.xlane.f32.xlu2 %v278_v35  ;;  %276 = vadd.xlane.f32.xlu1 %v275_v36  ;;  %v1409_v35 = vld [vmem:[#allocation2] ss:$0 sm:$0xff] }
  0x2d   : > { %273 = vadd.xlane.f32.xlu0 %v272_v37 }
  0x34   : > { %288 = vadd.xlane.f32.xlu2 %v287_v47  ;;  %285 = vadd.xlane.f32.xlu1 %v284_v48 }
  0x35   : > { %282 = vadd.xlane.f32.xlu0 %v281_v51 }
  0x3c   : > { %297 = vadd.xlane.f32.xlu2 %v296_v2  ;;  %294 = vadd.xlane.f32.xlu1 %v293_v3 }
  0x3d   : > { %291 = vadd.xlane.f32.xlu0 %v290_v6 }
  0x44   : > { %306 = vadd.xlane.f32.xlu2 %v305_v20  ;;  %303 = vadd.xlane.f32.xlu1 %v302_v21 }
  0x45   : > { %300 = vadd.xlane.f32.xlu0 %v299_v23 }
  0x4c   : > { %315 = vadd.xlane.f32.xlu2 %v314_v32  ;;  %312 = vadd.xlane.f32.xlu1 %v311_v33 }
  0x4d   : > { %309 = vadd.xlane.f32.xlu0 %v308_v34 }
  0x54   : > { %324 = vadd.xlane.f32.xlu2 %v1355_v46  ;;  %321 = vadd.xlane.f32.xlu1 %v320_v57 }
  0x55   : > { %318 = vadd.xlane.f32.xlu0 %v317_v58 }
  0x5c   : > { %333 = vadd.xlane.f32.xlu2 %v332_v0  ;;  %330 = vadd.xlane.f32.xlu1 %v329_v12 }
  0x5d   : > { %327 = vadd.xlane.f32.xlu0 %v326_v13 }
  0x64   : > { %339 = vadd.xlane.f32.xlu1 %v338_v19 }
  0x65   : > { %336 = vadd.xlane.f32.xlu0 %v335_v28 }
  0x87   : > { %v259_v1 = vpop.xlane.xlu2 %258  ;;  %v253_v36 = vpop.xlane.xlu1 %252 }
  0x88   : > { %v349_v37 = vadd.f32 %v1409_v35, %v259_v1  ;;  %v347_v38 = vadd.f32 %v1409_v35, %v253_v36  ;;  %v247_v39 = vpop.xlane.xlu0 %246 }
  0x89   : > { %v345_v40 = vadd.f32 %v1409_v35, %v247_v39 }
  0x8a   : > { %v1087_v41 = vmul.f32 -1.442695, %v349_v37  ;;  %v1085_v42 = vmul.f32 -1.442695, %v347_v38 }
  0x8b   : > { %v1083_v43 = vmul.f32 -1.442695, %v345_v40 }
  0x8c   : > { %1127 = vpow2.f32 %v1087_v41 }
  0x8d   : > { %1129 = vpow2.f32 %v1085_v42 }
  0x8e   : > { %1131 = vpow2.f32 %v1083_v43 }
  0x8f   : > { %v262_v44 = vpop.xlane.xlu2 %261  ;;  %v256_v45 = vpop.xlane.xlu1 %255 }
  0x90   : > { %v350_v46 = vadd.f32 %v1409_v35, %v262_v44  ;;  %v348_v47 = vadd.f32 %v1409_v35, %v256_v45  ;;  %v250_v48 = vpop.xlane.xlu0 %249 }
  0x91   : > { %v346_v49 = vadd.f32 %v1409_v35, %v250_v48 }
  0x92   : > { %v1128_v50 = vpop.eup %1127  ;;  %v1088_v51 = vmul.f32 -1.442695, %v350_v46  ;;  %v1086_v54 = vmul.f32 -1.442695, %v348_v47 }
  0x93   : > { %v1130_v52 = vpop.eup %1129  ;;  %v1417_v53 = vadd.f32 1.0, %v1128_v50  ;;  %v1084_v57 = vmul.f32 -1.442695, %v346_v49 }
  0x94   : > { %v1132_v55 = vpop.eup %1131  ;;  %v1419_v56 = vadd.f32 1.0, %v1130_v52  ;;  %1133 = vpow2.f32 %v1088_v51 }
  0x95   : > { %1135 = vrcp.f32 %v1417_v53  ;;  %v1423_v58 = vadd.f32 1.0, %v1132_v55  ;;  %v574_v61 = vand.u32 2147483647, %v1417_v53  ;;  %v576_v62 = vand.u32 2147483648, %v1417_v53 }
  0x96   : > { %1137 = vrcp.f32 %v1419_v56  ;;  %v544_v0 = vand.u32 2147483647, %v1419_v56  ;;  %v546_v2 = vand.u32 2147483648, %v1419_v56  ;;  %vm570_vm2 = vweird.f32 %v1417_v53 }
  0x97   : > { %1139 = vpow2.f32 %v1086_v54  ;;  %v271_v59 = vpop.xlane.xlu2 %270  ;;  %v268_v60 = vpop.xlane.xlu1 %267  ;;  %vm540_vm3 = vweird.f32 %v1419_v56  ;;  %vm1437_vm4 = vcmp.eq.f32.partialorder %v574_v61, 8.507059e+37  ;;  %v577_v11 = vor.u32 1.1754944e-38, %v576_v62 }
  0x98   : > { %1141 = vpow2.f32 %v1084_v57  ;;  %v353_v63 = vadd.f32 %v1409_v35, %v271_v59  ;;  %v352_v5 = vadd.f32 %v1409_v35, %v268_v60  ;;  %v265_v13 = vpop.xlane.xlu0 %264  ;;  %vm1442_vm5 = vcmp.eq.f32.partialorder %v544_v0, 8.507059e+37 }
  0x99   : > { %1143 = vrcp.f32 %v1423_v58  ;;  %v547_v17 = vor.u32 1.1754944e-38, %v546_v2  ;;  %v514_v18 = vand.u32 2147483647, %v1423_v58  ;;  %vm510_vm6 = vweird.f32 %v1423_v58 }
  0x9a   : > { %v1134_v3 = vpop.eup %1133  ;;  %v1091_v4 = vmul.f32 -1.442695, %v353_v63  ;;  %v1090_v12 = vmul.f32 -1.442695, %v352_v5  ;;  %v516_v21 = vand.u32 2147483648, %v1423_v58  ;;  %v351_v26 = vadd.f32 %v1409_v35, %v265_v13 }
  0x9b   : > { %v1136_v6 = vpop.eup %1135  ;;  %v1434_v7 = vadd.f32 1.0, %v1134_v3  ;;  %vm1463_vm9 = vcmp.eq.f32.partialorder %v514_v18, 8.507059e+37 }
  0x9c   : > { %v1138_v8 = vpop.eup %1137  ;;  %v566_v9 = vmul.f32 %v1136_v6, %v1417_v53  ;;  %vm571_vm7 = vweird.f32 %v1136_v6  ;;  %v517_v37 = vor.u32 1.1754944e-38, %v516_v21  ;;  %v1089_v40 = vmul.f32 -1.442695, %v351_v26 }
  0x9d   : > { %v1140_v14 = vpop.eup %1139  ;;  %v536_v15 = vmul.f32 %v1138_v8, %v1419_v56  ;;  %1145 = vrcp.f32 %v1434_v7  ;;  %vm541_vm8 = vweird.f32 %v1138_v8  ;;  %v589_v31 = vand.u32 2147483647, %v1434_v7  ;;  %vm572_vm10 = vmor %vm570_vm2, %vm571_vm7 }
  0x9e   : > { %v1142_v19 = vpop.eup %1141  ;;  %v567_v20 = vsub.f32 1.0, %v566_v9  ;;  %v1450_v22 = vadd.f32 1.0, %v1140_v14  ;;  %1147 = vpow2.f32 %v1091_v4  ;;  %v591_v32 = vand.u32 2147483648, %v1434_v7  ;;  %vm542_vm12 = vmor %vm540_vm3, %vm541_vm8 }
  0x9f   : > { %v1144_v23 = vpop.eup %1143  ;;  %v537_v24 = vsub.f32 1.0, %v536_v15  ;;  %v1452_v25 = vadd.f32 1.0, %v1142_v19  ;;  %1149 = vpow2.f32 %v1090_v12  ;;  %v1455_v27 = vpop.xlane.xlu2 %279  ;;  %vm585_vm11 = vweird.f32 %v1434_v7 }
  0xa0   : > { %v568_v28 = vmul.f32 %v1136_v6, %v567_v20  ;;  %v506_v29 = vmul.f32 %v1144_v23, %v1423_v58  ;;  %1151 = vrcp.f32 %v1450_v22  ;;  %v1461_v33 = vpop.xlane.xlu1 %276  ;;  %vm511_vm13 = vweird.f32 %v1144_v23  ;;  %v274_v59 = vpop.xlane.xlu0 %273 }
  0xa1   : > { %v538_v30 = vmul.f32 %v1138_v8, %v537_v24  ;;  %1153 = vrcp.f32 %v1452_v25  ;;  %vm1484_vm14 = vcmp.eq.f32.partialorder %v589_v31, 8.507059e+37  ;;  %v592_v49 = vor.u32 1.1754944e-38, %v591_v32  ;;  %vm512_vm15 = vmor %vm510_vm6, %vm511_vm13 }
  0xa2   : > { %v569_v34 = vadd.f32 %v1136_v6, %v568_v28  ;;  %v507_v1 = vsub.f32 1.0, %v506_v29  ;;  %v559_v53 = vand.u32 2147483647, %v1450_v22  ;;  %v561_v55 = vand.u32 2147483648, %v1450_v22 }
  0xa3   : > { %v1146_v38 = vpop.eup %1145  ;;  %v539_v39 = vadd.f32 %v1138_v8, %v538_v30  ;;  %1155 = vpow2.f32 %v1089_v40  ;;  %v529_v2 = vand.u32 2147483647, %v1452_v25  ;;  %v531_v3 = vand.u32 2147483648, %v1452_v25 }
  0xa4   : > { %v1148_v41 = vpop.eup %1147  ;;  %v573_v42 = vsel %vm572_vm10, %v1136_v6, %v569_v34  ;;  %v508_v43 = vmul.f32 %v1144_v23, %v507_v1  ;;  %v581_v44 = vmul.f32 %v1146_v38, %v1434_v7  ;;  %vm586_vm0 = vweird.f32 %v1146_v38 }
  0xa5   : > { %v1150_v45 = vpop.eup %1149  ;;  %v578_v46 = vsel %vm1437_vm4, %v577_v11, %v573_v42  ;;  %v543_v47 = vsel %vm542_vm12, %v1138_v8, %v539_v39  ;;  %v1498_v56 = vadd.f32 1.0, %v1148_v41  ;;  %vm555_vm2 = vweird.f32 %v1450_v22  ;;  %vm587_vm3 = vmor %vm585_vm11, %vm586_vm0 }
  0xa6   : > { %990 = vst.msk [vmem:[%s1472_s24 + $0x20] sm:$0xff] %vm985_vm1, %v578_v46  ;;  %v548_v50 = vsel %vm1442_vm5, %v547_v17, %v543_v47  ;;  %v509_v51 = vadd.f32 %v1144_v23, %v508_v43  ;;  %v582_v52 = vsub.f32 1.0, %v581_v44  ;;  %v1152_v54 = vpop.eup %1151  ;;  %v1500_v57 = vadd.f32 1.0, %v1150_v45 }
  0xa7   : > { %988 = vst.msk [vmem:[%s1472_s24 + $0x10] sm:$0xff] %vm985_vm1, %v548_v50  ;;  %v1502_v60 = vpop.xlane.xlu2 %288  ;;  %v551_v63 = vmul.f32 %v1152_v54, %v1450_v22  ;;  %v1154_v0 = vpop.eup %1153  ;;  %1157 = vrcp.f32 %v1498_v56  ;;  %vm1516_vm4 = vcmp.eq.f32.partialorder %v559_v53, 8.507059e+37  ;;  %v562_v9 = vor.u32 1.1754944e-38, %v561_v55 }
  0xa8   : > { %v513_v61 = vsel %vm512_vm15, %v1144_v23, %v509_v51  ;;  %v583_v62 = vmul.f32 %v1146_v38, %v582_v52  ;;  %v521_v6 = vmul.f32 %v1154_v0, %v1452_v25  ;;  %vm525_vm5 = vweird.f32 %v1452_v25  ;;  %v286_v10 = vpop.xlane.xlu1 %285 }
  0xa9   : > { %v518_v58 = vsel %vm1463_vm9, %v517_v37, %v513_v61  ;;  %v552_v5 = vsub.f32 1.0, %v551_v63  ;;  %1159 = vrcp.f32 %v1500_v57  ;;  %vm556_vm6 = vweird.f32 %v1152_v54  ;;  %v1156_v14 = vpop.eup %1155 }
  0xaa   : > { %986 = vst.msk [vmem:[%s1472_s24] sm:$0xff] %vm985_vm1, %v518_v58  ;;  %v584_v4 = vadd.f32 %v1146_v38, %v583_v62  ;;  %v522_v13 = vsub.f32 1.0, %v521_v6  ;;  %vm526_vm7 = vweird.f32 %v1154_v0  ;;  %vm1524_vm8 = vcmp.eq.f32.partialorder %v529_v2, 8.507059e+37  ;;  %vm557_vm9 = vmor %vm555_vm2, %vm556_vm6 }
  0xab   : > { %v553_v12 = vmul.f32 %v1152_v54, %v552_v5  ;;  %v532_v16 = vor.u32 1.1754944e-38, %v531_v3  ;;  %v634_v19 = vand.u32 2147483647, %v1498_v56  ;;  %v1531_v20 = vadd.f32 1.0, %v1156_v14  ;;  %vm527_vm11 = vmor %vm525_vm5, %vm526_vm7 }
  0xac   : > { %v588_v11 = vsel %vm587_vm3, %v1146_v38, %v584_v4  ;;  %v523_v18 = vmul.f32 %v1154_v0, %v522_v13  ;;  %vm630_vm10 = vweird.f32 %v1498_v56  ;;  %v636_v23 = vand.u32 2147483648, %v1498_v56 }
  0xad   : > { %v593_v7 = vsel %vm1484_vm14, %v592_v49, %v588_v11  ;;  %v554_v17 = vadd.f32 %v1152_v54, %v553_v12  ;;  %v1158_v21 = vpop.eup %1157  ;;  %v356_v24 = vadd.f32 %v1409_v35, %v1455_v27  ;;  %v355_v26 = vadd.f32 %v1409_v35, %v1461_v33  ;;  %v283_v33 = vpop.xlane.xlu0 %282 }
  0xae   : > { %991 = vst.msk [vmem:[%s1472_s24 + $0x28] sm:$0xff] %vm985_vm1, %v593_v7  ;;  %v524_v29 = vadd.f32 %v1154_v0, %v523_v18  ;;  %v626_v30 = vmul.f32 %v1158_v21, %v1498_v56  ;;  %v354_v31 = vadd.f32 %v1409_v35, %v274_v59  ;;  %vm615_vm12 = vweird.f32 %v1500_v57 }
  0xaf   : > { %v558_v28 = vsel %vm557_vm9, %v1152_v54, %v554_v17  ;;  %v1160_v32 = vpop.eup %1159  ;;  %v619_v27 = vand.u32 2147483647, %v1500_v57  ;;  %1161 = vrcp.f32 %v1531_v20  ;;  %v298_v34 = vpop.xlane.xlu2 %297  ;;  %vm1553_vm13 = vcmp.eq.f32.partialorder %v634_v19, 8.507059e+37 }
  0xb0   : > { %v563_v22 = vsel %vm1516_vm4, %v562_v9, %v558_v28  ;;  %v528_v1 = vsel %vm527_vm11, %v1154_v0, %v524_v29  ;;  %v627_v36 = vsub.f32 1.0, %v626_v30  ;;  %v611_v25 = vmul.f32 %v1160_v32, %v1500_v57  ;;  %v295_v47 = vpop.xlane.xlu1 %294 }
  0xb1   : > { %989 = vst.msk [vmem:[%s1472_s24 + $0x18] sm:$0xff] %vm985_vm1, %v563_v22  ;;  %v533_v38 = vsel %vm1524_vm8, %v532_v16, %v528_v1  ;;  %vm631_vm14 = vweird.f32 %v1158_v21  ;;  %v621_v39 = vand.u32 2147483648, %v1500_v57  ;;  %v1094_v40 = vmul.f32 -1.442695, %v356_v24 }
  0xb2   : > { %987 = vst.msk [vmem:[%s1472_s24 + $0x8] sm:$0xff] %vm985_vm1, %v533_v38  ;;  %v628_v41 = vmul.f32 %v1158_v21, %v627_v36  ;;  %v612_v42 = vsub.f32 1.0, %v611_v25  ;;  %v1093_v43 = vmul.f32 -1.442695, %v355_v26  ;;  %v1092_v44 = vmul.f32 -1.442695, %v354_v31  ;;  %vm632_vm0 = vmor %vm630_vm10, %vm631_vm14 }
  0xb3   : > { %vm616_vm15 = vweird.f32 %v1160_v32  ;;  %1163 = vpow2.f32 %v1094_v40  ;;  %v359_v45 = vadd.f32 %v1409_v35, %v1502_v60  ;;  %v358_v46 = vadd.f32 %v1409_v35, %v286_v10 }
  0xb4   : > { %v629_v48 = vadd.f32 %v1158_v21, %v628_v41  ;;  %v613_v49 = vmul.f32 %v1160_v32, %v612_v42  ;;  %1165 = vpow2.f32 %v1093_v43  ;;  %v357_v50 = vadd.f32 %v1409_v35, %v283_v33  ;;  %vm617_vm2 = vmor %vm615_vm12, %vm616_vm15 }
  0xb5   : > { %v1162_v51 = vpop.eup %1161  ;;  %v637_v52 = vor.u32 1.1754944e-38, %v636_v23  ;;  %1167 = vpow2.f32 %v1092_v44  ;;  %v1097_v53 = vmul.f32 -1.442695, %v359_v45  ;;  %v1096_v54 = vmul.f32 -1.442695, %v358_v46  ;;  %v292_v6 = vpop.xlane.xlu0 %291 }
  0xb6   : > { %v633_v55 = vsel %vm632_vm0, %v1158_v21, %v629_v48  ;;  %v614_v59 = vadd.f32 %v1160_v32, %v613_v49  ;;  %v596_v60 = vmul.f32 %v1162_v51, %v1531_v20  ;;  %v362_v61 = vadd.f32 %v1409_v35, %v298_v34 }
  0xb7   : > { %v638_v62 = vsel %vm1553_vm13, %v637_v52, %v633_v55  ;;  %v622_v63 = vor.u32 1.1754944e-38, %v621_v39  ;;  %1169 = vpow2.f32 %v1097_v53  ;;  %v1095_v56 = vmul.f32 -1.442695, %v357_v50  ;;  %v307_v57 = vpop.xlane.xlu2 %306 }
  0xb8   : > { %994 = vst.msk [vmem:[%s1472_s24 + $0x40] sm:$0xff] %vm985_vm1, %v638_v62  ;;  %v618_v0 = vsel %vm617_vm2, %v1160_v32, %v614_v59  ;;  %vm620_vm3 = vcmp.eq.f32.partialorder %v619_v27, 8.507059e+37  ;;  %v597_v58 = vsub.f32 1.0, %v596_v60  ;;  %1171 = vpow2.f32 %v1096_v54  ;;  %v304_v19 = vpop.xlane.xlu1 %303 }
  0xb9   : > { %v1164_v2 = vpop.eup %1163  ;;  %v623_v3 = vsel %vm620_vm3, %v622_v63, %v618_v0  ;;  %v604_v4 = vand.u32 2147483647, %v1531_v20  ;;  %v606_v5 = vand.u32 2147483648, %v1531_v20  ;;  %1173 = vpow2.f32 %v1095_v56 }
  0xba   : > { %v1166_v8 = vpop.eup %1165  ;;  %993 = vst.msk [vmem:[%s1472_s24 + $0x38] sm:$0xff] %vm985_vm1, %v623_v3  ;;  %v598_v9 = vmul.f32 %v1162_v51, %v597_v58  ;;  %vm601_vm4 = vweird.f32 %v1162_v51  ;;  %v1583_v10 = vadd.f32 1.0, %v1164_v2  ;;  %v1100_v11 = vmul.f32 -1.442695, %v362_v61 }
  0xbb   : > { %v1168_v12 = vpop.eup %1167  ;;  %vm600_vm5 = vweird.f32 %v1531_v20  ;;  %v1586_v13 = vadd.f32 1.0, %v1166_v8  ;;  %v361_v14 = vadd.f32 %v1409_v35, %v295_v47  ;;  %v360_v15 = vadd.f32 %v1409_v35, %v292_v6 }
  0xbc   : > { %v599_v7 = vadd.f32 %v1162_v51, %v598_v9  ;;  %1175 = vrcp.f32 %v1583_v10  ;;  %v365_v16 = vadd.f32 %v1409_v35, %v307_v57  ;;  %vm602_vm6 = vmor %vm600_vm5, %vm601_vm4  ;;  %v607_v18 = vor.u32 1.1754944e-38, %v606_v5 }
  0xbd   : > { %v1170_v17 = vpop.eup %1169  ;;  %1177 = vrcp.f32 %v1586_v13  ;;  %vm605_vm7 = vcmp.eq.f32.partialorder %v604_v4, 8.507059e+37  ;;  %v1593_v23 = vadd.f32 1.0, %v1168_v12  ;;  %v679_v28 = vand.u32 2147483647, %v1583_v10 }
  0xbe   : > { %v1172_v21 = vpop.eup %1171  ;;  %v603_v20 = vsel %vm602_vm6, %v1162_v51, %v599_v7  ;;  %1179 = vpow2.f32 %v1100_v11  ;;  %v1596_v29 = vadd.f32 1.0, %v1170_v17  ;;  %v1099_v30 = vmul.f32 -1.442695, %v361_v14  ;;  %v301_v17 = vpop.xlane.xlu0 %300 }
  0xbf   : > { %v1174_v24 = vpop.eup %1173  ;;  %v608_v26 = vsel %vm605_vm7, %v607_v18, %v603_v20  ;;  %1181 = vrcp.f32 %v1593_v23  ;;  %v1601_v31 = vmul.f32 -1.442695, %v360_v15  ;;  %v1603_v32 = vmul.f32 -1.442695, %v365_v16 }
  0xc0   : > { %992 = vst.msk [vmem:[%s1472_s24 + $0x30] sm:$0xff] %vm985_vm1, %v608_v26  ;;  %v1606_v22 = vadd.f32 %v1409_v35, %v304_v19  ;;  %v681_v27 = vand.u32 2147483648, %v1583_v10  ;;  %v664_v33 = vand.u32 2147483647, %v1586_v13  ;;  %v666_v34 = vand.u32 2147483648, %v1586_v13 }
  0xc1   : > { %1183 = vrcp.f32 %v1596_v29  ;;  %vm675_vm8 = vweird.f32 %v1583_v10  ;;  %vm660_vm9 = vweird.f32 %v1586_v13  ;;  %v1614_v36 = vadd.f32 1.0, %v1172_v21 }
  0xc2   : > { %v1176_v1 = vpop.eup %1175  ;;  %v1616_v37 = vadd.f32 1.0, %v1174_v24  ;;  %vm1619_vm10 = vcmp.eq.f32.partialorder %v679_v28, 8.507059e+37  ;;  %v649_v40 = vand.u32 2147483647, %v1593_v23  ;;  %v651_v41 = vand.u32 2147483648, %v1593_v23 }
  0xc3   : > { %v1178_v25 = vpop.eup %1177  ;;  %v671_v38 = vmul.f32 %v1176_v1, %v1583_v10  ;;  %v724_v44 = vand.u32 2147483647, %v1596_v29  ;;  %v726_v45 = vand.u32 2147483648, %v1596_v29  ;;  %1185 = vrcp.f32 %v1614_v36 }
  0xc4   : > { %v1180_v42 = vpop.eup %1179  ;;  %v656_v43 = vmul.f32 %v1178_v25, %v1586_v13  ;;  %v682_v47 = vor.u32 1.1754944e-38, %v681_v27  ;;  %vm1629_vm11 = vcmp.eq.f32.partialorder %v664_v33, 8.507059e+37  ;;  %v667_v49 = vor.u32 1.1754944e-38, %v666_v34  ;;  %v316_v33 = vpop.xlane.xlu2 %315 }
  0xc5   : > { %v672_v46 = vsub.f32 1.0, %v671_v38  ;;  %v1182_v50 = vpop.eup %1181  ;;  %vm645_vm12 = vweird.f32 %v1593_v23  ;;  %vm720_vm13 = vweird.f32 %v1596_v29  ;;  %1187 = vrcp.f32 %v1616_v37 }
  0xc6   : > { %v657_v51 = vsub.f32 1.0, %v656_v43  ;;  %vm676_vm14 = vweird.f32 %v1176_v1  ;;  %v641_v54 = vmul.f32 %v1182_v50, %v1593_v23  ;;  %vm1637_vm15 = vcmp.eq.f32.partialorder %v649_v40, 8.507059e+37 }
  0xc7   : > { %v1184_v52 = vpop.eup %1183  ;;  %v673_v53 = vmul.f32 %v1176_v1, %v672_v46  ;;  %v652_v59 = vor.u32 1.1754944e-38, %v651_v41  ;;  %vm661_vm0 = vweird.f32 %v1178_v25  ;;  %vm1642_vm2 = vcmp.eq.f32.partialorder %v724_v44, 8.507059e+37  ;;  %vm677_vm4 = vmor %vm675_vm8, %vm676_vm14  ;;  %v313_v46 = vpop.xlane.xlu1 %312 }
  0xc8   : > { %v658_v60 = vmul.f32 %v1178_v25, %v657_v51  ;;  %v716_v61 = vmul.f32 %v1184_v52, %v1596_v29  ;;  %v727_v63 = vor.u32 1.1754944e-38, %v726_v45  ;;  %v642_v0 = vsub.f32 1.0, %v641_v54  ;;  %vm662_vm5 = vmor %vm660_vm9, %vm661_vm0 }
  0xc9   : > { %v674_v56 = vadd.f32 %v1176_v1, %v673_v53  ;;  %vm705_vm3 = vweird.f32 %v1614_v36  ;;  %v709_v58 = vand.u32 2147483647, %v1614_v36  ;;  %v711_v2 = vand.u32 2147483648, %v1614_v36  ;;  %v1186_v3 = vpop.eup %1185  ;;  %v310_v53 = vpop.xlane.xlu0 %309 }
  0xca   : > { %v659_v4 = vadd.f32 %v1178_v25, %v658_v60  ;;  %v717_v5 = vsub.f32 1.0, %v716_v61  ;;  %v1652_v6 = vadd.f32 1.0, %v1180_v42  ;;  %1189 = vpow2.f32 %v1099_v30 }
  0xcb   : > { %v678_v57 = vsel %vm677_vm4, %v1176_v1, %v674_v56  ;;  %v643_v8 = vmul.f32 %v1182_v50, %v642_v0  ;;  %vm646_vm6 = vweird.f32 %v1182_v50  ;;  %v701_v9 = vmul.f32 %v1186_v3, %v1614_v36  ;;  %v1188_v10 = vpop.eup %1187 }
  0xcc   : > { %vm690_vm7 = vweird.f32 %v1616_v37  ;;  %v683_v11 = vsel %vm1619_vm10, %v682_v47, %v678_v57  ;;  %v663_v12 = vsel %vm662_vm5, %v1178_v25, %v659_v4  ;;  %v718_v14 = vmul.f32 %v1184_v52, %v717_v5  ;;  %vm647_vm9 = vmor %vm645_vm12, %vm646_vm6 }
  0xcd   : > { %vm721_vm8 = vweird.f32 %v1184_v52  ;;  %997 = vst.msk [vmem:[%s1472_s24 + $0x58] sm:$0xff] %vm985_vm1, %v683_v11  ;;  %v668_v13 = vsel %vm1629_vm11, %v667_v49, %v663_v12  ;;  %v644_v7 = vadd.f32 %v1182_v50, %v643_v8  ;;  %v702_v15 = vsub.f32 1.0, %v701_v9 }
  0xce   : > { %v686_v16 = vmul.f32 %v1188_v10, %v1616_v37  ;;  %996 = vst.msk [vmem:[%s1472_s24 + $0x50] sm:$0xff] %vm985_vm1, %v668_v13  ;;  %v719_v18 = vadd.f32 %v1184_v52, %v718_v14  ;;  %vm1671_vm10 = vcmp.eq.f32.partialorder %v709_v58, 8.507059e+37  ;;  %v694_v21 = vand.u32 2147483647, %v1616_v37  ;;  %vm722_vm11 = vmor %vm720_vm13, %vm721_vm8 }
  0xcf   : > { %1191 = vrcp.f32 %v1652_v6  ;;  %v648_v20 = vsel %vm647_vm9, %v1182_v50, %v644_v7  ;;  %v703_v24 = vmul.f32 %v1186_v3, %v702_v15  ;;  %vm706_vm14 = vweird.f32 %v1186_v3 }
  0xd0   : > { %v687_v26 = vsub.f32 1.0, %v686_v16  ;;  %v1190_v23 = vpop.eup %1189  ;;  %v653_v28 = vsel %vm1637_vm15, %v652_v59, %v648_v20  ;;  %v723_v30 = vsel %vm722_vm11, %v1184_v52, %v719_v18  ;;  %v696_v27 = vand.u32 2147483648, %v1616_v37  ;;  %vm707_vm13 = vmor %vm705_vm3, %vm706_vm14 }
  0xd1   : > { %1193 = vpow2.f32 %v1601_v31  ;;  %995 = vst.msk [vmem:[%s1472_s24 + $0x48] sm:$0xff] %vm985_vm1, %v653_v28  ;;  %v728_v29 = vsel %vm1642_vm2, %v727_v63, %v723_v30  ;;  %v704_v34 = vadd.f32 %v1186_v3, %v703_v24  ;;  %vm691_vm12 = vweird.f32 %v1188_v10 }
  0xd2   : > { %v688_v1 = vmul.f32 %v1188_v10, %v687_v26  ;;  %1000 = vst.msk [vmem:[%s1472_s24 + $0x70] sm:$0xff] %vm985_vm1, %v728_v29  ;;  %v712_v25 = vor.u32 1.1754944e-38, %v711_v2  ;;  %v1691_v38 = vadd.f32 1.0, %v1190_v23  ;;  %1195 = vpow2.f32 %v1603_v32  ;;  %vm692_vm15 = vmor %vm690_vm7, %vm691_vm12  ;;  %v325_v2 = vpop.xlane.xlu2 %324  ;;  %v1750_v23 = vpop.xlane.xlu1 %321 }
  0xd3   : > { %v1102_v31 = vmul.f32 -1.442695, %v1606_v22  ;;  %v708_v39 = vsel %vm707_vm13, %v1186_v3, %v704_v34  ;;  %v363_v41 = vadd.f32 %v1409_v35, %v301_v17  ;;  %v368_v42 = vadd.f32 %v1409_v35, %v316_v33 }
  0xd4   : > { %v689_v40 = vadd.f32 %v1188_v10, %v688_v1  ;;  %v713_v44 = vsel %vm1671_vm10, %v712_v25, %v708_v39  ;;  %v697_v36 = vor.u32 1.1754944e-38, %v696_v27  ;;  %1197 = vrcp.f32 %v1691_v38 }
  0xd5   : > { %v1192_v43 = vpop.eup %1191  ;;  %999 = vst.msk [vmem:[%s1472_s24 + $0x68] sm:$0xff] %vm985_vm1, %v713_v44  ;;  %vm695_vm0 = vcmp.eq.f32.partialorder %v694_v21, 8.507059e+37  ;;  %v769_v45 = vand.u32 2147483647, %v1652_v6  ;;  %vm765_vm2 = vweird.f32 %v1652_v6  ;;  %1199 = vpow2.f32 %v1102_v31 }
  0xd6   : > { %v693_v32 = vsel %vm692_vm15, %v1188_v10, %v689_v40  ;;  %v761_v22 = vmul.f32 %v1192_v43, %v1652_v6  ;;  %v1101_v49 = vmul.f32 -1.442695, %v363_v41  ;;  %v771_v50 = vand.u32 2147483648, %v1652_v6 }
  0xd7   : > { %v1194_v47 = vpop.eup %1193  ;;  %v698_v48 = vsel %vm695_vm0, %v697_v36, %v693_v32  ;;  %v1106_v52 = vmul.f32 -1.442695, %v368_v42  ;;  %v754_v55 = vand.u32 2147483647, %v1691_v38  ;;  %v756_v59 = vand.u32 2147483648, %v1691_v38 }
  0xd8   : > { %998 = vst.msk [vmem:[%s1472_s24 + $0x60] sm:$0xff] %vm985_vm1, %v698_v48  ;;  %v762_v37 = vsub.f32 1.0, %v761_v22  ;;  %v1710_v51 = vadd.f32 1.0, %v1194_v47  ;;  %v1196_v54 = vpop.eup %1195  ;;  %1201 = vpow2.f32 %v1101_v49  ;;  %v367_v60 = vadd.f32 %v1409_v35, %v313_v46 }
  0xd9   : > { %vm766_vm3 = vweird.f32 %v1192_v43  ;;  %vm1715_vm4 = vcmp.eq.f32.partialorder %v769_v45, 8.507059e+37  ;;  %v1720_v56 = vadd.f32 1.0, %v1196_v54  ;;  %v366_v58 = vadd.f32 %v1409_v35, %v310_v53 }
  0xda   : > { %v763_v61 = vmul.f32 %v1192_v43, %v762_v37  ;;  %1203 = vrcp.f32 %v1710_v51  ;;  %v1198_v63 = vpop.eup %1197  ;;  %v1105_v0 = vmul.f32 -1.442695, %v367_v60  ;;  %v772_v4 = vor.u32 1.1754944e-38, %v771_v50  ;;  %vm767_vm6 = vmor %vm765_vm2, %vm766_vm3  ;;  %v319_v50 = vpop.xlane.xlu0 %318 }
  0xdb   : > { %1205 = vpow2.f32 %v1106_v52  ;;  %v746_v5 = vmul.f32 %v1198_v63, %v1691_v38  ;;  %vm750_vm5 = vweird.f32 %v1691_v38  ;;  %v1200_v57 = vpop.eup %1199  ;;  %vm1727_vm7 = vcmp.eq.f32.partialorder %v754_v55, 8.507059e+37  ;;  %v334_v20 = vpop.xlane.xlu2 %333 }
  0xdc   : > { %v764_v3 = vadd.f32 %v1192_v43, %v763_v61  ;;  %v757_v9 = vor.u32 1.1754944e-38, %v756_v59  ;;  %v739_v10 = vand.u32 2147483647, %v1710_v51  ;;  %1207 = vrcp.f32 %v1720_v56 }
  0xdd   : > { %v747_v12 = vsub.f32 1.0, %v746_v5  ;;  %v1733_v14 = vadd.f32 1.0, %v1200_v57  ;;  %v371_v13 = vadd.f32 %v1409_v35, %v325_v2  ;;  %v741_v15 = vand.u32 2147483648, %v1710_v51 }
  0xde   : > { %v768_v11 = vsel %vm767_vm6, %v1192_v43, %v764_v3  ;;  %v1202_v7 = vpop.eup %1201  ;;  %1209 = vpow2.f32 %v1105_v0  ;;  %v1104_v16 = vmul.f32 -1.442695, %v366_v58  ;;  %vm751_vm8 = vweird.f32 %v1198_v63  ;;  %v331_v58 = vpop.xlane.xlu1 %330 }
  0xdf   : > { %v773_v6 = vsel %vm1715_vm4, %v772_v4, %v768_v11  ;;  %v748_v18 = vmul.f32 %v1198_v63, %v747_v12  ;;  %vm735_vm9 = vweird.f32 %v1710_v51  ;;  %1211 = vrcp.f32 %v1733_v14  ;;  %vm752_vm11 = vmor %vm750_vm5, %vm751_vm8 }
  0xe0   : > { %v1204_v17 = vpop.eup %1203  ;;  %1003 = vst.msk [vmem:[%s1472_s24 + $0x88] sm:$0xff] %vm985_vm1, %v773_v6  ;;  %vm1744_vm10 = vcmp.eq.f32.partialorder %v739_v10, 8.507059e+37  ;;  %v814_v24 = vand.u32 2147483647, %v1720_v56  ;;  %v816_v26 = vand.u32 2147483648, %v1720_v56  ;;  %v1752_v30 = vadd.f32 1.0, %v1202_v7 }
  0xe1   : > { %v1206_v19 = vpop.eup %1205  ;;  %v731_v21 = vmul.f32 %v1204_v17, %v1710_v51  ;;  %v749_v28 = vadd.f32 %v1198_v63, %v748_v18  ;;  %1213 = vpow2.f32 %v1104_v16  ;;  %v742_v34 = vor.u32 1.1754944e-38, %v741_v15 }
  0xe2   : > { %v1754_v27 = vadd.f32 1.0, %v1206_v19  ;;  %v1208_v33 = vpop.eup %1207  ;;  %v799_v1 = vand.u32 2147483647, %v1733_v14  ;;  %v801_v25 = vand.u32 2147483648, %v1733_v14  ;;  %vm810_vm14 = vweird.f32 %v1720_v56 }
  0xe3   : > { %v732_v29 = vsub.f32 1.0, %v731_v21  ;;  %v753_v31 = vsel %vm752_vm11, %v1198_v63, %v749_v28  ;;  %v806_v39 = vmul.f32 %v1208_v33, %v1720_v56  ;;  %1215 = vrcp.f32 %v1752_v30 }
  0xe4   : > { %v1210_v40 = vpop.eup %1209  ;;  %v758_v41 = vsel %vm1727_vm7, %v757_v9, %v753_v31  ;;  %vm736_vm12 = vweird.f32 %v1204_v17  ;;  %vm1765_vm13 = vcmp.eq.f32.partialorder %v814_v24, 8.507059e+37  ;;  %v817_v36 = vor.u32 1.1754944e-38, %v816_v26  ;;  %v1255_v31 = vld [vmem:[#allocation2] ss:$0 sm:$0xff] }
  0xe5   : > { %v733_v38 = vmul.f32 %v1204_v17, %v732_v29  ;;  %v1212_v43 = vpop.eup %1211  ;;  %1002 = vst.msk [vmem:[%s1472_s24 + $0x80] sm:$0xff] %vm985_vm1, %v758_v41  ;;  %v807_v44 = vsub.f32 1.0, %v806_v39  ;;  %vm795_vm15 = vweird.f32 %v1733_v14  ;;  %1217 = vrcp.f32 %v1754_v27  ;;  %vm737_vm2 = vmor %vm735_vm9, %vm736_vm12 }
  0xe6   : > { %v791_v22 = vmul.f32 %v1212_v43, %v1733_v14  ;;  %vm1774_vm0 = vcmp.eq.f32.partialorder %v799_v1, 8.507059e+37  ;;  %v802_v46 = vor.u32 1.1754944e-38, %v801_v25  ;;  %vm811_vm3 = vweird.f32 %v1208_v33  ;;  %v340_v42 = vpop.xlane.xlu1 %339 }
  0xe7   : > { %v734_v32 = vadd.f32 %v1204_v17, %v733_v38  ;;  %v1214_v47 = vpop.eup %1213  ;;  %v808_v48 = vmul.f32 %v1208_v33, %v807_v44  ;;  %v784_v49 = vand.u32 2147483647, %v1752_v30  ;;  %v1109_v37 = vmul.f32 -1.442695, %v371_v13  ;;  %vm812_vm5 = vmor %vm810_vm14, %vm811_vm3 }
  0xe8   : > { %v792_v53 = vsub.f32 1.0, %v791_v22  ;;  %vm780_vm4 = vweird.f32 %v1752_v30  ;;  %v786_v54 = vand.u32 2147483648, %v1752_v30  ;;  %v1783_v55 = vadd.f32 1.0, %v1210_v40 }
  0xe9   : > { %v738_v52 = vsel %vm737_vm2, %v1204_v17, %v734_v32  ;;  %v1216_v59 = vpop.eup %1215  ;;  %v809_v60 = vadd.f32 %v1208_v33, %v808_v48  ;;  %v859_v61 = vand.u32 2147483647, %v1754_v27  ;;  %v1788_v62 = vadd.f32 1.0, %v1214_v47 }
  0xea   : > { %v743_v51 = vsel %vm1744_vm10, %v742_v34, %v738_v52  ;;  %v793_v63 = vmul.f32 %v1212_v43, %v792_v53  ;;  %vm796_vm6 = vweird.f32 %v1212_v43  ;;  %v776_v0 = vmul.f32 %v1216_v59, %v1752_v30 }
  0xeb   : > { %1001 = vst.msk [vmem:[%s1472_s24 + $0x78] sm:$0xff] %vm985_vm1, %v743_v51  ;;  %1219 = vrcp.f32 %v1783_v55  ;;  %v1218_v2 = vpop.eup %1217  ;;  %v813_v3 = vsel %vm812_vm5, %v1208_v33, %v809_v60  ;;  %vm1797_vm7 = vcmp.eq.f32.partialorder %v784_v49, 8.507059e+37  ;;  %vm855_vm8 = vweird.f32 %v1754_v27  ;;  %vm797_vm9 = vmor %vm795_vm15, %vm796_vm6  ;;  %v328_v33 = vpop.xlane.xlu0 %327 }
  0xec   : > { %v861_v5 = vand.u32 2147483648, %v1754_v27  ;;  %v818_v56 = vsel %vm1765_vm13, %v817_v36, %v813_v3  ;;  %v794_v57 = vadd.f32 %v1212_v43, %v793_v63  ;;  %v777_v8 = vsub.f32 1.0, %v776_v0 }
  0xed   : > { %v851_v9 = vmul.f32 %v1218_v2, %v1754_v27  ;;  %1006 = vst.msk [vmem:[%s1472_s24 + $0xa0] sm:$0xff] %vm985_vm1, %v818_v56  ;;  %v787_v10 = vor.u32 1.1754944e-38, %v786_v54  ;;  %vm1810_vm10 = vcmp.eq.f32.partialorder %v859_v61, 8.507059e+37  ;;  %v846_v12 = vand.u32 2147483648, %v1783_v55 }
  0xee   : > { %1221 = vrcp.f32 %v1788_v62  ;;  %v798_v13 = vsel %vm797_vm9, %v1212_v43, %v794_v57  ;;  %v778_v7 = vmul.f32 %v1216_v59, %v777_v8  ;;  %vm781_vm11 = vweird.f32 %v1216_v59 }
  0xef   : > { %v852_v6 = vsub.f32 1.0, %v851_v9  ;;  %v803_v15 = vsel %vm1774_vm0, %v802_v46, %v798_v13  ;;  %vm856_vm14 = vweird.f32 %v1218_v2  ;;  %v862_v16 = vor.u32 1.1754944e-38, %v861_v5  ;;  %vm782_vm12 = vmor %vm780_vm4, %vm781_vm11 }
  0xf0   : > { %1223 = vpow2.f32 %v1109_v37  ;;  %1005 = vst.msk [vmem:[%s1472_s24 + $0x98] sm:$0xff] %vm985_vm1, %v803_v15  ;;  %v779_v17 = vadd.f32 %v1216_v59, %v778_v7  ;;  %v370_v19 = vadd.f32 %v1409_v35, %v1750_v23  ;;  %v369_v21 = vadd.f32 %v1409_v35, %v319_v50  ;;  %vm857_vm15 = vmor %vm855_vm8, %vm856_vm14 }
  0xf1   : > { %v1220_v14 = vpop.eup %1219  ;;  %v853_v18 = vmul.f32 %v1218_v2, %v852_v6  ;;  %vm840_vm13 = vweird.f32 %v1783_v55  ;;  %v844_v26 = vand.u32 2147483647, %v1783_v55  ;;  %v847_v28 = vor.u32 1.1754944e-38, %v846_v12 }
  0xf2   : > { %v836_v24 = vmul.f32 %v1220_v14, %v1783_v55  ;;  %v783_v29 = vsel %vm782_vm12, %v1216_v59, %v779_v17  ;;  %v1108_v1 = vmul.f32 -1.442695, %v370_v19  ;;  %v1107_v25 = vmul.f32 -1.442695, %v369_v21 }
  0xf3   : > { %v854_v34 = vadd.f32 %v1218_v2, %v853_v18  ;;  %v788_v35 = vsel %vm1797_vm7, %v787_v10, %v783_v29  ;;  %v374_v39 = vadd.f32 %v1255_v31, %v334_v20  ;;  %v373_v40 = vadd.f32 %v1255_v31, %v331_v58  ;;  %v337_v0 = vpop.xlane.xlu0 %336 }
  0xf4   : > { %v1222_v23 = vpop.eup %1221  ;;  %v837_v30 = vsub.f32 1.0, %v836_v24  ;;  %1004 = vst.msk [vmem:[%s1472_s24 + $0x90] sm:$0xff] %vm985_vm1, %v788_v35  ;;  %vm841_vm0 = vweird.f32 %v1220_v14  ;;  %1225 = vpow2.f32 %v1108_v1  ;;  %v372_v46 = vadd.f32 %v1255_v31, %v328_v33 }
  0xf5   : > { %v858_v41 = vsel %vm857_vm15, %v1218_v2, %v854_v34  ;;  %v821_v38 = vmul.f32 %v1222_v23, %v1788_v62  ;;  %1227 = vpow2.f32 %v1107_v25  ;;  %v1112_v27 = vmul.f32 -1.442695, %v374_v39  ;;  %vm842_vm2 = vmor %vm840_vm13, %vm841_vm0 }
  0xf6   : > { %v1224_v43 = vpop.eup %1223  ;;  %v863_v44 = vsel %vm1810_vm10, %v862_v16, %v858_v41  ;;  %v838_v36 = vmul.f32 %v1220_v14, %v837_v30  ;;  %v1111_v45 = vmul.f32 -1.442695, %v373_v40  ;;  %v831_v48 = vand.u32 2147483648, %v1788_v62 }
  0xf7   : > { %1009 = vst.msk [vmem:[%s1472_s24 + $0xb8] sm:$0xff] %vm985_vm1, %v863_v44  ;;  %v822_v32 = vsub.f32 1.0, %v821_v38  ;;  %v1840_v22 = vadd.f32 1.0, %v1224_v43  ;;  %1229 = vpow2.f32 %v1112_v27  ;;  %v376_v49 = vadd.f32 %v1255_v31, %v340_v42 }
  0xf8   : > { %v839_v47 = vadd.f32 %v1220_v14, %v838_v36  ;;  %vm826_vm3 = vweird.f32 %v1222_v23  ;;  %v829_v50 = vand.u32 2147483647, %v1788_v62  ;;  %vm845_vm4 = vcmp.eq.f32.partialorder %v844_v26, 8.507059e+37 }
  0xf9   : > { %v823_v37 = vmul.f32 %v1222_v23, %v822_v32  ;;  %1231 = vrcp.f32 %v1840_v22  ;;  %v1110_v53 = vmul.f32 -1.442695, %v372_v46  ;;  %vm825_vm5 = vweird.f32 %v1788_v62 }
  0xfa   : > { %v843_v52 = vsel %vm842_vm2, %v1220_v14, %v839_v47  ;;  %1233 = vpow2.f32 %v1111_v45  ;;  %v1226_v54 = vpop.eup %1225  ;;  %v1114_v60 = vmul.f32 -1.442695, %v376_v49  ;;  %vm827_vm6 = vmor %vm825_vm5, %vm826_vm3  ;;  %v832_v61 = vor.u32 1.1754944e-38, %v831_v48 }
  0xfb   : > { %v848_v59 = vsel %vm845_vm4, %v847_v28, %v843_v52  ;;  %v824_v51 = vadd.f32 %v1222_v23, %v823_v37  ;;  %v1228_v55 = vpop.eup %1227  ;;  %v1851_v63 = vadd.f32 1.0, %v1226_v54  ;;  %1235 = vpow2.f32 %v1110_v53 }
  0xfc   : > { %1008 = vst.msk [vmem:[%s1472_s24 + $0xb0] sm:$0xff] %vm985_vm1, %v848_v59  ;;  %vm830_vm7 = vcmp.eq.f32.partialorder %v829_v50, 8.507059e+37  ;;  %v1853_v2 = vadd.f32 1.0, %v1228_v55  ;;  %1237 = vpow2.f32 %v1114_v60  ;;  %v904_v5 = vand.u32 2147483647, %v1840_v22 }
  0xfd   : > { %v828_v58 = vsel %vm827_vm6, %v1222_v23, %v824_v51  ;;  %v1230_v3 = vpop.eup %1229  ;;  %1239 = vrcp.f32 %v1851_v63  ;;  %v375_v56 = vadd.f32 %v1255_v31, %v337_v0  ;;  %v906_v9 = vand.u32 2147483648, %v1840_v22 }
  0xfe   : > { %v833_v4 = vsel %vm830_vm7, %v832_v61, %v828_v58  ;;  %1241 = vrcp.f32 %v1853_v2  ;;  %v1862_v10 = vadd.f32 1.0, %v1230_v3  ;;  %vm900_vm8 = vweird.f32 %v1840_v22 }
  0xff   : > { %v1232_v62 = vpop.eup %1231  ;;  %1007 = vst.msk [vmem:[%s1472_s24 + $0xa8] sm:$0xff] %vm985_vm1, %v833_v4  ;;  %v889_v7 = vand.u32 2147483647, %v1851_v63  ;;  %vm1868_vm9 = vcmp.eq.f32.partialorder %v904_v5, 8.507059e+37  ;;  %v891_v16 = vand.u32 2147483648, %v1851_v63  ;;  %v907_v20 = vor.u32 1.1754944e-38, %v906_v9 }
 0x100   : > { %v1234_v57 = vpop.eup %1233  ;;  %v896_v8 = vmul.f32 %v1232_v62, %v1840_v22  ;;  %1243 = vrcp.f32 %v1862_v10  ;;  %v1113_v14 = vmul.f32 -1.442695, %v375_v56  ;;  %vm901_vm10 = vweird.f32 %v1232_v62 }
 0x101   : > { %v1864_v11 = vadd.f32 1.0, %v1234_v57  ;;  %v1236_v12 = vpop.eup %1235  ;;  %v874_v19 = vand.u32 2147483647, %v1853_v2  ;;  %vm885_vm11 = vweird.f32 %v1851_v63  ;;  %vm870_vm14 = vweird.f32 %v1853_v2  ;;  %vm902_vm13 = vmor %vm900_vm8, %vm901_vm10 }
 0x102   : > { %v897_v13 = vsub.f32 1.0, %v896_v8  ;;  %v1238_v6 = vpop.eup %1237  ;;  %vm1879_vm12 = vcmp.eq.f32.partialorder %v889_v7, 8.507059e+37  ;;  %v876_v29 = vand.u32 2147483648, %v1853_v2  ;;  %v892_v1 = vor.u32 1.1754944e-38, %v891_v16 }
 0x103   : > { %v1240_v17 = vpop.eup %1239  ;;  %1245 = vrcp.f32 %v1864_v11  ;;  %v1887_v25 = vadd.f32 1.0, %v1236_v12  ;;  %vm1889_vm15 = vcmp.eq.f32.partialorder %v874_v19, 8.507059e+37  ;;  %v1893_v31 = vadd.f32 1.0, %v1238_v6 }
 0x104   : > { %v898_v18 = vmul.f32 %v1232_v62, %v897_v13  ;;  %v1242_v21 = vpop.eup %1241  ;;  %v881_v24 = vmul.f32 %v1240_v17, %v1851_v63  ;;  %1247 = vpow2.f32 %v1113_v14  ;;  %vm886_vm0 = vweird.f32 %v1240_v17 }
 0x105   : > { %v866_v33 = vmul.f32 %v1242_v21, %v1853_v2  ;;  %1249 = vrcp.f32 %v1887_v25  ;;  %vm871_vm2 = vweird.f32 %v1242_v21  ;;  %v877_v43 = vor.u32 1.1754944e-38, %v876_v29  ;;  %vm887_vm4 = vmor %vm885_vm11, %vm886_vm0 }
 0x106   : > { %v899_v26 = vadd.f32 %v1232_v62, %v898_v18  ;;  %v882_v34 = vsub.f32 1.0, %v881_v24  ;;  %v1244_v39 = vpop.eup %1243  ;;  %vm945_vm3 = vweird.f32 %v1862_v10  ;;  %v949_v27 = vand.u32 2147483647, %v1862_v10  ;;  %vm872_vm5 = vmor %vm870_vm14, %vm871_vm2 }
 0x107   : > { %v867_v35 = vsub.f32 1.0, %v866_v33  ;;  %v941_v44 = vmul.f32 %v1244_v39, %v1862_v10  ;;  %v951_v46 = vand.u32 2147483648, %v1862_v10  ;;  %1251 = vrcp.f32 %v1893_v31 }
 0x108   : > { %v903_v23 = vsel %vm902_vm13, %v1232_v62, %v899_v26  ;;  %v883_v41 = vmul.f32 %v1240_v17, %v882_v34  ;;  %v934_v37 = vand.u32 2147483647, %v1864_v11  ;;  %v936_v50 = vand.u32 2147483648, %v1864_v11 }
 0x109   : > { %v908_v40 = vsel %vm1868_vm9, %v907_v20, %v903_v23  ;;  %v1246_v38 = vpop.eup %1245  ;;  %v868_v42 = vmul.f32 %v1242_v21, %v867_v35  ;;  %v942_v45 = vsub.f32 1.0, %v941_v44  ;;  %vm946_vm6 = vweird.f32 %v1244_v39 }
 0x10a   : > { %1012 = vst.msk [vmem:[%s1472_s24 + $0xd0] sm:$0xff] %vm985_vm1, %v908_v40  ;;  %v884_v36 = vadd.f32 %v1240_v17, %v883_v41  ;;  %v926_v32 = vmul.f32 %v1246_v38, %v1864_v11  ;;  %v1248_v47 = vpop.eup %1247  ;;  %vm931_vm7 = vweird.f32 %v1246_v38  ;;  %vm930_vm8 = vweird.f32 %v1864_v11  ;;  %vm947_vm9 = vmor %vm945_vm3, %vm946_vm6 }
 0x10b   : > { %v869_v22 = vadd.f32 %v1242_v21, %v868_v42  ;;  %v943_v54 = vmul.f32 %v1244_v39, %v942_v45  ;;  %v1250_v59 = vpop.eup %1249  ;;  %v503_v63 = vadd.f32 1.0, %v1248_v47  ;;  %vm950_vm10 = vcmp.eq.f32.partialorder %v949_v27, 8.507059e+37  ;;  %vm932_vm14 = vmor %vm930_vm8, %vm931_vm7 }
 0x10c   : > { %v888_v48 = vsel %vm887_vm4, %v1240_v17, %v884_v36  ;;  %v927_v49 = vsub.f32 1.0, %v926_v32  ;;  %v911_v61 = vmul.f32 %v1250_v59, %v1887_v25  ;;  %v952_v0 = vor.u32 1.1754944e-38, %v951_v46 }
 0x10d   : > { %v893_v52 = vsel %vm1879_vm12, %v892_v1, %v888_v48  ;;  %v873_v53 = vsel %vm872_vm5, %v1242_v21, %v869_v22  ;;  %v944_v55 = vadd.f32 %v1244_v39, %v943_v54  ;;  %vm935_vm11 = vcmp.eq.f32.partialorder %v934_v37, 8.507059e+37  ;;  %v1252_v2 = vpop.eup %1251 }
 0x10e   : > { %1011 = vst.msk [vmem:[%s1472_s24 + $0xc8] sm:$0xff] %vm985_vm1, %v893_v52  ;;  %v878_v51 = vsel %vm1889_vm15, %v877_v43, %v873_v53  ;;  %v928_v60 = vmul.f32 %v1246_v38, %v927_v49  ;;  %v937_v4 = vor.u32 1.1754944e-38, %v936_v50  ;;  %v912_v62 = vsub.f32 1.0, %v911_v61 }
 0x10f   : > { %1010 = vst.msk [vmem:[%s1472_s24 + $0xc0] sm:$0xff] %vm985_vm1, %v878_v51  ;;  %v948_v3 = vsel %vm947_vm9, %v1244_v39, %v944_v55  ;;  %1253 = vrcp.f32 %v503_v63  ;;  %v921_v57 = vand.u32 2147483648, %v1887_v25  ;;  %v971_v8 = vmul.f32 %v1252_v2, %v1893_v31 }
 0x110   : > { %v929_v58 = vadd.f32 %v1246_v38, %v928_v60  ;;  %v953_v5 = vsel %vm950_vm10, %v952_v0, %v948_v3  ;;  %v913_v10 = vmul.f32 %v1250_v59, %v912_v62  ;;  %vm916_vm12 = vweird.f32 %v1250_v59 }
 0x111   : > { %1015 = vst.msk [vmem:[%s1472_s24 + $0xe8] sm:$0xff] %vm985_vm1, %v953_v5  ;;  %v919_v11 = vand.u32 2147483647, %v1887_v25  ;;  %v972_v12 = vsub.f32 1.0, %v971_v8  ;;  %vm915_vm13 = vweird.f32 %v1887_v25  ;;  %v981_v7 = vand.u32 2147483648, %v1893_v31 }
 0x112   : > { %v933_v56 = vsel %vm932_vm14, %v1246_v38, %v929_v58  ;;  %v914_v13 = vadd.f32 %v1250_v59, %v913_v10  ;;  %vm917_vm15 = vmor %vm915_vm13, %vm916_vm12  ;;  %v922_v6 = vor.u32 1.1754944e-38, %v921_v57  ;;  %vm976_vm0 = vweird.f32 %v1252_v2 }
 0x113   : > { %v938_v9 = vsel %vm935_vm11, %v937_v4, %v933_v56  ;;  %v973_v15 = vmul.f32 %v1252_v2, %v972_v12  ;;  %v979_v16 = vand.u32 2147483647, %v1893_v31  ;;  %vm920_vm2 = vcmp.eq.f32.partialorder %v919_v11, 8.507059e+37 }
 0x114   : > { %1014 = vst.msk [vmem:[%s1472_s24 + $0xe0] sm:$0xff] %vm985_vm1, %v938_v9  ;;  %v918_v17 = vsel %vm917_vm15, %v1250_v59, %v914_v13  ;;  %vm975_vm3 = vweird.f32 %v1893_v31  ;;  %v982_v20 = vor.u32 1.1754944e-38, %v981_v7  ;;  %v966_v33 = vand.u32 2147483648, %v503_v63 }
 0x115   : > { %v1254_v14 = vpop.eup %1253  ;;  %v923_v18 = vsel %vm920_vm2, %v922_v6, %v918_v17  ;;  %v974_v19 = vadd.f32 %v1252_v2, %v973_v15  ;;  %vm977_vm4 = vmor %vm975_vm3, %vm976_vm0  ;;  %vm980_vm5 = vcmp.eq.f32.partialorder %v979_v16, 8.507059e+37  ;;  %v964_v34 = vand.u32 2147483647, %v503_v63 }
 0x116   : > { %v956_v21 = vmul.f32 %v1254_v14, %v503_v63  ;;  %1013 = vst.msk [vmem:[%s1472_s24 + $0xd8] sm:$0xff] %vm985_vm1, %v923_v18  ;;  %vm961_vm6 = vweird.f32 %v1254_v14  ;;  %vm960_vm7 = vweird.f32 %v503_v63  ;;  %v967_v25 = vor.u32 1.1754944e-38, %v966_v33 }
 0x117   : > { %v978_v24 = vsel %vm977_vm4, %v1252_v2, %v974_v19  ;;  %vm962_vm8 = vmor %vm960_vm7, %vm961_vm6  ;;  %vm965_vm9 = vcmp.eq.f32.partialorder %v964_v34, 8.507059e+37 }
 0x118   : > { %v957_v26 = vsub.f32 1.0, %v956_v21  ;;  %v983_v28 = vsel %vm980_vm5, %v982_v20, %v978_v24 }
 0x119   : > { %1017 = vst.msk [vmem:[%s1472_s24 + $0xf8] sm:$0xff] %vm985_vm1, %v983_v28 }
 0x11a   : > { %v958_v29 = vmul.f32 %v1254_v14, %v957_v26 }
 0x11c   : > { %v959_v1 = vadd.f32 %v1254_v14, %v958_v29 }
 0x11e   : > { %v963_v23 = vsel %vm962_vm8, %v1254_v14, %v959_v1 }
 0x11f   : > { %v968_v35 = vsel %vm965_vm9, %v967_v25, %v963_v23 }
 0x120   : > { %1016 = vst.msk [vmem:[%s1472_s24 + $0xf0] sm:$0xff] %vm985_vm1, %v968_v35 }
 0x121 PF: > { %s15_s14 = sadd.s32 1, %s1262_s14  }
 0x122   : > { %p12_p4 = scmp.ge.s32.totalorder %s15_s14, 4  }
 0x124   :  { %14 = sbr.rel (!%p12_p4) target bundleno = 3 (0x3), region = 62 }

// kernel: contour_prediction_forward.8
= control target key start
LH: loop header
LB: loop body
LE: loop exit
PB: predicated region body
PF: predicated region fallthrough
CT: control target
= control target key end

     0   :  { %s2748_s12 = smov 0   ;;  %s3579_s0 = inlined_call_operand.vmem [shape: f32[2,18,18,16], index: 0, kind: input, shape index: {}]   ;;  %s3580_s1 = inlined_call_operand.vmem [shape: bf16[9,16,16], index: 1, kind: input, shape index: {}]   ;;  %s3581_s2 = inlined_call_operand.vmem [shape: f32[1,16], index: 2, kind: input, shape index: {}]   ;;  %s3582_s3 = inlined_call_operand.vmem [shape: f32[2,16,16,16], index: 3, kind: output, shape index: {}]  }
   0x1 LB: > { %s2299_s13 = sadd.s32 4294967295, %s2726_s12   ;;  %p2303_p0 = scmp.ge.s32.totalorder %s2726_s12, 1  ;;  %s2726_s12 = sphi %s2748_s12, %s13_s12  }
   0x2   : > { %p137_p1 = scmp.lt.s32.totalorder %s2726_s12, 3 }
   0x4   : > { %p138_p2 = pnand %p2303_p0, %p137_p1 }
   0x6   : > { %141 = sbr.rel (%p138_p2) target bundleno = 732 (0x2dc), region = 32 }
   0xb   : > { %v2699_v0 = vld [vmem:[%s3580_s1 + $0x8] sm:$0xff]  ;;  %p161_p3 = scmp.lt.s32.totalorder %s2299_s13, 1  ;;  %v2700_v1 = vld [vmem:[%s3580_s1 + $0x10] sm:$0xff]  ;;  %v2701_v2 = vld [vmem:[%s3580_s1 + $0x18] sm:$0xff]  ;;  %vm279_vm0 = vcmask 130048  }
   0xc   : > { %v2698_v3 = vld [vmem:[%s3580_s1] sm:$0xff]  ;;  %2707 = vmatpush.bf16.msra.mxu1 %v2699_v0  ;;  %2708 = vmatpush.bf16.msra.mxu2 %v2699_v0  ;;  %v2704_v41 = vld [vmem:[%s3580_s1 + $0x30] sm:$0xff]  ;;  %v2705_v42 = vld [vmem:[%s3580_s1 + $0x38] sm:$0xff] }
   0xd   : > { %v2702_v4 = vld [vmem:[%s3580_s1 + $0x20] sm:$0xff]  ;;  %s3626_s13 = smov (!%p161_p3, %s2299_s13), 1  ;;  %2709 = vmatpush.bf16.msra.mxu3 %v2699_v0  ;;  %335 = vmatpush.bf16.msra.mxu0 %v2699_v0  ;;  %v2703_v43 = vld [vmem:[%s3580_s1 + $0x28] sm:$0xff] }
   0xe   : > { %s2710_s24 = smul.u32 432, %s3626_s13  ;;  %v2706_v44 = vld [vmem:[%s3580_s1 + $0x40] sm:$0xff]  ;;  %s2697_s11 = sshll.u32 %s3626_s13, 8 }
   0xf   : > { %s3387_s16 = scalar_lea.vmem %s3582_s3, %s2697_s11 }
  0x10   : > { %672 = vmatpush.bf16.msrb.mxu2 %v2700_v1  ;;  %478 = vmatpush.bf16.msrb.mxu1 %v2698_v3  ;;  %s2777_s27 = scalar_lea.vmem %s3579_s0, %s2710_s24 }
  0x11   : > { %899 = vmatpush.bf16.msrb.mxu3 %v2701_v2  ;;  %1125 = vmatpush.bf16.msrb.mxu0 %v2702_v4  ;;  %v230_v5 = vld [vmem:[%s2777_s27 + $0x61] sm:$0xff]  ;;  %v231_v6 = vld [vmem:[%s2777_s27 + $0x69] sm:$0xff]  ;;  %v232_v17 = vld [vmem:[%s2777_s27 + $0x79] sm:$0xff] }
  0x12   : > { %v238_v7 = vld [vmem:[%s2777_s27 + $0xc1] sm:$0xff]  ;;  %v2782_v8 = vpack.c.bf16 %v231_v6, %v230_v5  ;;  %v239_v9 = vld [vmem:[%s2777_s27 + $0xc9] sm:$0xff]  ;;  %v240_v19 = vld [vmem:[%s2777_s27 + $0xd9] sm:$0xff] }
  0x13   : > { %v246_v10 = vld [vmem:[%s2777_s27 + $0x121] sm:$0xff]  ;;  %v247_v11 = vld [vmem:[%s2777_s27 + $0x129] sm:$0xff]  ;;  %v2787_v12 = vpack.c.bf16 %v239_v9, %v238_v7  ;;  %v248_v21 = vld [vmem:[%s2777_s27 + $0x139] sm:$0xff] }
  0x14   : > { %v2789_v13 = vpack.c.bf16 %v247_v11, %v246_v10  ;;  %v222_v14 = vld [vmem:[%s2777_s27 + $0x1] sm:$0xff]  ;;  %v223_v15 = vld [vmem:[%s2777_s27 + $0x9] sm:$0xff]  ;;  %2317 = vmatmul.msk.bf16.vlgmr.msra.gmra.mxu1 %vm279_vm0, %v2782_v8  ;;  %v224_v23 = vld [vmem:[%s2777_s27 + $0x19] sm:$0xff] }
  0x15   : > { %v254_v16 = vpack.c.bf16 %v223_v15, %v222_v14  ;;  %2321 = vmatmul.msk.bf16.vlgmr.msra.gmra.mxu2 %vm279_vm0, %v2787_v12  ;;  %v233_v18 = vld [vmem:[%s2777_s27 + $0x81] sm:$0xff]  ;;  %v234_v29 = vld [vmem:[%s2777_s27 + $0x91] sm:$0xff]  ;;  %v235_v30 = vld [vmem:[%s2777_s27 + $0x99] sm:$0xff]  ;;  %1351 = vmatpush.bf16.msra.mxu1 %v2703_v43 }
  0x16   : > { %2325 = vmatmul.msk.bf16.vlgmr.msra.gmra.mxu3 %vm279_vm0, %v2789_v13  ;;  %v241_v20 = vld [vmem:[%s2777_s27 + $0xe1] sm:$0xff]  ;;  %v2808_v25 = vpack.c.bf16 %v233_v18, %v232_v17  ;;  %v242_v31 = vld [vmem:[%s2777_s27 + $0xf1] sm:$0xff]  ;;  %v243_v32 = vld [vmem:[%s2777_s27 + $0xf9] sm:$0xff]  ;;  %v2829_v37 = vpack.c.bf16 %v235_v30, %v234_v29  ;;  %1578 = vmatpush.bf16.msra.mxu2 %v2704_v41 }
  0x17   : > { %2313 = vmatmul.msk.bf16.vlgmr.msra.gmra.mxu0 %vm279_vm0, %v254_v16  ;;  %v249_v22 = vld [vmem:[%s2777_s27 + $0x141] sm:$0xff]  ;;  %v2810_v26 = vpack.c.bf16 %v241_v20, %v240_v19  ;;  %v250_v33 = vld [vmem:[%s2777_s27 + $0x151] sm:$0xff]  ;;  %v251_v34 = vld [vmem:[%s2777_s27 + $0x159] sm:$0xff]  ;;  %v2831_v38 = vpack.c.bf16 %v243_v32, %v242_v31  ;;  %1804 = vmatpush.bf16.msra.mxu3 %v2705_v42 }
  0x18   : > { %v225_v24 = vld [vmem:[%s2777_s27 + $0x21] sm:$0xff]  ;;  %v2812_v27 = vpack.c.bf16 %v249_v22, %v248_v21  ;;  %v226_v35 = vld [vmem:[%s2777_s27 + $0x31] sm:$0xff]  ;;  %v227_v36 = vld [vmem:[%s2777_s27 + $0x39] sm:$0xff]  ;;  %v2833_v39 = vpack.c.bf16 %v251_v34, %v250_v33  ;;  %2030 = vmatpush.bf16.msra.mxu0 %v2706_v44 }
  0x19   : > { %v255_v28 = vpack.c.bf16 %v225_v24, %v224_v23  ;;  %v2835_v40 = vpack.c.bf16 %v227_v36, %v226_v35  ;;  %v236_v45 = vld [vmem:[%s2777_s27 + $0xa9] sm:$0xff]  ;;  %v237_v46 = vld [vmem:[%s2777_s27 + $0xb1] sm:$0xff]  ;;  %v172_v57 = vld [vmem:[%s2777_s27] sm:$0xff] }
  0x1a   : > { %v244_v47 = vld [vmem:[%s2777_s27 + $0x109] sm:$0xff]  ;;  %v245_v48 = vld [vmem:[%s2777_s27 + $0x111] sm:$0xff]  ;;  %v2865_v53 = vpack.c.bf16 %v237_v46, %v236_v45  ;;  %v2372_v62 = vld [vmem:[%s2777_s27 + $0x20] sm:$0xff] }
  0x1b   : > { %v252_v49 = vld [vmem:[%s2777_s27 + $0x169] sm:$0xff]  ;;  %v253_v50 = vld [vmem:[%s2777_s27 + $0x171] sm:$0xff]  ;;  %v2867_v54 = vpack.c.bf16 %v245_v48, %v244_v47  ;;  %v562_v2 = vld [vmem:[%s2777_s27 + $0x1a] sm:$0xff] }
  0x1c   : > { %v228_v51 = vld [vmem:[%s2777_s27 + $0x49] sm:$0xff]  ;;  %v229_v52 = vld [vmem:[%s2777_s27 + $0x51] sm:$0xff]  ;;  %v2869_v55 = vpack.c.bf16 %v253_v50, %v252_v49  ;;  %v565_v10 = vld [vmem:[%s2777_s27 + $0x3a] sm:$0xff] }
  0x1d   : > { %v2871_v56 = vpack.c.bf16 %v229_v52, %v228_v51  ;;  %v173_v58 = vld [vmem:[%s2777_s27 + $0x8] sm:$0xff]  ;;  %v2371_v61 = vld [vmem:[%s2777_s27 + $0x18] sm:$0xff]  ;;  %v2373_v4 = vld [vmem:[%s2777_s27 + $0x30] sm:$0xff] }
  0x1e   : > { %v560_v59 = vld [vmem:[%s2777_s27 + $0x2] sm:$0xff]  ;;  %v561_v60 = vld [vmem:[%s2777_s27 + $0xa] sm:$0xff]  ;;  %v204_v63 = vpack.c.bf16 %v173_v58, %v172_v57  ;;  %v819_v1 = vpack.c.bf16 %v2372_v62, %v2371_v61  ;;  %v2374_v5 = vld [vmem:[%s2777_s27 + $0x38] sm:$0xff] }
  0x1f   : > { %v592_v0 = vpack.c.bf16 %v561_v60, %v560_v59  ;;  %v563_v3 = vld [vmem:[%s2777_s27 + $0x22] sm:$0xff]  ;;  %v2897_v7 = vpack.c.bf16 %v2374_v5, %v2373_v4  ;;  %v564_v9 = vld [vmem:[%s2777_s27 + $0x32] sm:$0xff]  ;;  %v566_v17 = vld [vmem:[%s2777_s27 + $0x4a] sm:$0xff] }
  0x20   : > { %v2895_v6 = vpack.c.bf16 %v563_v3, %v562_v2  ;;  %v2375_v11 = vld [vmem:[%s2777_s27 + $0x48] sm:$0xff]  ;;  %v2376_v14 = vld [vmem:[%s2777_s27 + $0x50] sm:$0xff]  ;;  %v2910_v15 = vpack.c.bf16 %v565_v10, %v564_v9  ;;  %v2377_v19 = vld [vmem:[%s2777_s27 + $0x60] sm:$0xff] }
  0x21   : > { %v2912_v16 = vpack.c.bf16 %v2376_v14, %v2375_v11  ;;  %v567_v18 = vld [vmem:[%s2777_s27 + $0x52] sm:$0xff]  ;;  %v2378_v20 = vld [vmem:[%s2777_s27 + $0x68] sm:$0xff]  ;;  %v2380_v29 = vld [vmem:[%s2777_s27 + $0x80] sm:$0xff] }
  0x22   : > { %v2926_v21 = vpack.c.bf16 %v567_v18, %v566_v17  ;;  %v2928_v22 = vpack.c.bf16 %v2378_v20, %v2377_v19  ;;  %v568_v23 = vld [vmem:[%s2777_s27 + $0x62] sm:$0xff]  ;;  %v569_v24 = vld [vmem:[%s2777_s27 + $0x6a] sm:$0xff]  ;;  %v570_v41 = vld [vmem:[%s2777_s27 + $0x7a] sm:$0xff] }
  0x23   : > { %v2944_v31 = vpack.c.bf16 %v569_v24, %v568_v23  ;;  %v571_v42 = vld [vmem:[%s2777_s27 + $0x82] sm:$0xff]  ;;  %v2381_v43 = vld [vmem:[%s2777_s27 + $0x90] sm:$0xff]  ;;  %v2382_v44 = vld [vmem:[%s2777_s27 + $0x98] sm:$0xff] }
  0x24   : > { %2318 = vmatmul.msk.bf16.gmra.mxu1 %vm279_vm0, %v2808_v25  ;;  %v2976_v47 = vpack.c.bf16 %v571_v42, %v570_v41  ;;  %v2978_v48 = vpack.c.bf16 %v2382_v44, %v2381_v43  ;;  %v572_v58 = vld [vmem:[%s2777_s27 + $0x92] sm:$0xff]  ;;  %v573_v59 = vld [vmem:[%s2777_s27 + $0x9a] sm:$0xff]  ;;  %v2383_v60 = vld [vmem:[%s2777_s27 + $0xa8] sm:$0xff] }
  0x25   : > { %2322 = vmatmul.msk.bf16.gmra.mxu2 %vm279_vm0, %v2810_v26  ;;  %v2384_v61 = vld [vmem:[%s2777_s27 + $0xb0] sm:$0xff]  ;;  %v2385_v14 = vld [vmem:[%s2777_s27 + $0xc0] sm:$0xff]  ;;  %v2386_v17 = vld [vmem:[%s2777_s27 + $0xc8] sm:$0xff] }
  0x26   : > { %2326 = vmatmul.msk.bf16.gmra.mxu3 %vm279_vm0, %v2812_v27  ;;  %v574_v10 = vld [vmem:[%s2777_s27 + $0xaa] sm:$0xff]  ;;  %v575_v11 = vld [vmem:[%s2777_s27 + $0xb2] sm:$0xff]  ;;  %v3042_v23 = vpack.c.bf16 %v2386_v17, %v2385_v14  ;;  %v576_v43 = vld [vmem:[%s2777_s27 + $0xc2] sm:$0xff] }
  0x27   : > { %2314 = vmatmul.msk.bf16.gmra.mxu0 %vm279_vm0, %v255_v28  ;;  %v3040_v20 = vpack.c.bf16 %v575_v11, %v574_v10  ;;  %v577_v44 = vld [vmem:[%s2777_s27 + $0xca] sm:$0xff] }
  0x28   : > { %3596 = vst [vmem:[#allocation9_spill] sm:$0xff] %v3042_v23  ;;  %v3070_v11 = vpack.c.bf16 %v577_v44, %v576_v43 }
  0x29   : > { %3595 = vst [vmem:[#allocation8_spill] sm:$0xff] %v3040_v20 }
  0x2a   : > { %3599 = vst [vmem:[#allocation12_spill] sm:$0xff] %v3070_v11 }
  0x34   : > { %2319 = vmatmul.msk.bf16.gmra.mxu1 %vm279_vm0, %v2829_v37 }
  0x35   : > { %2323 = vmatmul.msk.bf16.gmra.mxu2 %vm279_vm0, %v2831_v38 }
  0x36   : > { %2327 = vmatmul.msk.bf16.gmra.mxu3 %vm279_vm0, %v2833_v39 }
  0x37   : > { %2315 = vmatmul.msk.bf16.gmra.mxu0 %vm279_vm0, %v2835_v40 }
  0x44   : > { %2320 = vmatmul.msk.bf16.gmra.mxu1 %vm279_vm0, %v2865_v53 }
  0x45   : > { %2324 = vmatmul.msk.bf16.gmra.mxu2 %vm279_vm0, %v2867_v54 }
  0x46   : > { %2328 = vmatmul.msk.bf16.gmra.mxu3 %vm279_vm0, %v2869_v55 }
  0x47   : > { %2316 = vmatmul.msk.bf16.gmra.mxu0 %vm279_vm0, %v2871_v56 }
  0x54   : > { %2333 = vmatmul.msk.bf16.vlgmr.msrb.gmra.mxu1 %vm279_vm0, %v204_v63 }
  0x55   : > { %2355 = vmatmul.msk.bf16.vlgmr.msrb.gmra.mxu2 %vm279_vm0, %v592_v0  ;;  %v3008_v0 = vpack.c.bf16 %v573_v59, %v572_v58  ;;  %v2387_v58 = vld [vmem:[%s2777_s27 + $0xd8] sm:$0xff]  ;;  %v2388_v59 = vld [vmem:[%s2777_s27 + $0xe0] sm:$0xff] }
  0x56   : > { %2409 = vmatmul.msk.bf16.vlgmr.msrb.gmra.mxu3 %vm279_vm0, %v819_v1 }
  0x57   : > { %2463 = vmatmul.msk.bf16.vlgmr.msrb.gmra.mxu0 %vm279_vm0, %v255_v28  ;;  %v2379_v28 = vld [vmem:[%s2777_s27 + $0x78] sm:$0xff] }
  0x58   : > { %v2946_v32 = vpack.c.bf16 %v2380_v29, %v2379_v28 }
  0x64   : > { %2334 = vmatmul.msk.bf16.gmra.mxu1 %vm279_vm0, %v819_v1  ;;  %v3010_v1 = vpack.c.bf16 %v2384_v61, %v2383_v60 }
  0x65   : > { %2356 = vmatmul.msk.bf16.gmra.mxu2 %vm279_vm0, %v2895_v6 }
  0x66   : > { %2410 = vmatmul.msk.bf16.gmra.mxu3 %vm279_vm0, %v2897_v7  ;;  %3592 = vst [vmem:[#allocation5_spill] sm:$0xff] %v3010_v1 }
  0x67   : > { %2464 = vmatmul.msk.bf16.gmra.mxu0 %vm279_vm0, %v2835_v40 }
  0x74   : > { %2335 = vmatmul.msk.bf16.gmra.mxu1 %vm279_vm0, %v2897_v7 }
  0x75   : > { %2357 = vmatmul.msk.bf16.gmra.mxu2 %vm279_vm0, %v2910_v15 }
  0x76   : > { %2411 = vmatmul.msk.bf16.gmra.mxu3 %vm279_vm0, %v2912_v16 }
  0x77   : > { %2465 = vmatmul.msk.bf16.gmra.mxu0 %vm279_vm0, %v2871_v56 }
  0x84   : > { %2336 = vmatmul.msk.bf16.gmra.mxu1 %vm279_vm0, %v2912_v16 }
  0x85   : > { %2358 = vmatmul.msk.bf16.gmra.mxu2 %vm279_vm0, %v2926_v21 }
  0x86   : > { %2412 = vmatmul.msk.bf16.gmra.mxu3 %vm279_vm0, %v2928_v22 }
  0x87   : > { %2466 = vmatmul.msk.bf16.gmra.mxu0 %vm279_vm0, %v2782_v8 }
  0x91   : > { %v2942_v30 = vpop.f32.mrf.mxu1 }
  0x94   : > { %v2948_v33 = vpop.f32.mrf.mxu0  ;;  %2337 = vmatmul.msk.bf16.gmra.mxu1 %vm279_vm0, %v2928_v22 }
  0x95   : > { %2359 = vmatmul.msk.bf16.gmra.mxu2 %vm279_vm0, %v2944_v31 }
  0x96   : > { %2413 = vmatmul.msk.bf16.gmra.mxu3 %vm279_vm0, %v2946_v32 }
  0x97   : > { %2467 = vmatmul.msk.bf16.gmra.mxu0 %vm279_vm0, %v2808_v25 }
  0x98   : > { %v2958_v8 = vpop.f32.mrf.mxu2 }
  0x99   : > { %v2960_v34 = vpop.f32.mrf.mxu3  ;;  %v2962_v35 = vpop.f32.mrf.mxu1 }
  0x9c   : > { %v2964_v36 = vpop.f32.mrf.mxu0 }
  0xa0   : > { %v2970_v45 = vpop.f32.mrf.mxu2 }
  0xa1   : > { %v2972_v46 = vpop.f32.mrf.mxu3  ;;  %v2974_v25 = vpop.f32.mrf.mxu1 }
  0xa2   : > { %3589 = vst [vmem:[#allocation2_spill] sm:$0xff] %v2972_v46 }
  0xa4   : > { %v2980_v49 = vpop.f32.mrf.mxu0  ;;  %2338 = vmatmul.msk.bf16.gmra.mxu1 %vm279_vm0, %v2946_v32 }
  0xa5   : > { %2360 = vmatmul.msk.bf16.gmra.mxu2 %vm279_vm0, %v2976_v47 }
  0xa6   : > { %2414 = vmatmul.msk.bf16.gmra.mxu3 %vm279_vm0, %v2978_v48 }
  0xa7   : > { %2468 = vmatmul.msk.bf16.gmra.mxu0 %vm279_vm0, %v2829_v37 }
  0xa8   : > { %v2990_v50 = vpop.f32.mrf.mxu2 }
  0xa9   : > { %v2992_v51 = vpop.f32.mrf.mxu3  ;;  %v2994_v52 = vpop.f32.mrf.mxu1 }
  0xaa   : > { %3590 = vst [vmem:[#allocation3_spill] sm:$0xff] %v2992_v51 }
  0xac   : > { %v2996_v57 = vpop.f32.mrf.mxu0 }
  0xb0   : > { %v3002_v62 = vpop.f32.mrf.mxu2 }
  0xb1   : > { %v3004_v63 = vpop.f32.mrf.mxu3  ;;  %v3006_v37 = vpop.f32.mrf.mxu1 }
  0xb2   : > { %3591 = vst [vmem:[#allocation4_spill] sm:$0xff] %v3004_v63 }
  0xb4   : > { %v3012_v2 = vpop.f32.mrf.mxu0  ;;  %2339 = vmatmul.msk.bf16.gmra.mxu1 %vm279_vm0, %v2978_v48 }
  0xb5   : > { %2361 = vmatmul.msk.bf16.gmra.mxu2 %vm279_vm0, %v3008_v0 }
  0xb6   : > { %2415 = vmatmul.msk.bf16.gmra.mxu3 %vm279_vm0, %v3010_v1 }
  0xb7   : > { %2469 = vmatmul.msk.bf16.gmra.mxu0 %vm279_vm0, %v2865_v53 }
  0xb8   : > { %v3022_v3 = vpop.f32.mrf.mxu2 }
  0xb9   : > { %v3024_v4 = vpop.f32.mrf.mxu3  ;;  %v3026_v5 = vpop.f32.mrf.mxu1 }
  0xba   : > { %3593 = vst [vmem:[#allocation6_spill] sm:$0xff] %v3024_v4  ;;  %v579_v4 = vld [vmem:[%s2777_s27 + $0xe2] sm:$0xff] }
  0xbc   : > { %v3028_v9 = vpop.f32.mrf.mxu0 }
  0xc0   : > { %v3034_v18 = vpop.f32.mrf.mxu2 }
  0xc1   : > { %v3036_v19 = vpop.f32.mrf.mxu3  ;;  %v3038_v53 = vpop.f32.mrf.mxu1 }
  0xc2   : > { %3594 = vst [vmem:[#allocation7_spill] sm:$0xff] %v3036_v19 }
  0xc4   : > { %v3044_v24 = vpop.f32.mrf.mxu0  ;;  %2340 = vmatmul.msk.bf16.gmra.mxu1 %vm279_vm0, %v3010_v1 }
  0xc5   : > { %2362 = vmatmul.msk.bf16.gmra.mxu2 %vm279_vm0, %v3040_v20 }
  0xc6   : > { %2416 = vmatmul.msk.bf16.gmra.mxu3 %vm279_vm0, %v3042_v23 }
  0xc7   : > { %2470 = vmatmul.msk.bf16.gmra.mxu0 %vm279_vm0, %v2787_v12  ;;  %v3072_v12 = vpack.c.bf16 %v2388_v59, %v2387_v58 }
  0xc8   : > { %v3054_v28 = vpop.f32.mrf.mxu2 }
  0xc9   : > { %v3056_v29 = vpop.f32.mrf.mxu3  ;;  %v3058_v41 = vpop.f32.mrf.mxu1 }
  0xca   : > { %3597 = vst [vmem:[#allocation10_spill] sm:$0xff] %v3056_v29  ;;  %v578_v29 = vld [vmem:[%s2777_s27 + $0xda] sm:$0xff] }
  0xcb   : > { %v3090_v46 = vpack.c.bf16 %v579_v4, %v578_v29 }
  0xcc   : > { %v3060_v42 = vpop.f32.mrf.mxu0 }
  0xd0   : > { %v3066_v60 = vpop.f32.mrf.mxu2 }
  0xd1   : > { %v3068_v61 = vpop.f32.mrf.mxu3  ;;  %v480_v10 = vpop.f32.mrf.mxu1 }
  0xd2   : > { %3598 = vst [vmem:[#allocation11_spill] sm:$0xff] %v3068_v61  ;;  %v481_v14 = vadd.f32 %v480_v10, %v2948_v33 }
  0xd4   : > { %v1127_v17 = vpop.f32.mrf.mxu0  ;;  %2341 = vmatmul.msk.bf16.gmra.mxu1 %vm279_vm0, %v3042_v23  ;;  %v2389_v23 = vld [vmem:[%s2777_s27 + $0xf0] sm:$0xff] }
  0xd5   : > { %2363 = vmatmul.msk.bf16.gmra.mxu2 %vm279_vm0, %v3070_v11  ;;  %v2390_v11 = vld [vmem:[%s2777_s27 + $0xf8] sm:$0xff] }
  0xd6   : > { %2417 = vmatmul.msk.bf16.gmra.mxu3 %vm279_vm0, %v3072_v12 }
  0xd7   : > { %2471 = vmatmul.msk.bf16.gmra.mxu0 %vm279_vm0, %v2810_v26  ;;  %v3092_v26 = vpack.c.bf16 %v2390_v11, %v2389_v23  ;;  %v580_v11 = vld [vmem:[%s2777_s27 + $0xf2] sm:$0xff] }
  0xd8   : > { %v674_v43 = vpop.f32.mrf.mxu2 }
  0xd9   : > { %v901_v44 = vpop.f32.mrf.mxu3  ;;  %v754_v58 = vadd.f32 %v674_v43, %v481_v14  ;;  %v482_v59 = vpop.f32.mrf.mxu1 }
  0xda   : > { %v483_v33 = vadd.f32 %v482_v59, %v2964_v36  ;;  %v2392_v59 = vld [vmem:[%s2777_s27 + $0x110] sm:$0xff] }
  0xdb   : > { %v981_v10 = vadd.f32 %v901_v44, %v754_v58  ;;  %v581_v44 = vld [vmem:[%s2777_s27 + $0xfa] sm:$0xff]  ;;  %v2391_v58 = vld [vmem:[%s2777_s27 + $0x108] sm:$0xff] }
  0xdc   : > { %v1129_v61 = vpop.f32.mrf.mxu0 }
  0xdd   : > { %v3085_v19 = vadd.f32 %v1127_v17, %v981_v10 }
  0xe0   : > { %v676_v63 = vpop.f32.mrf.mxu2 }
  0xe1   : > { %v903_v51 = vpop.f32.mrf.mxu3  ;;  %v755_v20 = vadd.f32 %v676_v63, %v483_v33  ;;  %v485_v1 = vpop.f32.mrf.mxu1 }
  0xe2   : > { %v486_v14 = vadd.f32 %v485_v1, %v2980_v49 }
  0xe3   : > { %v982_v36 = vadd.f32 %v903_v51, %v755_v20 }
  0xe4   : > { %v1132_v43 = vpop.f32.mrf.mxu0  ;;  %2342 = vmatmul.msk.bf16.gmra.mxu1 %vm279_vm0, %v3072_v12 }
  0xe5   : > { %2364 = vmatmul.msk.bf16.gmra.mxu2 %vm279_vm0, %v3090_v46  ;;  %v3101_v63 = vadd.f32 %v1129_v61, %v982_v36 }
  0xe6   : > { %2418 = vmatmul.msk.bf16.gmra.mxu3 %vm279_vm0, %v3092_v26 }
  0xe7   : > { %3600 = vst [vmem:[#allocation13_spill] sm:$0xff] %v3101_v63  ;;  %2472 = vmatmul.msk.bf16.gmra.mxu0 %vm279_vm0, %v2831_v38  ;;  %v3112_v63 = vpack.c.bf16 %v581_v44, %v580_v11  ;;  %v3114_v38 = vpack.c.bf16 %v2392_v59, %v2391_v58  ;;  %v582_v44 = vld [vmem:[%s2777_s27 + $0x10a] sm:$0xff]  ;;  %v583_v59 = vld [vmem:[%s2777_s27 + $0x112] sm:$0xff] }
  0xe8   : > { %v679_v49 = vpop.f32.mrf.mxu2 }
  0xe9   : > { %v906_v51 = vpop.f32.mrf.mxu3  ;;  %v756_v1 = vadd.f32 %v679_v49, %v486_v14  ;;  %v487_v4 = vpop.f32.mrf.mxu1 }
  0xea   : > { %v488_v20 = vadd.f32 %v487_v4, %v2996_v57 }
  0xeb   : > { %v983_v23 = vadd.f32 %v906_v51, %v756_v1 }
  0xec   : > { %v1134_v29 = vpop.f32.mrf.mxu0 }
  0xed   : > { %v3107_v17 = vadd.f32 %v1132_v43, %v983_v23 }
  0xf0   : > { %v681_v33 = vpop.f32.mrf.mxu2 }
  0xf1   : > { %v908_v61 = vpop.f32.mrf.mxu3  ;;  %v757_v10 = vadd.f32 %v681_v33, %v488_v20  ;;  %v490_v36 = vpop.f32.mrf.mxu1  ;;  %v2393_v33 = vld [vmem:[%s2777_s27 + $0x120] sm:$0xff] }
  0xf2   : > { %v491_v14 = vadd.f32 %v490_v36, %v3012_v2 }
  0xf3   : > { %v984_v57 = vadd.f32 %v908_v61, %v757_v10  ;;  %v2394_v61 = vld [vmem:[%s2777_s27 + $0x128] sm:$0xff] }
  0xf4   : > { %v1137_v49 = vpop.f32.mrf.mxu0  ;;  %2343 = vmatmul.msk.bf16.gmra.mxu1 %vm279_vm0, %v3092_v26 }
  0xf5   : > { %2365 = vmatmul.msk.bf16.gmra.mxu2 %vm279_vm0, %v3112_v63  ;;  %v3123_v43 = vadd.f32 %v1134_v29, %v984_v57 }
  0xf6   : > { %2419 = vmatmul.msk.bf16.gmra.mxu3 %vm279_vm0, %v3114_v38 }
  0xf7   : > { %3601 = vst [vmem:[#allocation14_spill] sm:$0xff] %v3123_v43  ;;  %2473 = vmatmul.msk.bf16.gmra.mxu0 %vm279_vm0, %v2867_v54  ;;  %v3134_v43 = vpack.c.bf16 %v583_v59, %v582_v44  ;;  %v3136_v54 = vpack.c.bf16 %v2394_v61, %v2393_v33  ;;  %v584_v59 = vld [vmem:[%s2777_s27 + $0x122] sm:$0xff]  ;;  %v585_v61 = vld [vmem:[%s2777_s27 + $0x12a] sm:$0xff] }
  0xf8   : > { %v684_v2 = vpop.f32.mrf.mxu2 }
  0xf9   : > { %v911_v51 = vpop.f32.mrf.mxu3  ;;  %v758_v1 = vadd.f32 %v684_v2, %v491_v14  ;;  %v492_v4 = vpop.f32.mrf.mxu1 }
  0xfa   : > { %v493_v20 = vadd.f32 %v492_v4, %v3028_v9 }
  0xfb   : > { %v985_v23 = vadd.f32 %v911_v51, %v758_v1 }
  0xfc   : > { %v1139_v11 = vpop.f32.mrf.mxu0 }
  0xfd   : > { %v3129_v58 = vadd.f32 %v1137_v49, %v985_v23 }
 0x100   : > { %v686_v10 = vpop.f32.mrf.mxu2 }
 0x101   : > { %v913_v29 = vpop.f32.mrf.mxu3  ;;  %v759_v36 = vadd.f32 %v686_v10, %v493_v20  ;;  %v495_v57 = vpop.f32.mrf.mxu1  ;;  %v2395_v10 = vld [vmem:[%s2777_s27 + $0x138] sm:$0xff] }
 0x102   : > { %v496_v14 = vadd.f32 %v495_v57, %v3044_v24 }
 0x103   : > { %v986_v9 = vadd.f32 %v913_v29, %v759_v36  ;;  %v2396_v29 = vld [vmem:[%s2777_s27 + $0x140] sm:$0xff] }
 0x104   : > { %v1142_v2 = vpop.f32.mrf.mxu0  ;;  %2344 = vmatmul.msk.bf16.gmra.mxu1 %vm279_vm0, %v3114_v38 }
 0x105   : > { %2366 = vmatmul.msk.bf16.gmra.mxu2 %vm279_vm0, %v3134_v43  ;;  %v3145_v49 = vadd.f32 %v1139_v11, %v986_v9 }
 0x106   : > { %2420 = vmatmul.msk.bf16.gmra.mxu3 %vm279_vm0, %v3136_v54 }
 0x107   : > { %3602 = vst [vmem:[#allocation15_spill] sm:$0xff] %v3145_v49  ;;  %2474 = vmatmul.msk.bf16.gmra.mxu0 %vm279_vm0, %v2789_v13  ;;  %v3156_v49 = vpack.c.bf16 %v585_v61, %v584_v59  ;;  %v3158_v13 = vpack.c.bf16 %v2396_v29, %v2395_v10  ;;  %v586_v61 = vld [vmem:[%s2777_s27 + $0x13a] sm:$0xff]  ;;  %v587_v29 = vld [vmem:[%s2777_s27 + $0x142] sm:$0xff] }
 0x108   : > { %v689_v24 = vpop.f32.mrf.mxu2 }
 0x109   : > { %v916_v51 = vpop.f32.mrf.mxu3  ;;  %v760_v1 = vadd.f32 %v689_v24, %v496_v14  ;;  %v497_v4 = vpop.f32.mrf.mxu1 }
 0x10a   : > { %v498_v20 = vadd.f32 %v497_v4, %v3060_v42 }
 0x10b   : > { %v987_v23 = vadd.f32 %v916_v51, %v760_v1 }
 0x10c   : > { %v1144_v44 = vpop.f32.mrf.mxu0 }
 0x10d   : > { %v3151_v33 = vadd.f32 %v1142_v2, %v987_v23 }
 0x10f   : > { %3603 = vst [vmem:[#allocation16_spill] sm:$0xff] %v3151_v33  ;;  %v3178_v33 = vpack.c.bf16 %v587_v29, %v586_v61  ;;  %v588_v61 = vld [vmem:[%s2777_s27 + $0x152] sm:$0xff] }
 0x110   : > { %v691_v36 = vpop.f32.mrf.mxu2 }
 0x111   : > { %v918_v11 = vpop.f32.mrf.mxu3  ;;  %v761_v57 = vadd.f32 %v691_v36, %v498_v20  ;;  %v500_v9 = vpop.f32.mrf.mxu1  ;;  %v2397_v36 = vld [vmem:[%s2777_s27 + $0x150] sm:$0xff] }
 0x112   : > { %v501_v24 = vadd.f32 %v500_v9, %v2942_v30 }
 0x113   : > { %v988_v14 = vadd.f32 %v918_v11, %v761_v57  ;;  %v2398_v11 = vld [vmem:[%s2777_s27 + $0x158] sm:$0xff] }
 0x114   : > { %v1147_v42 = vpop.f32.mrf.mxu0  ;;  %2345 = vmatmul.msk.bf16.gmra.mxu1 %vm279_vm0, %v3136_v54  ;;  %v3180_v30 = vpack.c.bf16 %v2398_v11, %v2397_v36  ;;  %v589_v36 = vld [vmem:[%s2777_s27 + $0x15a] sm:$0xff]  ;;  %v2399_v11 = vld [vmem:[%s2777_s27 + $0x168] sm:$0xff] }
 0x115   : > { %2367 = vmatmul.msk.bf16.gmra.mxu2 %vm279_vm0, %v3156_v49  ;;  %v3166_v2 = vadd.f32 %v1144_v44, %v988_v14 }
 0x116   : > { %2421 = vmatmul.msk.bf16.gmra.mxu3 %vm279_vm0, %v3158_v13 }
 0x117   : > { %3604 = vst [vmem:[#allocation17_spill] sm:$0xff] %v3166_v2  ;;  %2475 = vmatmul.msk.bf16.gmra.mxu0 %vm279_vm0, %v2812_v27 }
 0x118   : > { %v694_v51 = vpop.f32.mrf.mxu2 }
 0x119   : > { %v921_v1 = vpop.f32.mrf.mxu3  ;;  %v762_v4 = vadd.f32 %v694_v51, %v501_v24  ;;  %v502_v20 = vpop.f32.mrf.mxu1 }
 0x11a   : > { %v503_v44 = vadd.f32 %v502_v20, %v2962_v35 }
 0x11b   : > { %v989_v23 = vadd.f32 %v921_v1, %v762_v4 }
 0x11c   : > { %v1149_v59 = vpop.f32.mrf.mxu0 }
 0x11d   : > { %v3172_v10 = vadd.f32 %v1147_v42, %v989_v23 }
 0x120   : > { %v696_v57 = vpop.f32.mrf.mxu2 }
 0x121   : > { %v923_v14 = vpop.f32.mrf.mxu3  ;;  %v763_v2 = vadd.f32 %v696_v57, %v503_v44  ;;  %v505_v27 = vpop.f32.mrf.mxu1  ;;  %v2400_v44 = vld [vmem:[%s2777_s27 + $0x170] sm:$0xff] }
 0x122   : > { %v506_v42 = vadd.f32 %v505_v27, %v2974_v25  ;;  %v3202_v25 = vpack.c.bf16 %v2400_v44, %v2399_v11  ;;  %v591_v44 = vld [vmem:[%s2777_s27 + $0x172] sm:$0xff] }
 0x123   : > { %v990_v9 = vadd.f32 %v923_v14, %v763_v2 }
 0x124   : > { %v1152_v24 = vpop.f32.mrf.mxu0  ;;  %2346 = vmatmul.msk.bf16.gmra.mxu1 %vm279_vm0, %v3158_v13 }
 0x125   : > { %2368 = vmatmul.msk.bf16.gmra.mxu2 %vm279_vm0, %v3178_v33  ;;  %v3188_v35 = vadd.f32 %v1149_v59, %v990_v9 }
 0x126   : > { %2422 = vmatmul.msk.bf16.gmra.mxu3 %vm279_vm0, %v3180_v30 }
 0x127   : > { %3605 = vst [vmem:[#allocation18_spill] sm:$0xff] %v3188_v35  ;;  %2476 = vmatmul.msk.bf16.gmra.mxu0 %vm279_vm0, %v2833_v39  ;;  %v3200_v35 = vpack.c.bf16 %v589_v36, %v588_v61  ;;  %v590_v36 = vld [vmem:[%s2777_s27 + $0x16a] sm:$0xff] }
 0x128   : > { %v699_v2 = vpop.f32.mrf.mxu2 }
 0x129   : > { %v926_v51 = vpop.f32.mrf.mxu3  ;;  %v764_v1 = vadd.f32 %v699_v2, %v506_v42  ;;  %v507_v4 = vpop.f32.mrf.mxu1 }
 0x12a   : > { %v508_v59 = vadd.f32 %v507_v4, %v2994_v52 }
 0x12b   : > { %v991_v20 = vadd.f32 %v926_v51, %v764_v1 }
 0x12c   : > { %v1154_v23 = vpop.f32.mrf.mxu0 }
 0x12d   : > { %v3194_v29 = vadd.f32 %v1152_v24, %v991_v20 }
 0x130   : > { %v701_v57 = vpop.f32.mrf.mxu2 }
 0x131   : > { %v928_v14 = vpop.f32.mrf.mxu3  ;;  %v765_v9 = vadd.f32 %v701_v57, %v508_v59  ;;  %v510_v39 = vpop.f32.mrf.mxu1  ;;  %v2401_v59 = vld [vmem:[%s2777_s27 + $0x180] sm:$0xff]  ;;  %v2402_v57 = vld [vmem:[%s2777_s27 + $0x188] sm:$0xff] }
 0x132   : > { %v511_v24 = vadd.f32 %v510_v39, %v3006_v37  ;;  %v3224_v39 = vpack.c.bf16 %v591_v44, %v590_v36 }
 0x133   : > { %v992_v27 = vadd.f32 %v928_v14, %v765_v9  ;;  %v2455_v14 = vld [vmem:[%s2777_s27 + $0x181] sm:$0xff]  ;;  %v2456_v9 = vld [vmem:[%s2777_s27 + $0x189] sm:$0xff] }
 0x134   : > { %v1157_v42 = vpop.f32.mrf.mxu0  ;;  %2347 = vmatmul.msk.bf16.gmra.mxu1 %vm279_vm0, %v3180_v30 }
 0x135   : > { %2369 = vmatmul.msk.bf16.gmra.mxu2 %vm279_vm0, %v3200_v35  ;;  %v3210_v52 = vadd.f32 %v1154_v23, %v992_v27 }
 0x136   : > { %2423 = vmatmul.msk.bf16.gmra.mxu3 %vm279_vm0, %v3202_v25 }
 0x137   : > { %3606 = vst [vmem:[#allocation19_spill] sm:$0xff] %v3210_v52  ;;  %2477 = vmatmul.msk.bf16.gmra.mxu0 %vm279_vm0, %v2869_v55 }
 0x138   : > { %v704_v2 = vpop.f32.mrf.mxu2 }
 0x139   : > { %v931_v51 = vpop.f32.mrf.mxu3  ;;  %v766_v1 = vadd.f32 %v704_v2, %v511_v24  ;;  %v512_v4 = vpop.f32.mrf.mxu1  ;;  %v3226_v24 = vpack.c.bf16 %v2402_v57, %v2401_v59  ;;  %v3228_v2 = vpack.c.bf16 %v2456_v9, %v2455_v14 }
 0x13a   : > { %v513_v23 = vadd.f32 %v512_v4, %v3026_v5 }
 0x13b   : > { %v993_v20 = vadd.f32 %v931_v51, %v766_v1 }
 0x13c   : > { %v1159_v61 = vpop.f32.mrf.mxu0 }
 0x13d   : > { %v3216_v11 = vadd.f32 %v1157_v42, %v993_v20 }
 0x140   : > { %v706_v27 = vpop.f32.mrf.mxu2 }
 0x141   : > { %v933_v55 = vpop.f32.mrf.mxu3  ;;  %v767_v52 = vadd.f32 %v706_v27, %v513_v23  ;;  %v515_v37 = vpop.f32.mrf.mxu1 }
 0x142   : > { %v516_v1 = vadd.f32 %v515_v37, %v3038_v53 }
 0x143   : > { %v994_v51 = vadd.f32 %v933_v55, %v767_v52 }
 0x144   : > { %v1162_v42 = vpop.f32.mrf.mxu0  ;;  %2348 = vmatmul.msk.bf16.gmra.mxu1 %vm279_vm0, %v3202_v25 }
 0x145   : > { %2370 = vmatmul.msk.bf16.gmra.mxu2 %vm279_vm0, %v3224_v39  ;;  %v3236_v5 = vadd.f32 %v1159_v61, %v994_v51 }
 0x146   : > { %2424 = vmatmul.msk.bf16.gmra.mxu3 %vm279_vm0, %v3226_v24 }
 0x147   : > { %2478 = vmatmul.msk.bf16.gmra.mxu0 %vm279_vm0, %v3228_v2 }
 0x148   : > { %v709_v4 = vpop.f32.mrf.mxu2 }
 0x149   : > { %v936_v20 = vpop.f32.mrf.mxu3  ;;  %v768_v52 = vadd.f32 %v709_v4, %v516_v1  ;;  %v517_v36 = vpop.f32.mrf.mxu1 }
 0x14a   : > { %v518_v23 = vadd.f32 %v517_v36, %v3058_v41 }
 0x14b   : > { %v995_v44 = vadd.f32 %v936_v20, %v768_v52 }
 0x14c   : > { %v1164_v59 = vpop.f32.mrf.mxu0 }
 0x14d   : > { %v3241_v57 = vadd.f32 %v1162_v42, %v995_v44 }
 0x150   : > { %v711_v14 = vpop.f32.mrf.mxu2 }
 0x151   : > { %v938_v9 = vpop.f32.mrf.mxu3  ;;  %v769_v27 = vadd.f32 %v711_v14, %v518_v23  ;;  %v520_v61 = vpop.f32.mrf.mxu1 }
 0x152   : > { %v521_v41 = vadd.f32 %v520_v61, %v2958_v8 }
 0x153   : > { %v996_v55 = vadd.f32 %v938_v9, %v769_v27 }
 0x154   : > { %v1167_v51 = vpop.f32.mrf.mxu0  ;;  %2517 = vmatmul.msk.bf16.vlgmr.msra.gmra.mxu1 %vm279_vm0, %v2895_v6 }
 0x155   : > { %2571 = vmatmul.msk.bf16.vlgmr.msra.gmra.mxu2 %vm279_vm0, %v2897_v7  ;;  %v3250_v53 = vadd.f32 %v1164_v59, %v996_v55 }
 0x156   : > { %2625 = vmatmul.msk.bf16.vlgmr.msra.gmra.mxu3 %vm279_vm0, %v2835_v40 }
 0x157   : > { %2679 = vmatmul.msk.bf16.vlgmr.msra.gmra.mxu0 %vm279_vm0, %v2910_v15 }
 0x158   : > { %v714_v37 = vpop.f32.mrf.mxu2 }
 0x159   : > { %v941_v42 = vpop.f32.mrf.mxu3  ;;  %v770_v1 = vadd.f32 %v714_v37, %v521_v41  ;;  %v522_v4 = vpop.f32.mrf.mxu1  ;;  %v2591_v37 = vld [vmem:[%s2777_s27 + $0x61] sm:$0xff] }
 0x15a   : > { %v523_v7 = vadd.f32 %v522_v4, %v2970_v45 }
 0x15b   : > { %v997_v20 = vadd.f32 %v941_v42, %v770_v1 }
 0x15c   : > { %v1169_v52 = vpop.f32.mrf.mxu0 }
 0x15d   : > { %v3255_v6 = vadd.f32 %v1167_v51, %v997_v20 }
 0x160   : > { %v716_v36 = vpop.f32.mrf.mxu2 }
 0x161   : > { %v943_v44 = vpop.f32.mrf.mxu3  ;;  %v771_v40 = vadd.f32 %v716_v36, %v523_v7  ;;  %v525_v59 = vpop.f32.mrf.mxu1 }
 0x162   : > { %v526_v45 = vadd.f32 %v525_v59, %v2990_v50 }
 0x163   : > { %v998_v23 = vadd.f32 %v943_v44, %v771_v40 }
 0x164   : > { %v1172_v14 = vpop.f32.mrf.mxu0  ;;  %2518 = vmatmul.msk.bf16.gmra.mxu1 %vm279_vm0, %v2910_v15 }
 0x165   : > { %2572 = vmatmul.msk.bf16.gmra.mxu2 %vm279_vm0, %v2912_v16  ;;  %v3264_v8 = vadd.f32 %v1169_v52, %v998_v23  ;;  %v2592_v16 = vld [vmem:[%s2777_s27 + $0x69] sm:$0xff] }
 0x166   : > { %2626 = vmatmul.msk.bf16.gmra.mxu3 %vm279_vm0, %v2871_v56  ;;  %v1726_v52 = vpack.c.bf16 %v2592_v16, %v2591_v37 }
 0x167   : > { %2680 = vmatmul.msk.bf16.gmra.mxu0 %vm279_vm0, %v2926_v21 }
 0x168   : > { %v719_v9 = vpop.f32.mrf.mxu2 }
 0x169   : > { %v946_v27 = vpop.f32.mrf.mxu3  ;;  %v772_v61 = vadd.f32 %v719_v9, %v526_v45  ;;  %v527_v55 = vpop.f32.mrf.mxu1 }
 0x16a   : > { %v528_v42 = vadd.f32 %v527_v55, %v3002_v62 }
 0x16b   : > { %v999_v51 = vadd.f32 %v946_v27, %v772_v61  ;;  %v2594_v27 = vld [vmem:[%s2777_s27 + $0x81] sm:$0xff] }
 0x16c   : > { %v1174_v41 = vpop.f32.mrf.mxu0 }
 0x16d   : > { %v3269_v15 = vadd.f32 %v1172_v14, %v999_v51 }
 0x170   : > { %v721_v56 = vpop.f32.mrf.mxu2 }
 0x171   : > { %v948_v1 = vpop.f32.mrf.mxu3  ;;  %v773_v4 = vadd.f32 %v721_v56, %v528_v42  ;;  %v530_v20 = vpop.f32.mrf.mxu1 }
 0x172   : > { %v531_v62 = vadd.f32 %v530_v20, %v3022_v3 }
 0x173   : > { %v1000_v7 = vadd.f32 %v948_v1, %v773_v4 }
 0x174   : > { %v1177_v50 = vpop.f32.mrf.mxu0  ;;  %2519 = vmatmul.msk.bf16.gmra.mxu1 %vm279_vm0, %v2926_v21  ;;  %v2593_v21 = vld [vmem:[%s2777_s27 + $0x79] sm:$0xff] }
 0x175   : > { %2573 = vmatmul.msk.bf16.gmra.mxu2 %vm279_vm0, %v2928_v22  ;;  %v3279_v36 = vadd.f32 %v1174_v41, %v1000_v7  ;;  %v1727_v37 = vpack.c.bf16 %v2594_v27, %v2593_v21 }
 0x176   : > { %2627 = vmatmul.msk.bf16.gmra.mxu3 %vm279_vm0, %v1726_v52 }
 0x177   : > { %2681 = vmatmul.msk.bf16.gmra.mxu0 %vm279_vm0, %v2944_v31 }
 0x178   : > { %v724_v44 = vpop.f32.mrf.mxu2 }
 0x179   : > { %v951_v40 = vpop.f32.mrf.mxu3  ;;  %v774_v59 = vadd.f32 %v724_v44, %v531_v62  ;;  %v532_v23 = vpop.f32.mrf.mxu1  ;;  %v2596_v62 = vld [vmem:[%s2777_s27 + $0x99] sm:$0xff] }
 0x17a   : > { %v533_v22 = vadd.f32 %v532_v23, %v3034_v18 }
 0x17b   : > { %v1001_v14 = vadd.f32 %v951_v40, %v774_v59 }
 0x17c   : > { %v1179_v45 = vpop.f32.mrf.mxu0 }
 0x17d   : > { %v3284_v9 = vadd.f32 %v1177_v50, %v1001_v14 }
 0x180   : > { %v726_v61 = vpop.f32.mrf.mxu2 }
 0x181   : > { %v953_v55 = vpop.f32.mrf.mxu3  ;;  %v775_v51 = vadd.f32 %v726_v61, %v533_v22  ;;  %v535_v41 = vpop.f32.mrf.mxu1 }
 0x182   : > { %v536_v18 = vadd.f32 %v535_v41, %v3054_v28 }
 0x183   : > { %v1002_v16 = vadd.f32 %v953_v55, %v775_v51 }
 0x184   : > { %v1182_v3 = vpop.f32.mrf.mxu0  ;;  %2520 = vmatmul.msk.bf16.gmra.mxu1 %vm279_vm0, %v2944_v31  ;;  %v2595_v31 = vld [vmem:[%s2777_s27 + $0x91] sm:$0xff] }
 0x185   : > { %2574 = vmatmul.msk.bf16.gmra.mxu2 %vm279_vm0, %v2946_v32  ;;  %v3294_v42 = vadd.f32 %v1179_v45, %v1002_v16  ;;  %v1728_v14 = vpack.c.bf16 %v2596_v62, %v2595_v31  ;;  %v2598_v16 = vld [vmem:[%s2777_s27 + $0xb1] sm:$0xff] }
 0x186   : > { %2628 = vmatmul.msk.bf16.gmra.mxu3 %vm279_vm0, %v1727_v37  ;;  %v3609_v62 = vld [vmem:[#allocation8_spill] sm:$0xff] }
 0x187   : > { %2682 = vmatmul.msk.bf16.gmra.mxu0 %vm279_vm0, %v2976_v47 }
 0x188   : > { %v729_v56 = vpop.f32.mrf.mxu2 }
 0x189   : > { %v956_v1 = vpop.f32.mrf.mxu3  ;;  %v776_v4 = vadd.f32 %v729_v56, %v536_v18  ;;  %v537_v20 = vpop.f32.mrf.mxu1 }
 0x18a   : > { %v538_v32 = vadd.f32 %v537_v20, %v3066_v60 }
 0x18b   : > { %v1003_v52 = vadd.f32 %v956_v1, %v776_v4 }
 0x18c   : > { %v1184_v7 = vpop.f32.mrf.mxu0 }
 0x18d   : > { %v3299_v50 = vadd.f32 %v1182_v3, %v1003_v52 }
 0x190   : > { %v731_v44 = vpop.f32.mrf.mxu2 }
 0x191   : > { %v958_v40 = vpop.f32.mrf.mxu3  ;;  %v777_v59 = vadd.f32 %v731_v44, %v538_v32  ;;  %v540_v23 = vpop.f32.mrf.mxu1  ;;  %v3610_v32 = vld [vmem:[#allocation3_spill] sm:$0xff] }
 0x192   : > { %v541_v60 = vadd.f32 %v540_v23, %v2960_v34 }
 0x193   : > { %v1004_v45 = vadd.f32 %v958_v40, %v777_v59 }
 0x194   : > { %v1187_v28 = vpop.f32.mrf.mxu0  ;;  %2521 = vmatmul.msk.bf16.gmra.mxu1 %vm279_vm0, %v2976_v47  ;;  %v2597_v47 = vld [vmem:[%s2777_s27 + $0xa9] sm:$0xff] }
 0x195   : > { %2575 = vmatmul.msk.bf16.gmra.mxu2 %vm279_vm0, %v2978_v48  ;;  %v3309_v21 = vadd.f32 %v1184_v7, %v1004_v45  ;;  %v3607_v48 = vld [vmem:[#allocation2_spill] sm:$0xff]  ;;  %v1729_v20 = vpack.c.bf16 %v2598_v16, %v2597_v47  ;;  %v3608_v7 = vld [vmem:[#allocation5_spill] sm:$0xff] }
 0x196   : > { %2629 = vmatmul.msk.bf16.gmra.mxu3 %vm279_vm0, %v1728_v14 }
 0x197   : > { %2683 = vmatmul.msk.bf16.gmra.mxu0 %vm279_vm0, %v3008_v0 }
 0x198   : > { %v734_v27 = vpop.f32.mrf.mxu2 }
 0x199   : > { %v961_v22 = vpop.f32.mrf.mxu3  ;;  %v778_v61 = vadd.f32 %v734_v27, %v541_v60  ;;  %v542_v55 = vpop.f32.mrf.mxu1  ;;  %v2600_v27 = vld [vmem:[%s2777_s27 + $0xc9] sm:$0xff] }
 0x19a   : > { %v543_v3 = vadd.f32 %v542_v55, %v3607_v48 }
 0x19b   : > { %v1005_v51 = vadd.f32 %v961_v22, %v778_v61  ;;  %v3611_v22 = vld [vmem:[#allocation4_spill] sm:$0xff] }
 0x19c   : > { %v1189_v41 = vpop.f32.mrf.mxu0 }
 0x19d   : > { %v3314_v37 = vadd.f32 %v1187_v28, %v1005_v51 }
 0x1a0   : > { %v736_v18 = vpop.f32.mrf.mxu2 }
 0x1a1   : > { %v963_v56 = vpop.f32.mrf.mxu3  ;;  %v779_v1 = vadd.f32 %v736_v18, %v543_v3  ;;  %v545_v4 = vpop.f32.mrf.mxu1  ;;  %v3612_v18 = vld [vmem:[#allocation9_spill] sm:$0xff] }
 0x1a2   : > { %v546_v44 = vadd.f32 %v545_v4, %v3610_v32  ;;  %v3614_v4 = vld [vmem:[#allocation6_spill] sm:$0xff] }
 0x1a3   : > { %v1006_v52 = vadd.f32 %v963_v56, %v779_v1  ;;  %v3613_v1 = vld [vmem:[#allocation12_spill] sm:$0xff] }
 0x1a4   : > { %v1192_v34 = vpop.f32.mrf.mxu0  ;;  %2522 = vmatmul.msk.bf16.gmra.mxu1 %vm279_vm0, %v3008_v0  ;;  %v2599_v0 = vld [vmem:[%s2777_s27 + $0xc1] sm:$0xff] }
 0x1a5   : > { %2576 = vmatmul.msk.bf16.gmra.mxu2 %vm279_vm0, %v3608_v7  ;;  %v3324_v31 = vadd.f32 %v1189_v41, %v1006_v52  ;;  %v1730_v16 = vpack.c.bf16 %v2600_v27, %v2599_v0 }
 0x1a6   : > { %2630 = vmatmul.msk.bf16.gmra.mxu3 %vm279_vm0, %v1729_v20 }
 0x1a7   : > { %2684 = vmatmul.msk.bf16.gmra.mxu0 %vm279_vm0, %v3609_v62 }
 0x1a8   : > { %v739_v40 = vpop.f32.mrf.mxu2 }
 0x1a9   : > { %v966_v59 = vpop.f32.mrf.mxu3  ;;  %v780_v23 = vadd.f32 %v739_v40, %v546_v44  ;;  %v547_v14 = vpop.f32.mrf.mxu1 }
 0x1aa   : > { %v548_v61 = vadd.f32 %v547_v14, %v3611_v22  ;;  %v3615_v14 = vld [vmem:[#allocation7_spill] sm:$0xff] }
 0x1ab   : > { %v1007_v45 = vadd.f32 %v966_v59, %v780_v23  ;;  %v2602_v23 = vld [vmem:[%s2777_s27 + $0xe1] sm:$0xff] }
 0x1ac   : > { %v1194_v28 = vpop.f32.mrf.mxu0 }
 0x1ad   : > { %v3329_v60 = vadd.f32 %v1192_v34, %v1007_v45 }
 0x1b0   : > { %v741_v55 = vpop.f32.mrf.mxu2 }
 0x1b1   : > { %v968_v51 = vpop.f32.mrf.mxu3  ;;  %v781_v41 = vadd.f32 %v741_v55, %v548_v61  ;;  %v550_v47 = vpop.f32.mrf.mxu1 }
 0x1b2   : > { %v551_v20 = vadd.f32 %v550_v47, %v3614_v4  ;;  %v3616_v47 = vld [vmem:[#allocation10_spill] sm:$0xff] }
 0x1b3   : > { %v1008_v48 = vadd.f32 %v968_v51, %v781_v41 }
 0x1b4   : > { %v1197_v3 = vpop.f32.mrf.mxu0  ;;  %2523 = vmatmul.msk.bf16.gmra.mxu1 %vm279_vm0, %v3609_v62  ;;  %v2601_v62 = vld [vmem:[%s2777_s27 + $0xd9] sm:$0xff] }
 0x1b5   : > { %2577 = vmatmul.msk.bf16.gmra.mxu2 %vm279_vm0, %v3612_v18  ;;  %v3339_v56 = vadd.f32 %v1194_v28, %v1008_v48  ;;  %v1731_v61 = vpack.c.bf16 %v2602_v23, %v2601_v62 }
 0x1b6   : > { %2631 = vmatmul.msk.bf16.gmra.mxu3 %vm279_vm0, %v1730_v16 }
 0x1b7   : > { %2685 = vmatmul.msk.bf16.gmra.mxu0 %vm279_vm0, %v3613_v1 }
 0x1b8   : > { %v744_v52 = vpop.f32.mrf.mxu2 }
 0x1b9   : > { %v971_v34 = vpop.f32.mrf.mxu3  ;;  %v782_v7 = vadd.f32 %v744_v52, %v551_v20  ;;  %v552_v32 = vpop.f32.mrf.mxu1 }
 0x1ba   : > { %v553_v45 = vadd.f32 %v552_v32, %v3615_v14 }
 0x1bb   : > { %v1009_v44 = vadd.f32 %v971_v34, %v782_v7  ;;  %v2604_v7 = vld [vmem:[%s2777_s27 + $0xf9] sm:$0xff] }
 0x1bc   : > { %v1199_v40 = vpop.f32.mrf.mxu0 }
 0x1bd   : > { %v3344_v59 = vadd.f32 %v1197_v3, %v1009_v44 }
 0x1c0   : > { %v746_v0 = vpop.f32.mrf.mxu2 }
 0x1c1   : > { %v973_v28 = vpop.f32.mrf.mxu3  ;;  %v783_v27 = vadd.f32 %v746_v0, %v553_v45  ;;  %v555_v22 = vpop.f32.mrf.mxu1 }
 0x1c2   : > { %v556_v16 = vadd.f32 %v555_v22, %v3616_v47 }
 0x1c3   : > { %v1010_v55 = vadd.f32 %v973_v28, %v783_v27 }
 0x1c4   : > { %v1202_v51 = vpop.f32.mrf.mxu0  ;;  %2524 = vmatmul.msk.bf16.gmra.mxu1 %vm279_vm0, %v3613_v1  ;;  %v2603_v1 = vld [vmem:[%s2777_s27 + $0xf1] sm:$0xff] }
 0x1c5   : > { %2578 = vmatmul.msk.bf16.gmra.mxu2 %vm279_vm0, %v3072_v12  ;;  %v3354_v41 = vadd.f32 %v1199_v40, %v1010_v55  ;;  %v3617_v12 = vld [vmem:[#allocation11_spill] sm:$0xff]  ;;  %v1732_v14 = vpack.c.bf16 %v2604_v7, %v2603_v1 }
 0x1c6   : > { %2632 = vmatmul.msk.bf16.gmra.mxu3 %vm279_vm0, %v1731_v61 }
 0x1c7   : > { %2686 = vmatmul.msk.bf16.gmra.mxu0 %vm279_vm0, %v3090_v46 }
 0x1c8   : > { %v749_v48 = vpop.f32.mrf.mxu2 }
 0x1c9   : > { %v976_v3 = vpop.f32.mrf.mxu3  ;;  %v784_v18 = vadd.f32 %v749_v48, %v556_v16  ;;  %v557_v4 = vpop.f32.mrf.mxu1  ;;  %v2605_v48 = vld [vmem:[%s2777_s27 + $0x109] sm:$0xff] }
 0x1ca   : > { %v558_v32 = vadd.f32 %v557_v4, %v3617_v12  ;;  %v3618_v4 = vld [vmem:[#allocation13_spill] sm:$0xff] }
 0x1cb   : > { %v1011_v20 = vadd.f32 %v976_v3, %v784_v18  ;;  %v2606_v3 = vld [vmem:[%s2777_s27 + $0x111] sm:$0xff] }
 0x1cc   : > { %v1204_v52 = vpop.f32.mrf.mxu0 }
 0x1cd   : > { %v3359_v34 = vadd.f32 %v1202_v51, %v1011_v20 }
 0x1d0   : > { %v751_v44 = vpop.f32.mrf.mxu2 }
 0x1d1   : > { %v978_v40 = vpop.f32.mrf.mxu3  ;;  %v785_v62 = vadd.f32 %v751_v44, %v558_v32  ;;  %v1353_v23 = vpop.f32.mrf.mxu1  ;;  %v1733_v32 = vpack.c.bf16 %v2606_v3, %v2605_v48 }
 0x1d2   : > { %v1433_v27 = vadd.f32 %v1353_v23, %v3085_v19 }
 0x1d3   : > { %v1012_v45 = vadd.f32 %v978_v40, %v785_v62 }
 0x1d4   : > { %v2032_v0 = vpop.f32.mrf.mxu0  ;;  %2525 = vmatmul.msk.bf16.gmra.mxu1 %vm279_vm0, %v3090_v46  ;;  %v3377_v46 = vld [vmem:[%s3581_s2] ss:$0 sm:$0xff] }
 0x1d5   : > { %2579 = vmatmul.msk.bf16.gmra.mxu2 %vm279_vm0, %v3092_v26  ;;  %v3369_v28 = vadd.f32 %v1204_v52, %v1012_v45 }
 0x1d6   : > { %2633 = vmatmul.msk.bf16.gmra.mxu3 %vm279_vm0, %v1732_v14 }
 0x1d7   : > { %2687 = vmatmul.msk.bf16.gmra.mxu0 %vm279_vm0, %v3112_v63 }
 0x1d8   : > { %v1580_v22 = vpop.f32.mrf.mxu2 }
 0x1d9   : > { %v1806_v61 = vpop.f32.mrf.mxu3  ;;  %v1660_v55 = vadd.f32 %v1580_v22, %v1433_v27  ;;  %v1355_v51 = vpop.f32.mrf.mxu1 }
 0x1da   : > { %v1434_v20 = vadd.f32 %v1355_v51, %v3618_v4  ;;  %v2607_v51 = vld [vmem:[%s2777_s27 + $0x121] sm:$0xff] }
 0x1db   : > { %v1886_v47 = vadd.f32 %v1806_v61, %v1660_v55 }
 0x1dc   : > { %v2034_v26 = vpop.f32.mrf.mxu0 }
 0x1dd   : > { %v2112_v16 = vadd.f32 %v2032_v0, %v1886_v47  ;;  %v2608_v47 = vld [vmem:[%s2777_s27 + $0x129] sm:$0xff] }
 0x1df   : > { %v2148_v18 = vadd.f32 %v3377_v46, %v2112_v16  ;;  %v3619_v16 = vld [vmem:[#allocation14_spill] sm:$0xff] }
 0x1e0   : > { %v1582_v19 = vpop.f32.mrf.mxu2 }
 0x1e1   : > { %v1808_v52 = vpop.f32.mrf.mxu3  ;;  %v2180_v1 = vmax.f32 %v2148_v18, 0.0  ;;  %v1661_v7 = vadd.f32 %v1582_v19, %v1434_v20  ;;  %v1358_v12 = vpop.f32.mrf.mxu1  ;;  %v1734_v19 = vpack.c.bf16 %v2608_v47, %v2607_v51 }
 0x1e2   : > { %v1435_v14 = vadd.f32 %v1358_v12, %v3107_v17 }
 0x1e3   : > { %2212 = vst.msk [vmem:[%s3387_s16] sm:$0xff] %vm279_vm0, %v2180_v1  ;;  %v1887_v44 = vadd.f32 %v1808_v52, %v1661_v7 }
 0x1e4   : > { %v2037_v40 = vpop.f32.mrf.mxu0  ;;  %2526 = vmatmul.msk.bf16.gmra.mxu1 %vm279_vm0, %v3112_v63 }
 0x1e5   : > { %v2113_v62 = vadd.f32 %v2034_v26, %v1887_v44  ;;  %2580 = vmatmul.msk.bf16.gmra.mxu2 %vm279_vm0, %v3114_v38 }
 0x1e6   : > { %2634 = vmatmul.msk.bf16.gmra.mxu3 %vm279_vm0, %v1733_v32 }
 0x1e7   : > { %2688 = vmatmul.msk.bf16.gmra.mxu0 %vm279_vm0, %v3134_v43  ;;  %v2149_v23 = vadd.f32 %v3377_v46, %v2113_v62 }
 0x1e8   : > { %v1585_v45 = vpop.f32.mrf.mxu2 }
 0x1e9   : > { %v1811_v0 = vpop.f32.mrf.mxu3  ;;  %v2181_v27 = vmax.f32 %v2149_v23, 0.0  ;;  %v1662_v22 = vadd.f32 %v1585_v45, %v1435_v14  ;;  %v1360_v63 = vpop.f32.mrf.mxu1 }
 0x1ea   : > { %v1436_v48 = vadd.f32 %v1360_v63, %v3619_v16  ;;  %v3620_v63 = vld [vmem:[#allocation15_spill] sm:$0xff] }
 0x1eb   : > { %2213 = vst.msk [vmem:[%s3387_s16 + $0x8] sm:$0xff] %vm279_vm0, %v2181_v27  ;;  %v1888_v61 = vadd.f32 %v1811_v0, %v1662_v22  ;;  %v2609_v0 = vld [vmem:[%s2777_s27 + $0x139] sm:$0xff]  ;;  %v2610_v27 = vld [vmem:[%s2777_s27 + $0x141] sm:$0xff] }
 0x1ec   : > { %v2039_v55 = vpop.f32.mrf.mxu0 }
 0x1ed   : > { %v2114_v38 = vadd.f32 %v2037_v40, %v1888_v61 }
 0x1ef   : > { %v2150_v26 = vadd.f32 %v3377_v46, %v2114_v38 }
 0x1f0   : > { %v1587_v3 = vpop.f32.mrf.mxu2 }
 0x1f1   : > { %v1813_v18 = vpop.f32.mrf.mxu3  ;;  %v2182_v17 = vmax.f32 %v2150_v26, 0.0  ;;  %v1663_v4 = vadd.f32 %v1587_v3, %v1436_v48  ;;  %v1363_v20 = vpop.f32.mrf.mxu1  ;;  %v1735_v26 = vpack.c.bf16 %v2610_v27, %v2609_v0 }
 0x1f2   : > { %v1437_v32 = vadd.f32 %v1363_v20, %v3129_v58 }
 0x1f3   : > { %2214 = vst.msk [vmem:[%s3387_s16 + $0x10] sm:$0xff] %vm279_vm0, %v2182_v17  ;;  %v1889_v52 = vadd.f32 %v1813_v18, %v1663_v4  ;;  %v3621_v17 = vld [vmem:[#allocation16_spill] sm:$0xff] }
 0x1f4   : > { %v2042_v1 = vpop.f32.mrf.mxu0  ;;  %2527 = vmatmul.msk.bf16.gmra.mxu1 %vm279_vm0, %v3134_v43 }
 0x1f5   : > { %v2115_v7 = vadd.f32 %v2039_v55, %v1889_v52  ;;  %2581 = vmatmul.msk.bf16.gmra.mxu2 %vm279_vm0, %v3136_v54 }
 0x1f6   : > { %2635 = vmatmul.msk.bf16.gmra.mxu3 %vm279_vm0, %v1734_v19 }
 0x1f7   : > { %2689 = vmatmul.msk.bf16.gmra.mxu0 %vm279_vm0, %v3156_v49  ;;  %v2151_v12 = vadd.f32 %v3377_v46, %v2115_v7 }
 0x1f8   : > { %v1590_v44 = vpop.f32.mrf.mxu2 }
 0x1f9   : > { %v1816_v40 = vpop.f32.mrf.mxu3  ;;  %v2183_v62 = vmax.f32 %v2151_v12, 0.0  ;;  %v1664_v23 = vadd.f32 %v1590_v44, %v1437_v32  ;;  %v1365_v43 = vpop.f32.mrf.mxu1  ;;  %v2611_v32 = vld [vmem:[%s2777_s27 + $0x151] sm:$0xff]  ;;  %v2612_v44 = vld [vmem:[%s2777_s27 + $0x159] sm:$0xff] }
 0x1fa   : > { %v1438_v61 = vadd.f32 %v1365_v43, %v3620_v63  ;;  %v1736_v27 = vpack.c.bf16 %v2612_v44, %v2611_v32 }
 0x1fb   : > { %2215 = vst.msk [vmem:[%s3387_s16 + $0x18] sm:$0xff] %vm279_vm0, %v2183_v62  ;;  %v1890_v14 = vadd.f32 %v1816_v40, %v1664_v23  ;;  %v3622_v62 = vld [vmem:[#allocation17_spill] sm:$0xff] }
 0x1fc   : > { %v2044_v45 = vpop.f32.mrf.mxu0 }
 0x1fd   : > { %v2116_v54 = vadd.f32 %v2042_v1, %v1890_v14 }
 0x1ff   : > { %v2152_v22 = vadd.f32 %v3377_v46, %v2116_v54 }
 0x200   : > { %v1592_v55 = vpop.f32.mrf.mxu2 }
 0x201   : > { %v1818_v38 = vpop.f32.mrf.mxu3  ;;  %v2184_v58 = vmax.f32 %v2152_v22, 0.0  ;;  %v1665_v51 = vadd.f32 %v1592_v55, %v1438_v61  ;;  %v1368_v47 = vpop.f32.mrf.mxu1 }
 0x202   : > { %v1439_v4 = vadd.f32 %v1368_v47, %v3621_v17 }
 0x203   : > { %2216 = vst.msk [vmem:[%s3387_s16 + $0x20] sm:$0xff] %vm279_vm0, %v2184_v58  ;;  %v1891_v16 = vadd.f32 %v1818_v38, %v1665_v51 }
 0x204   : > { %v2047_v48 = vpop.f32.mrf.mxu0  ;;  %2528 = vmatmul.msk.bf16.gmra.mxu1 %vm279_vm0, %v3156_v49 }
 0x205   : > { %v2117_v3 = vadd.f32 %v2044_v45, %v1891_v16  ;;  %2582 = vmatmul.msk.bf16.gmra.mxu2 %vm279_vm0, %v3158_v13 }
 0x206   : > { %2636 = vmatmul.msk.bf16.gmra.mxu3 %vm279_vm0, %v1735_v26 }
 0x207   : > { %2690 = vmatmul.msk.bf16.gmra.mxu0 %vm279_vm0, %v3178_v33  ;;  %v2153_v18 = vadd.f32 %v3377_v46, %v2117_v3  ;;  %v2613_v3 = vld [vmem:[%s2777_s27 + $0x169] sm:$0xff] }
 0x208   : > { %v1595_v20 = vpop.f32.mrf.mxu2 }
 0x209   : > { %v1821_v19 = vpop.f32.mrf.mxu3  ;;  %v2185_v52 = vmax.f32 %v2153_v18, 0.0  ;;  %v1666_v1 = vadd.f32 %v1595_v20, %v1439_v4  ;;  %v1370_v49 = vpop.f32.mrf.mxu1  ;;  %v2614_v18 = vld [vmem:[%s2777_s27 + $0x171] sm:$0xff]  ;;  %v3623_v4 = vld [vmem:[#allocation18_spill] sm:$0xff] }
 0x20a   : > { %v1440_v23 = vadd.f32 %v1370_v49, %v3622_v62 }
 0x20b   : > { %2217 = vst.msk [vmem:[%s3387_s16 + $0x28] sm:$0xff] %vm279_vm0, %v2185_v52  ;;  %v1892_v7 = vadd.f32 %v1821_v19, %v1666_v1 }
 0x20c   : > { %v2049_v12 = vpop.f32.mrf.mxu0 }
 0x20d   : > { %v2118_v13 = vadd.f32 %v2047_v48, %v1892_v7  ;;  %v1737_v7 = vpack.c.bf16 %v2614_v18, %v2613_v3 }
 0x20f   : > { %v2154_v40 = vadd.f32 %v3377_v46, %v2118_v13 }
 0x210   : > { %v1597_v43 = vpop.f32.mrf.mxu2 }
 0x211   : > { %v1823_v14 = vpop.f32.mrf.mxu3  ;;  %v2186_v45 = vmax.f32 %v2154_v40, 0.0  ;;  %v1667_v54 = vadd.f32 %v1597_v43, %v1440_v23  ;;  %v1373_v0 = vpop.f32.mrf.mxu1 }
 0x212   : > { %v1441_v38 = vadd.f32 %v1373_v0, %v3172_v10 }
 0x213   : > { %2218 = vst.msk [vmem:[%s3387_s16 + $0x30] sm:$0xff] %vm279_vm0, %v2186_v45  ;;  %v1893_v22 = vadd.f32 %v1823_v14, %v1667_v54 }
 0x214   : > { %v2052_v63 = vpop.f32.mrf.mxu0  ;;  %2529 = vmatmul.msk.bf16.gmra.mxu1 %vm279_vm0, %v3178_v33 }
 0x215   : > { %v2119_v61 = vadd.f32 %v2049_v12, %v1893_v22  ;;  %2583 = vmatmul.msk.bf16.gmra.mxu2 %vm279_vm0, %v3180_v30 }
 0x216   : > { %2637 = vmatmul.msk.bf16.gmra.mxu3 %vm279_vm0, %v1736_v27  ;;  %v3624_v27 = vld [vmem:[#allocation19_spill] sm:$0xff] }
 0x217   : > { %2691 = vmatmul.msk.bf16.gmra.mxu0 %vm279_vm0, %v3200_v35  ;;  %v2155_v55 = vadd.f32 %v3377_v46, %v2119_v61  ;;  %v2670_v61 = vld [vmem:[%s2777_s27 + $0x18a] sm:$0xff] }
 0x218   : > { %v1600_v58 = vpop.f32.mrf.mxu2 }
 0x219   : > { %v1826_v51 = vpop.f32.mrf.mxu3  ;;  %v2187_v47 = vmax.f32 %v2155_v55, 0.0  ;;  %v1668_v26 = vadd.f32 %v1600_v58, %v1441_v38  ;;  %v1375_v33 = vpop.f32.mrf.mxu1 }
 0x21a   : > { %v1442_v20 = vadd.f32 %v1375_v33, %v3623_v4 }
 0x21b   : > { %2219 = vst.msk [vmem:[%s3387_s16 + $0x38] sm:$0xff] %vm279_vm0, %v2187_v47  ;;  %v1894_v16 = vadd.f32 %v1826_v51, %v1668_v26 }
 0x21c   : > { %v2054_v48 = vpop.f32.mrf.mxu0 }
 0x21d   : > { %v2120_v30 = vadd.f32 %v2052_v63, %v1894_v16  ;;  %v2669_v63 = vld [vmem:[%s2777_s27 + $0x182] sm:$0xff] }
 0x21e   : > { %v1964_v47 = vpack.c.bf16 %v2670_v61, %v2669_v63 }
 0x21f   : > { %v2156_v17 = vadd.f32 %v3377_v46, %v2120_v30 }
 0x220   : > { %v1602_v19 = vpop.f32.mrf.mxu2 }
 0x221   : > { %v1828_v52 = vpop.f32.mrf.mxu3  ;;  %v2188_v10 = vmax.f32 %v2156_v17, 0.0  ;;  %v1669_v1 = vadd.f32 %v1602_v19, %v1442_v20  ;;  %v1378_v49 = vpop.f32.mrf.mxu1 }
 0x222   : > { %v1443_v40 = vadd.f32 %v1378_v49, %v3194_v29 }
 0x223   : > { %2220 = vst.msk [vmem:[%s3387_s16 + $0x40] sm:$0xff] %vm279_vm0, %v2188_v10  ;;  %v1895_v12 = vadd.f32 %v1828_v52, %v1669_v1  ;;  %v2564_v52 = vld [vmem:[%s2777_s27 + $0x1a0] sm:$0xff] }
 0x224   : > { %v2057_v13 = vpop.f32.mrf.mxu0  ;;  %2530 = vmatmul.msk.bf16.gmra.mxu1 %vm279_vm0, %v3200_v35  ;;  %v2617_v10 = vld [vmem:[%s2777_s27 + $0x199] sm:$0xff]  ;;  %v2618_v1 = vld [vmem:[%s2777_s27 + $0x1a1] sm:$0xff] }
 0x225   : > { %v2121_v32 = vadd.f32 %v2054_v48, %v1895_v12  ;;  %2584 = vmatmul.msk.bf16.gmra.mxu2 %vm279_vm0, %v3202_v25  ;;  %v2672_v12 = vld [vmem:[%s2777_s27 + $0x1a2] sm:$0xff] }
 0x226   : > { %2638 = vmatmul.msk.bf16.gmra.mxu3 %vm279_vm0, %v1737_v7  ;;  %v2671_v7 = vld [vmem:[%s2777_s27 + $0x19a] sm:$0xff] }
 0x227   : > { %2692 = vmatmul.msk.bf16.gmra.mxu0 %vm279_vm0, %v3224_v39  ;;  %v2157_v44 = vadd.f32 %v3377_v46, %v2121_v32 }
 0x228   : > { %v1605_v62 = vpop.f32.mrf.mxu2 }
 0x229   : > { %v1831_v23 = vpop.f32.mrf.mxu3  ;;  %v2189_v43 = vmax.f32 %v2157_v44, 0.0  ;;  %v1670_v14 = vadd.f32 %v1605_v62, %v1443_v40  ;;  %v1380_v35 = vpop.f32.mrf.mxu1 }
 0x22a   : > { %v1444_v22 = vadd.f32 %v1380_v35, %v3624_v27 }
 0x22b   : > { %2221 = vst.msk [vmem:[%s3387_s16 + $0x48] sm:$0xff] %vm279_vm0, %v2189_v43  ;;  %v1896_v25 = vadd.f32 %v1831_v23, %v1670_v14  ;;  %v1739_v43 = vpack.c.bf16 %v2618_v1, %v2617_v10  ;;  %v1965_v14 = vpack.c.bf16 %v2672_v12, %v2671_v7 }
 0x22c   : > { %v2059_v45 = vpop.f32.mrf.mxu0 }
 0x22d   : > { %v2122_v54 = vadd.f32 %v2057_v13, %v1896_v25 }
 0x22f   : > { %v2158_v0 = vadd.f32 %v3377_v46, %v2122_v54 }
 0x230   : > { %v1607_v55 = vpop.f32.mrf.mxu2 }
 0x231   : > { %v1833_v38 = vpop.f32.mrf.mxu3  ;;  %v2190_v29 = vmax.f32 %v2158_v0, 0.0  ;;  %v1671_v58 = vadd.f32 %v1607_v55, %v1444_v22  ;;  %v1383_v51 = vpop.f32.mrf.mxu1 }
 0x232   : > { %v1445_v30 = vadd.f32 %v1383_v51, %v3216_v11 }
 0x233   : > { %2222 = vst.msk [vmem:[%s3387_s16 + $0x50] sm:$0xff] %vm279_vm0, %v2190_v29  ;;  %v1897_v26 = vadd.f32 %v1833_v38, %v1671_v58 }
 0x234   : > { %v2062_v33 = vpop.f32.mrf.mxu0  ;;  %2531 = vmatmul.msk.bf16.gmra.mxu1 %vm279_vm0, %v3224_v39 }
 0x235   : > { %v2123_v16 = vadd.f32 %v2059_v45, %v1897_v26  ;;  %2585 = vmatmul.msk.bf16.gmra.mxu2 %vm279_vm0, %v3226_v24 }
 0x236   : > { %2639 = vmatmul.msk.bf16.gmra.mxu3 %vm279_vm0, %v3228_v2  ;;  %v2563_v2 = vld [vmem:[%s2777_s27 + $0x198] sm:$0xff] }
 0x237   : > { %2693 = vmatmul.msk.bf16.gmra.mxu0 %vm279_vm0, %v1964_v47  ;;  %v2159_v48 = vadd.f32 %v3377_v46, %v2123_v16  ;;  %v1513_v23 = vpack.c.bf16 %v2564_v52, %v2563_v2 }
 0x238   : > { %v1610_v3 = vpop.f32.mrf.mxu2 }
 0x239   : > { %v1836_v39 = vpop.f32.mrf.mxu3  ;;  %v2191_v18 = vmax.f32 %v2159_v48, 0.0  ;;  %v1672_v17 = vadd.f32 %v1610_v3, %v1445_v30  ;;  %v1385_v4 = vpop.f32.mrf.mxu1 }
 0x23a   : > { %v1446_v11 = vadd.f32 %v1385_v4, %v3236_v5 }
 0x23b   : > { %2223 = vst.msk [vmem:[%s3387_s16 + $0x58] sm:$0xff] %vm279_vm0, %v2191_v18  ;;  %v1898_v24 = vadd.f32 %v1836_v39, %v1672_v17 }
 0x23c   : > { %v2064_v20 = vpop.f32.mrf.mxu0 }
 0x23d   : > { %v2124_v19 = vadd.f32 %v2062_v33, %v1898_v24 }
 0x23f   : > { %v2160_v49 = vadd.f32 %v3377_v46, %v2124_v19 }
 0x240   : > { %v1612_v13 = vpop.f32.mrf.mxu2 }
 0x241   : > { %v1838_v32 = vpop.f32.mrf.mxu3  ;;  %v2192_v44 = vmax.f32 %v2160_v49, 0.0  ;;  %v1673_v40 = vadd.f32 %v1612_v13, %v1446_v11  ;;  %v1388_v62 = vpop.f32.mrf.mxu1 }
 0x242   : > { %v1447_v54 = vadd.f32 %v1388_v62, %v3241_v57 }
 0x243   : > { %2224 = vst.msk [vmem:[%s3387_s16 + $0x60] sm:$0xff] %vm279_vm0, %v2192_v44  ;;  %v1899_v35 = vadd.f32 %v1838_v32, %v1673_v40 }
 0x244   : > { %v2067_v25 = vpop.f32.mrf.mxu0  ;;  %2532 = vmatmul.msk.bf16.gmra.mxu1 %vm279_vm0, %v1964_v47 }
 0x245   : > { %v2125_v45 = vadd.f32 %v2064_v20, %v1899_v35  ;;  %2586 = vmatmul.msk.bf16.gmra.mxu2 %vm279_vm0, %v1513_v23 }
 0x246   : > { %2640 = vmatmul.msk.bf16.gmra.mxu3 %vm279_vm0, %v1739_v43 }
 0x247   : > { %2694 = vmatmul.msk.bf16.gmra.mxu0 %vm279_vm0, %v1965_v14  ;;  %v2161_v5 = vadd.f32 %v3377_v46, %v2125_v45 }
 0x248   : > { %v1615_v0 = vpop.f32.mrf.mxu2 }
 0x249   : > { %v1841_v27 = vpop.f32.mrf.mxu3  ;;  %v2193_v22 = vmax.f32 %v2161_v5, 0.0  ;;  %v1674_v63 = vadd.f32 %v1615_v0, %v1447_v54  ;;  %v1390_v61 = vpop.f32.mrf.mxu1 }
 0x24a   : > { %v1448_v51 = vadd.f32 %v1390_v61, %v3250_v53 }
 0x24b   : > { %2225 = vst.msk [vmem:[%s3387_s16 + $0x68] sm:$0xff] %vm279_vm0, %v2193_v22  ;;  %v1900_v55 = vadd.f32 %v1841_v27, %v1674_v63 }
 0x24c   : > { %v2069_v38 = vpop.f32.mrf.mxu0 }
 0x24d   : > { %v2126_v29 = vadd.f32 %v2067_v25, %v1900_v55 }
 0x24f   : > { %v2162_v58 = vadd.f32 %v3377_v46, %v2126_v29 }
 0x250   : > { %v1617_v47 = vpop.f32.mrf.mxu2 }
 0x251   : > { %v1843_v26 = vpop.f32.mrf.mxu3  ;;  %v2194_v33 = vmax.f32 %v2162_v58, 0.0  ;;  %v1675_v57 = vadd.f32 %v1617_v47, %v1448_v51  ;;  %v1393_v16 = vpop.f32.mrf.mxu1 }
 0x252   : > { %v1449_v18 = vadd.f32 %v1393_v16, %v3255_v6 }
 0x253   : > { %2226 = vst.msk [vmem:[%s3387_s16 + $0x70] sm:$0xff] %vm279_vm0, %v2194_v33  ;;  %v1901_v48 = vadd.f32 %v1843_v26, %v1675_v57 }
 0x254   : > { %v2072_v30 = vpop.f32.mrf.mxu0 }
 0x255   : > { %v2127_v3 = vadd.f32 %v2069_v38, %v1901_v48 }
 0x257   : > { %v2163_v39 = vadd.f32 %v3377_v46, %v2127_v3 }
 0x258   : > { %v1620_v17 = vpop.f32.mrf.mxu2 }
 0x259   : > { %v1846_v4 = vpop.f32.mrf.mxu3  ;;  %v2195_v24 = vmax.f32 %v2163_v39, 0.0  ;;  %v1676_v53 = vadd.f32 %v1620_v17, %v1449_v18  ;;  %v1395_v20 = vpop.f32.mrf.mxu1 }
 0x25a   : > { %v1450_v1 = vadd.f32 %v1395_v20, %v3264_v8 }
 0x25b   : > { %2227 = vst.msk [vmem:[%s3387_s16 + $0x78] sm:$0xff] %vm279_vm0, %v2195_v24  ;;  %v1902_v19 = vadd.f32 %v1846_v4, %v1676_v53 }
 0x25c   : > { %v2074_v2 = vpop.f32.mrf.mxu0 }
 0x25d   : > { %v2128_v52 = vadd.f32 %v2072_v30, %v1902_v19 }
 0x25f   : > { %v2164_v10 = vadd.f32 %v3377_v46, %v2128_v52 }
 0x260   : > { %v1622_v49 = vpop.f32.mrf.mxu2 }
 0x261   : > { %v1848_v11 = vpop.f32.mrf.mxu3  ;;  %v2196_v7 = vmax.f32 %v2164_v10, 0.0  ;;  %v1677_v6 = vadd.f32 %v1622_v49, %v1450_v1  ;;  %v1398_v12 = vpop.f32.mrf.mxu1 }
 0x262   : > { %v1451_v62 = vadd.f32 %v1398_v12, %v3269_v15 }
 0x263   : > { %2228 = vst.msk [vmem:[%s3387_s16 + $0x80] sm:$0xff] %vm279_vm0, %v2196_v7  ;;  %v1903_v13 = vadd.f32 %v1848_v11, %v1677_v6 }
 0x264   : > { %v2077_v32 = vpop.f32.mrf.mxu0 }
 0x265   : > { %v2129_v44 = vadd.f32 %v2074_v2, %v1903_v13 }
 0x267   : > { %v2165_v40 = vadd.f32 %v3377_v46, %v2129_v44 }
 0x268   : > { %v1625_v23 = vpop.f32.mrf.mxu2 }
 0x269   : > { %v1851_v43 = vpop.f32.mrf.mxu3  ;;  %v2197_v14 = vmax.f32 %v2165_v40, 0.0  ;;  %v1678_v8 = vadd.f32 %v1625_v23, %v1451_v62  ;;  %v1400_v35 = vpop.f32.mrf.mxu1 }
 0x26a   : > { %v1452_v0 = vadd.f32 %v1400_v35, %v3279_v36 }
 0x26b   : > { %2229 = vst.msk [vmem:[%s3387_s16 + $0x88] sm:$0xff] %vm279_vm0, %v2197_v14  ;;  %v1904_v25 = vadd.f32 %v1851_v43, %v1678_v8 }
 0x26c   : > { %v2079_v45 = vpop.f32.mrf.mxu0 }
 0x26d   : > { %v2130_v5 = vadd.f32 %v2077_v32, %v1904_v25 }
 0x26f   : > { %v2166_v54 = vadd.f32 %v3377_v46, %v2130_v5 }
 0x270   : > { %v1627_v27 = vpop.f32.mrf.mxu2 }
 0x271   : > { %v1853_v22 = vpop.f32.mrf.mxu3  ;;  %v2198_v63 = vmax.f32 %v2166_v54, 0.0  ;;  %v1679_v15 = vadd.f32 %v1627_v27, %v1452_v0  ;;  %v1403_v61 = vpop.f32.mrf.mxu1 }
 0x272   : > { %v1453_v51 = vadd.f32 %v1403_v61, %v3284_v9 }
 0x273   : > { %2230 = vst.msk [vmem:[%s3387_s16 + $0x90] sm:$0xff] %vm279_vm0, %v2198_v63  ;;  %v1905_v55 = vadd.f32 %v1853_v22, %v1679_v15 }
 0x274   : > { %v2082_v38 = vpop.f32.mrf.mxu0 }
 0x275   : > { %v2131_v29 = vadd.f32 %v2079_v45, %v1905_v55 }
 0x277   : > { %v2167_v58 = vadd.f32 %v3377_v46, %v2131_v29 }
 0x278   : > { %v1630_v47 = vpop.f32.mrf.mxu2 }
 0x279   : > { %v1856_v26 = vpop.f32.mrf.mxu3  ;;  %v2199_v33 = vmax.f32 %v2167_v58, 0.0  ;;  %v1680_v36 = vadd.f32 %v1630_v47, %v1453_v51  ;;  %v1405_v57 = vpop.f32.mrf.mxu1 }
 0x27a   : > { %v1454_v39 = vadd.f32 %v1405_v57, %v3294_v42 }
 0x27b   : > { %2231 = vst.msk [vmem:[%s3387_s16 + $0x98] sm:$0xff] %vm279_vm0, %v2199_v33  ;;  %v1906_v16 = vadd.f32 %v1856_v26, %v1680_v36 }
 0x27c   : > { %v2084_v48 = vpop.f32.mrf.mxu0 }
 0x27d   : > { %v2132_v30 = vadd.f32 %v2082_v38, %v1906_v16 }
 0x27f   : > { %v2168_v3 = vadd.f32 %v3377_v46, %v2132_v30 }
 0x280   : > { %v1632_v18 = vpop.f32.mrf.mxu2 }
 0x281   : > { %v1858_v17 = vpop.f32.mrf.mxu3  ;;  %v2200_v4 = vmax.f32 %v2168_v3, 0.0  ;;  %v1681_v9 = vadd.f32 %v1632_v18, %v1454_v39  ;;  %v1408_v24 = vpop.f32.mrf.mxu1 }
 0x282   : > { %v1455_v52 = vadd.f32 %v1408_v24, %v3299_v50 }
 0x283   : > { %2232 = vst.msk [vmem:[%s3387_s16 + $0xa0] sm:$0xff] %vm279_vm0, %v2200_v4  ;;  %v1907_v53 = vadd.f32 %v1858_v17, %v1681_v9 }
 0x284   : > { %v2087_v20 = vpop.f32.mrf.mxu0 }
 0x285   : > { %v2133_v19 = vadd.f32 %v2084_v48, %v1907_v53 }
 0x287   : > { %v2169_v2 = vadd.f32 %v3377_v46, %v2133_v19 }
 0x288   : > { %v1635_v10 = vpop.f32.mrf.mxu2 }
 0x289   : > { %v1861_v1 = vpop.f32.mrf.mxu3  ;;  %v2201_v49 = vmax.f32 %v2169_v2, 0.0  ;;  %v1682_v42 = vadd.f32 %v1635_v10, %v1455_v52  ;;  %v1410_v11 = vpop.f32.mrf.mxu1 }
 0x28a   : > { %v1456_v32 = vadd.f32 %v1410_v11, %v3309_v21 }
 0x28b   : > { %2233 = vst.msk [vmem:[%s3387_s16 + $0xa8] sm:$0xff] %vm279_vm0, %v2201_v49  ;;  %v1908_v7 = vadd.f32 %v1861_v1, %v1682_v42 }
 0x28c   : > { %v2089_v6 = vpop.f32.mrf.mxu0 }
 0x28d   : > { %v2134_v12 = vadd.f32 %v2087_v20, %v1908_v7 }
 0x28f   : > { %v2170_v13 = vadd.f32 %v3377_v46, %v2134_v12 }
 0x290   : > { %v1637_v44 = vpop.f32.mrf.mxu2 }
 0x291   : > { %v1863_v40 = vpop.f32.mrf.mxu3  ;;  %v2202_v62 = vmax.f32 %v2170_v13, 0.0  ;;  %v1683_v50 = vadd.f32 %v1637_v44, %v1456_v32  ;;  %v1413_v23 = vpop.f32.mrf.mxu1 }
 0x292   : > { %v1457_v25 = vadd.f32 %v1413_v23, %v3314_v37 }
 0x293   : > { %2234 = vst.msk [vmem:[%s3387_s16 + $0xb0] sm:$0xff] %vm279_vm0, %v2202_v62  ;;  %v1909_v43 = vadd.f32 %v1863_v40, %v1683_v50 }
 0x294   : > { %v2092_v14 = vpop.f32.mrf.mxu0 }
 0x295   : > { %v2135_v8 = vadd.f32 %v2089_v6, %v1909_v43 }
 0x297   : > { %v2171_v35 = vadd.f32 %v3377_v46, %v2135_v8 }
 0x298   : > { %v1640_v45 = vpop.f32.mrf.mxu2 }
 0x299   : > { %v1866_v5 = vpop.f32.mrf.mxu3  ;;  %v2203_v54 = vmax.f32 %v2171_v35, 0.0  ;;  %v1684_v21 = vadd.f32 %v1640_v45, %v1457_v25  ;;  %v1415_v0 = vpop.f32.mrf.mxu1 }
 0x29a   : > { %v1458_v61 = vadd.f32 %v1415_v0, %v3324_v31 }
 0x29b   : > { %2235 = vst.msk [vmem:[%s3387_s16 + $0xb8] sm:$0xff] %vm279_vm0, %v2203_v54  ;;  %v1910_v27 = vadd.f32 %v1866_v5, %v1684_v21 }
 0x29c   : > { %v2094_v22 = vpop.f32.mrf.mxu0 }
 0x29d   : > { %v2136_v63 = vadd.f32 %v2092_v14, %v1910_v27 }
 0x29f   : > { %v2172_v15 = vadd.f32 %v3377_v46, %v2136_v63 }
 0x2a0   : > { %v1642_v55 = vpop.f32.mrf.mxu2 }
 0x2a1   : > { %v1868_v38 = vpop.f32.mrf.mxu3  ;;  %v2204_v29 = vmax.f32 %v2172_v15, 0.0  ;;  %v1685_v37 = vadd.f32 %v1642_v55, %v1458_v61  ;;  %v1418_v58 = vpop.f32.mrf.mxu1 }
 0x2a2   : > { %v1459_v36 = vadd.f32 %v1418_v58, %v3329_v60 }
 0x2a3   : > { %2236 = vst.msk [vmem:[%s3387_s16 + $0xc0] sm:$0xff] %vm279_vm0, %v2204_v29  ;;  %v1911_v51 = vadd.f32 %v1868_v38, %v1685_v37 }
 0x2a4   : > { %v2097_v47 = vpop.f32.mrf.mxu0 }
 0x2a5   : > { %v2137_v26 = vadd.f32 %v2094_v22, %v1911_v51 }
 0x2a7   : > { %v2173_v33 = vadd.f32 %v3377_v46, %v2137_v26 }
 0x2a8   : > { %v1645_v57 = vpop.f32.mrf.mxu2 }
 0x2a9   : > { %v1871_v16 = vpop.f32.mrf.mxu3  ;;  %v2205_v48 = vmax.f32 %v2173_v33, 0.0  ;;  %v1686_v31 = vadd.f32 %v1645_v57, %v1459_v36  ;;  %v1420_v30 = vpop.f32.mrf.mxu1 }
 0x2aa   : > { %v1460_v4 = vadd.f32 %v1420_v30, %v3339_v56 }
 0x2ab   : > { %2237 = vst.msk [vmem:[%s3387_s16 + $0xc8] sm:$0xff] %vm279_vm0, %v2205_v48  ;;  %v1912_v3 = vadd.f32 %v1871_v16, %v1686_v31 }
 0x2ac   : > { %v2099_v39 = vpop.f32.mrf.mxu0 }
 0x2ad   : > { %v2138_v18 = vadd.f32 %v2097_v47, %v1912_v3 }
 0x2af   : > { %v2174_v17 = vadd.f32 %v3377_v46, %v2138_v18 }
 0x2b0   : > { %v1647_v9 = vpop.f32.mrf.mxu2 }
 0x2b1   : > { %v1873_v24 = vpop.f32.mrf.mxu3  ;;  %v2206_v53 = vmax.f32 %v2174_v17, 0.0  ;;  %v1687_v60 = vadd.f32 %v1647_v9, %v1460_v4  ;;  %v1423_v20 = vpop.f32.mrf.mxu1 }
 0x2b2   : > { %v1461_v1 = vadd.f32 %v1423_v20, %v3344_v59 }
 0x2b3   : > { %2238 = vst.msk [vmem:[%s3387_s16 + $0xd0] sm:$0xff] %vm279_vm0, %v2206_v53  ;;  %v1913_v19 = vadd.f32 %v1873_v24, %v1687_v60 }
 0x2b4   : > { %v2102_v52 = vpop.f32.mrf.mxu0 }
 0x2b5   : > { %v2139_v2 = vadd.f32 %v2099_v39, %v1913_v19 }
 0x2b7   : > { %v2175_v10 = vadd.f32 %v3377_v46, %v2139_v2 }
 0x2b8   : > { %v1650_v49 = vpop.f32.mrf.mxu2 }
 0x2b9   : > { %v1876_v42 = vpop.f32.mrf.mxu3  ;;  %v2207_v11 = vmax.f32 %v2175_v10, 0.0  ;;  %v1688_v56 = vadd.f32 %v1650_v49, %v1461_v1  ;;  %v1425_v7 = vpop.f32.mrf.mxu1 }
 0x2ba   : > { %v1462_v32 = vadd.f32 %v1425_v7, %v3354_v41 }
 0x2bb   : > { %2239 = vst.msk [vmem:[%s3387_s16 + $0xd8] sm:$0xff] %vm279_vm0, %v2207_v11  ;;  %v1914_v6 = vadd.f32 %v1876_v42, %v1688_v56 }
 0x2bc   : > { %v2104_v44 = vpop.f32.mrf.mxu0 }
 0x2bd   : > { %v2140_v12 = vadd.f32 %v2102_v52, %v1914_v6 }
 0x2bf   : > { %v2176_v13 = vadd.f32 %v3377_v46, %v2140_v12 }
 0x2c0   : > { %v1652_v40 = vpop.f32.mrf.mxu2 }
 0x2c1   : > { %v1878_v62 = vpop.f32.mrf.mxu3  ;;  %v2208_v50 = vmax.f32 %v2176_v13, 0.0  ;;  %v1689_v59 = vadd.f32 %v1652_v40, %v1462_v32  ;;  %v1428_v23 = vpop.f32.mrf.mxu1 }
 0x2c2   : > { %v1463_v35 = vadd.f32 %v1428_v23, %v3359_v34 }
 0x2c3   : > { %2240 = vst.msk [vmem:[%s3387_s16 + $0xe0] sm:$0xff] %vm279_vm0, %v2208_v50  ;;  %v1915_v43 = vadd.f32 %v1878_v62, %v1689_v59 }
 0x2c4   : > { %v2107_v54 = vpop.f32.mrf.mxu0 }
 0x2c5   : > { %v2141_v14 = vadd.f32 %v2104_v44, %v1915_v43 }
 0x2c7   : > { %v2177_v8 = vadd.f32 %v3377_v46, %v2141_v14 }
 0x2c8   : > { %v1655_v25 = vpop.f32.mrf.mxu2 }
 0x2c9   : > { %v1881_v45 = vpop.f32.mrf.mxu3  ;;  %v2209_v5 = vmax.f32 %v2177_v8, 0.0  ;;  %v1690_v41 = vadd.f32 %v1655_v25, %v1463_v35  ;;  %v1430_v0 = vpop.f32.mrf.mxu1 }
 0x2ca   : > { %v1464_v63 = vadd.f32 %v1430_v0, %v3369_v28 }
 0x2cb   : > { %2241 = vst.msk [vmem:[%s3387_s16 + $0xe8] sm:$0xff] %vm279_vm0, %v2209_v5  ;;  %v1916_v21 = vadd.f32 %v1881_v45, %v1690_v41 }
 0x2cc   : > { %v2109_v29 = vpop.f32.mrf.mxu0 }
 0x2cd   : > { %v2142_v27 = vadd.f32 %v2107_v54, %v1916_v21 }
 0x2cf   : > { %v2178_v22 = vadd.f32 %v3377_v46, %v2142_v27 }
 0x2d0   : > { %v1657_v15 = vpop.f32.mrf.mxu2 }
 0x2d1   : > { %v2210_v61 = vmax.f32 %v2178_v22, 0.0  ;;  %v1691_v55 = vadd.f32 %v1657_v15, %v1464_v63  ;;  %v1883_v34 = vpop.f32.mrf.mxu3 }
 0x2d3   : > { %2242 = vst.msk [vmem:[%s3387_s16 + $0xf0] sm:$0xff] %vm279_vm0, %v2210_v61  ;;  %v1917_v38 = vadd.f32 %v1883_v34, %v1691_v55 }
 0x2d5   : > { %v2143_v37 = vadd.f32 %v2109_v29, %v1917_v38 }
 0x2d7   : > { %v2179_v58 = vadd.f32 %v3377_v46, %v2143_v37 }
 0x2d9   : > { %v2211_v51 = vmax.f32 %v2179_v58, 0.0 }
 0x2db   : > { %2243 = vst.msk [vmem:[%s3387_s16 + $0xf8] sm:$0xff] %vm279_vm0, %v2211_v51 }
 0x2dc PF: > { %s13_s12 = sadd.s32 1, %s2726_s12  }
 0x2dd   : > { %p10_p4 = scmp.ge.s32.totalorder %s13_s12, 4  }
 0x2df   :  { %12 = sbr.rel (!%p10_p4) target bundleno = 1 (0x1), region = 72 }

</bundles_post_ra>
